<compile_context>
chip_gen: v7x
topology: tpu7x:2x2x1
jax: 0.10.0
libtpu: 0.0.40
codegen_flags: <defaults>
</compile_context>

<pallas_src>
import numpy as np

import jax
import jax.numpy as jnp
from jax.experimental import pallas as pl
from jax.experimental.pallas import tpu as pltpu


# ---------------------------------------------------------------------------
# Static helpers (trace/Python time)
# ---------------------------------------------------------------------------

def _bin_bounds(i, in_size, out_size):
    """PyTorch adaptive-pooling bin bounds: [floor(i*I/O), ceil((i+1)*I/O))."""
    start = (i * in_size) // out_size
    end = -((-((i + 1) * in_size)) // out_size)
    return start, end


def _build_pool_matrix(in_size, out_size, dtype=np.float32):
    """Static (D*H*W, oD*oH*oW) averaging matrix: column b holds 1/|bin_b| on the
    flat spatial positions belonging to adaptive bin b, 0 elsewhere."""
    D, H, W = in_size
    oD, oH, oW = out_size

    def axis_weights(I, O):
        m = np.zeros((I, O), dtype=np.float64)
        for o in range(O):
            s, e = _bin_bounds(o, I, O)
            m[s:e, o] = 1.0 / (e - s)
        return m

    md = axis_weights(D, oD)          # (D, oD)
    mh = axis_weights(H, oH)          # (H, oH)
    mw = axis_weights(W, oW)          # (W, oW)
    # P[d,h,w,od,oh,ow] = md[d,od]*mh[h,oh]*mw[w,ow]; flatten row-major on both sides.
    p = np.einsum("ij,kl,mn->ikmjln", md, mh, mw)
    return np.ascontiguousarray(p.reshape(D * H * W, oD * oH * oW)).astype(dtype)


def _vmem_limit_bytes():
    """Generation-aware scoped-VMEM limit: ~3/4 of physical, capped at 100 MiB
    (=> ~48 MiB on v7x's 64 MiB, ~96 MiB on v5e/v6e's 128 MiB)."""
    try:
        cap = int(getattr(pltpu.get_tpu_info(), "vmem_capacity_bytes", 64 << 20))
    except Exception:  # pragma: no cover - conservative fallback
        cap = 64 << 20
    return int(min(cap * 3 // 4, 100 << 20))


def _pick_row_tile(nc_rows, dhw, itemsize, *, target_bytes=4 << 20, min_steps=4):
    """Rows of the (N*C, DHW) matrix processed per grid step.

    * ~target_bytes per input block (2-8 MiB keeps a mem-bound kernel near the
      HBM roofline and fits comfortably under scoped VMEM when double-buffered).
    * at least `min_steps` grid steps when the problem is big enough (megacore /
      v7x two-TC sharding + pipeline depth).
    * multiple of 8 sublanes (>=256 rounded to 256 for a full MXU M push), or
      the whole row count (full block dims are always legal).
    """
    row_bytes = max(1, dhw * itemsize)
    tm = max(1, target_bytes // row_bytes)
    tm = min(tm, max(128, pl.cdiv(nc_rows, min_steps)))
    if tm >= nc_rows:
        return nc_rows
    if tm >= 256:
        tm = (tm // 256) * 256
    else:
        tm = max(8, (tm // 8) * 8)
    if nc_rows < 8:
        return nc_rows
    # Prefer a divisor of nc_rows so every block is full (no ragged edge block).
    for cand in range(tm, 7, -8):
        if nc_rows % cand == 0:
            return cand
    return tm  # ragged last block: Pallas masks the out-of-range rows on writeback


# ---------------------------------------------------------------------------
# Kernel
# ---------------------------------------------------------------------------

def _pool_matmul_kernel(x_ref, p_ref, o_ref):
    # x_ref: (tm, DHW)  rows are (n, c) pairs in natural NCDHW order, DHW on lanes.
    # p_ref: (DHW, obins) static averaging matrix, resident in VMEM (constant block).
    # o_ref: (tm, obins) pooled output, already in torch `view(N, -1)` order.
    acc = jnp.dot(
        x_ref[...].astype(jnp.float32),
        p_ref[...],
        preferred_element_type=jnp.float32,
        precision=jax.lax.Precision.HIGHEST,
    )
    o_ref[...] = acc.astype(o_ref.dtype)  # single full-tile store per step


# ---------------------------------------------------------------------------
# Wrapper (== FeaturePooling(output_size).forward for NCDHW input)
# ---------------------------------------------------------------------------

def feature_pooling(x, output_size, *, row_tile=None):
    if isinstance(output_size, int):
        output_size = (output_size,) * 3
    oD, oH, oW = output_size
    N, C, D, H, W = x.shape
    DHW = D * H * W
    obins = oD * oH * oW
    NC = N * C

    # Free, contiguous view of the natural NCDHW layout: no HBM transpose.
    x2 = x.reshape(NC, DHW)

    # Static averaging matrix, kept f32 for exact bin weights; accumulate in f32.
    p = jnp.asarray(_build_pool_matrix((D, H, W), (oD, oH, oW), np.float32))

    tm = row_tile if row_tile is not None else _pick_row_tile(
        NC, DHW, x.dtype.itemsize)

    # TODO(synk): tile the DHW (K) axis with an f32 accumulator if
    # 8 * DHW * itemsize (the minimum input block) ever exceeds the VMEM budget.
    pooled = pl.pallas_call(
        _pool_matmul_kernel,
        out_shape=jax.ShapeDtypeStruct((NC, obins), x.dtype),
        grid=(pl.cdiv(NC, tm),),
        in_specs=[
            pl.BlockSpec((tm, DHW), lambda i: (i, 0)),
            pl.BlockSpec((DHW, obins), lambda i: (0, 0)),  # constant -> stays resident
        ],
        out_specs=pl.BlockSpec((tm, obins), lambda i: (i, 0)),
        compiler_params=pltpu.CompilerParams(
            dimension_semantics=("parallel",),          # independent row tiles
            vmem_limit_bytes=_vmem_limit_bytes(),
        ),
    )(x2, p)

    # (N*C, obins) -> (N, C*obins): row r = n*C + c, flat = c*obins + bin, which is
    # exactly torch's contiguous (N, C, oD, oH, oW).view(N, -1) ordering.
    return pooled.reshape(N, C * obins)


# ---------------------------------------------------------------------------
# Pure-JAX reference for verification
# ---------------------------------------------------------------------------

def _reference(x, output_size):
    if isinstance(output_size, int):
        output_size = (output_size,) * 3
    oD, oH, oW = output_size
    N, C, D, H, W = x.shape
    out = jnp.zeros((N, C, oD, oH, oW), dtype=jnp.float32)
    xf = x.astype(jnp.float32)
    for od in range(oD):
        d0, d1 = _bin_bounds(od, D, oD)
        for oh in range(oH):
            h0, h1 = _bin_bounds(oh, H, oH)
            for ow in range(oW):
                w0, w1 = _bin_bounds(ow, W, oW)
                m = jnp.mean(xf[:, :, d0:d1, h0:h1, w0:w1], axis=(2, 3, 4))
                out = out.at[:, :, od, oh, ow].set(m)
    return out.astype(x.dtype).reshape(N, -1)


if __name__ == "__main__":
    # Case 1: many channels, uneven adaptive bins -> multi-step row-tiled grid.
    key = jax.random.PRNGKey(0)
    N, C, D, H, W = 2, 256, 4, 10, 12
    out_size = (2, 3, 4)
    x = jax.random.normal(key, (N, C, D, H, W), dtype=jnp.float32)

    y = jax.block_until_ready(feature_pooling(x, out_size))
    y_ref = _reference(x, out_size)
    assert y.shape == (N, C * out_size[0] * out_size[1] * out_size[2])
    assert jnp.allclose(y, y_ref, atol=2e-5, rtol=2e-5), "case 1 mismatch"

    # Case 2: small channel count, int output_size -> whole (N*C, DHW) in one step
    # (DHW on lanes keeps the block lane-dense despite C=4).
    key2 = jax.random.PRNGKey(0)
    N2, C2, D2, H2, W2 = 2, 4, 8, 16, 16
    x2 = jax.random.normal(key2, (N2, C2, D2, H2, W2), dtype=jnp.float32)

    y2 = jax.block_until_ready(feature_pooling(x2, 2))
    y2_ref = _reference(x2, 2)
    assert y2.shape == (N2, C2 * 8)
    assert jnp.allclose(y2, y2_ref, atol=2e-5, rtol=2e-5), "case 2 mismatch"

    print("KERNEL_OK")
</pallas_src>

<mosaic_0001>
module attributes {stable_mosaic.version = 11 : i64} {
  func.func @_pool_matmul_kernel(%arg0: i32, %arg1: memref<128x480xf32, #tpu.memory_space<vmem>>, %arg2: memref<480x24xf32, #tpu.memory_space<vmem>>, %arg3: memref<128x24xf32, #tpu.memory_space<vmem>>) attributes {dimension_semantics = [#tpu.dimension_semantics<parallel>], iteration_bounds = array<i64: 4>, scalar_prefetch = 0 : i64, scratch_operands = 0 : i64, tpu.core_type = #tpu.core_type<tc>, window_params = [{transform_indices = @transform_0, window_bounds = array<i64: 128, 480>}, {pipeline_mode = #tpu.pipeline_mode<synchronous>, transform_indices = @transform_1, window_bounds = array<i64: 480, 24>}, {transform_indices = @transform_2, window_bounds = array<i64: 128, 24>}]} {
    %c0 = arith.constant 0 : index
    %c0_0 = arith.constant 0 : index
    %0 = vector.load %arg1[%c0, %c0_0] : memref<128x480xf32, #tpu.memory_space<vmem>>, vector<128x480xf32>
    %c0_1 = arith.constant 0 : index
    %c0_2 = arith.constant 0 : index
    %1 = vector.load %arg2[%c0_1, %c0_2] : memref<480x24xf32, #tpu.memory_space<vmem>>, vector<480x24xf32>
    %cst = arith.constant dense<0.000000e+00> : vector<128x24xf32>
    %2 = tpu.matmul %0, %1, %cst {dimension_numbers = #tpu.dot_dimension_numbers<[1], [0], [0], [1], [0, 0, 1, 1], [], []>, precision = #tpu.contract_precision<fp32>} : vector<128x480xf32>, vector<480x24xf32>, vector<128x24xf32> -> vector<128x24xf32>
    %c0_3 = arith.constant 0 : index
    %c0_4 = arith.constant 0 : index
    %3 = vector.load %arg3[%c0_3, %c0_4] : memref<128x24xf32, #tpu.memory_space<vmem>>, vector<128x24xf32>
    tpu.vector_store %arg3[%c0_3, %c0_4], %2 {strides = array<i32>} : memref<128x24xf32, #tpu.memory_space<vmem>>, vector<128x24xf32>,
    return
  }
  func.func @transform_0(%arg0: i32) -> (i32, i32) {
    %c0_i32 = arith.constant 0 : i32
    %c0_i32_0 = arith.constant 0 : i32
    return %arg0, %c0_i32 : i32, i32
  }
  func.func @transform_1(%arg0: i32) -> (i32, i32) {
    %c0_i32 = arith.constant 0 : i32
    %c0_i32_0 = arith.constant 0 : i32
    %c0_i32_1 = arith.constant 0 : i32
    return %c0_i32, %c0_i32_0 : i32, i32
  }
  func.func @transform_2(%arg0: i32) -> (i32, i32) {
    %c0_i32 = arith.constant 0 : i32
    %c0_i32_0 = arith.constant 0 : i32
    return %arg0, %c0_i32 : i32, i32
  }
}

</mosaic_0001>

<bundles_post_ra>
// kernel: tpu_custom_call.1
= control target key start
LH: loop header
LB: loop body
LE: loop exit
PB: predicated region body
PF: predicated region fallthrough
CT: control target
= control target key end

     0   :  { %s4878_s9 = smov 0   ;;  %s7607_s0 = inlined_call_operand.vmem [shape: f32[512,480], index: 0, kind: input, shape index: {}]   ;;  %s7608_s1 = inlined_call_operand.vmem [shape: f32[480,24], index: 1, kind: input, shape index: {}]   ;;  %s7609_s2 = inlined_call_operand.vmem [shape: f32[512,24], index: 2, kind: output, shape index: {}]  }
   0x1 LB: > { %s3748_s10 = sadd.s32 4294967295, %s4860_s9   ;;  %p3752_p0 = scmp.ge.s32.totalorder %s4860_s9, 1  ;;  %s4860_s9 = sphi %s4878_s9, %s12_s9  }
   0x2   : > { %p114_p1 = scmp.lt.s32.totalorder %s4860_s9, 5 }
   0x4   : > { %p115_p2 = pnand %p3752_p0, %p114_p1 }
   0x6   : > { %118 = sbr.rel (%p115_p2) target bundleno = 697 (0x2b9), region = 28 }
   0xd   : > { %v230_v0 = vld [vmem:[%s7608_s1 + $0x80] sm:$0xff]  ;;  %v231_v1 = vld [vmem:[%s7608_s1 + $0x88] sm:$0xff]  ;;  %v232_v7 = vld [vmem:[%s7608_s1 + $0x90] sm:$0xff]  ;;  %s5035_s21 = sshll.u32 %s3748_s10, 4  ;;  %vm274_vm0 = vcmask 785408   ;;  %vm3675_vm1 = vcmask 195584  }
   0xe   : > { %v214_v2 = vld [vmem:[%s7608_s1] sm:$0xff]  ;;  %v372_v3 = vand.u32 4294901760, %v230_v0  ;;  %v375_v4 = vand.u32 4294901760, %v231_v1  ;;  %v215_v5 = vld [vmem:[%s7608_s1 + $0x8] sm:$0xff]  ;;  %v233_v8 = vld [vmem:[%s7608_s1 + $0x98] sm:$0xff]  ;;  %v378_v10 = vand.u32 4294901760, %v232_v7 }
   0xf   : > { %v324_v6 = vand.u32 4294901760, %v214_v2  ;;  %v327_v9 = vand.u32 4294901760, %v215_v5  ;;  %v381_v11 = vand.u32 4294901760, %v233_v8  ;;  %v216_v12 = vld [vmem:[%s7608_s1 + $0x10] sm:$0xff]  ;;  %v217_v13 = vld [vmem:[%s7608_s1 + $0x18] sm:$0xff]  ;;  %v234_v18 = vld [vmem:[%s7608_s1 + $0xa0] sm:$0xff] }
  0x10   : > { %v4910_v14 = vpack.c.bf16 %v375_v4, %v372_v3  ;;  %v4912_v15 = vsub.f32 %v230_v0, %v372_v3  ;;  %v4914_v16 = vsub.f32 %v231_v1, %v375_v4  ;;  %v330_v17 = vand.u32 4294901760, %v216_v12  ;;  %v235_v19 = vld [vmem:[%s7608_s1 + $0xa8] sm:$0xff]  ;;  %v218_v40 = vld [vmem:[%s7608_s1 + $0x20] sm:$0xff]  ;;  %v236_v46 = vld [vmem:[%s7608_s1 + $0xb0] sm:$0xff]  ;;  %p138_p3 = scmp.lt.s32.totalorder %s5035_s21, 63 }
  0x11   : > { %v4922_v20 = vpack.c.bf16 %v327_v9, %v324_v6  ;;  %v4924_v21 = vpack.c.bf16 %v381_v11, %v378_v10  ;;  %v4926_v22 = vsub.f32 %v232_v7, %v378_v10  ;;  %v4928_v23 = vsub.f32 %v233_v8, %v381_v11  ;;  %v219_v41 = vld [vmem:[%s7608_s1 + $0x28] sm:$0xff]  ;;  %v237_v55 = vld [vmem:[%s7608_s1 + $0xb8] sm:$0xff]  ;;  %v220_v60 = vld [vmem:[%s7608_s1 + $0x30] sm:$0xff] }
  0x12   : > { %8076 = vst [vmem:[#allocation2_spill] sm:$0xff] %v4910_v14  ;;  %4242 = vmatprep.subr.bf16.mxu1 %v4910_v14  ;;  %v775_v24 = vand.u32 4294901760, %v4912_v15  ;;  %v782_v25 = vand.u32 4294901760, %v4914_v16  ;;  %v333_v26 = vand.u32 4294901760, %v217_v13  ;;  %v4933_v27 = vsub.f32 %v216_v12, %v330_v17  ;;  %v238_v10 = vld [vmem:[%s7608_s1 + $0xc0] sm:$0xff]  ;;  %v239_v11 = vld [vmem:[%s7608_s1 + $0xc8] sm:$0xff] }
  0x13   : > { %8077 = vst [vmem:[#allocation3_spill] sm:$0xff] %v4922_v20  ;;  %8078 = vst [vmem:[#allocation4_spill] sm:$0xff] %v4924_v21  ;;  %4244 = vmatpush3.bf16.msra.mxu1 %v4922_v20  ;;  %v4936_v28 = vsub.f32 %v214_v2, %v324_v6  ;;  %v4938_v29 = vsub.f32 %v215_v5, %v327_v9  ;;  %v384_v30 = vand.u32 4294901760, %v234_v18  ;;  %v387_v31 = vand.u32 4294901760, %v235_v19  ;;  %v221_v5 = vld [vmem:[%s7608_s1 + $0x38] sm:$0xff]  ;;  %s8825_s21 = smov (!%p138_p3, %s5035_s21), 63 }
  0x14   : > { %4246 = vmatprep.subr.bf16.mxu1 %v4924_v21  ;;  %v4942_v32 = vsub.f32 %v4912_v15, %v775_v24  ;;  %v4945_v33 = vsub.f32 %v4914_v16, %v782_v25  ;;  %v4369_v34 = vpack.c.bf16 %v782_v25, %v775_v24  ;;  %v4947_v35 = vpack.c.bf16 %v333_v26, %v330_v17  ;;  %s3760_s13 = sshll.u32 %s8825_s21, 5  ;;  %v245_v42 = vld [vmem:[%s7608_s1 + $0xf8] sm:$0xff] }
  0x15   : > { %v4949_v36 = vsub.f32 %v217_v13, %v333_v26  ;;  %v663_v37 = vand.u32 4294901760, %v4936_v28  ;;  %v670_v38 = vand.u32 4294901760, %v4938_v29  ;;  %v4953_v39 = vpack.c.bf16 %v387_v31, %v384_v30  ;;  %s5166_s23 = scalar_lea.vmem %s7607_s0, %s3760_s13 }
  0x16   : > { %8079 = vst [vmem:[#allocation5_spill] sm:$0xff] %v4947_v35  ;;  %4370 = vmatprep.subr.bf16.mxu0 %v4369_v34  ;;  %v4963_v44 = vsub.f32 %v234_v18, %v384_v30  ;;  %v4965_v45 = vsub.f32 %v235_v19, %v387_v31  ;;  %v7615_v50 = vand.u32 4294901760, %v4926_v22  ;;  %v7614_v51 = vand.u32 4294901760, %v4928_v23 }
  0x17   : > { %8080 = vst [vmem:[#allocation6_spill] sm:$0xff] %v4953_v39  ;;  %4248 = vmatpush3.bf16.msra.mxu1 %v4947_v35  ;;  %v4972_v47 = vsub.f32 %v4936_v28, %v663_v37  ;;  %v4975_v48 = vsub.f32 %v4938_v29, %v670_v38  ;;  %v4371_v49 = vpack.c.bf16 %v670_v38, %v663_v37  ;;  %v336_v52 = vand.u32 4294901760, %v218_v40  ;;  %v222_v38 = vld [vmem:[%s7608_s1 + $0x40] sm:$0xff] }
  0x18   : > { %4250 = vmatprep.subr.bf16.mxu1 %v4953_v39  ;;  %v339_v53 = vand.u32 4294901760, %v219_v41  ;;  %v677_v54 = vand.u32 4294901760, %v4933_v27  ;;  %v684_v58 = vand.u32 4294901760, %v4949_v36  ;;  %v390_v59 = vand.u32 4294901760, %v236_v46 }
  0x19   : > { %4372 = vmatpush3.bf16.msra.mxu0 %v4371_v49  ;;  %v4373_v61 = vpack.c.bf16 %v7614_v51, %v7615_v50  ;;  %v4996_v63 = vsub.f32 %v218_v40, %v336_v52  ;;  %v393_v4 = vand.u32 4294901760, %v237_v55  ;;  %v7613_v7 = vand.u32 4294901760, %v4963_v44 }
  0x1a   : > { %v4994_v62 = vpack.c.bf16 %v339_v53, %v336_v52  ;;  %v4998_v0 = vsub.f32 %v219_v41, %v339_v53  ;;  %v5001_v1 = vsub.f32 %v4933_v27, %v677_v54  ;;  %v5004_v2 = vsub.f32 %v4949_v36, %v684_v58  ;;  %v223_v52 = vld [vmem:[%s7608_s1 + $0x48] sm:$0xff] }
  0x1b   : > { %8082 = vst [vmem:[#allocation8_spill] sm:$0xff] %v4996_v63  ;;  %v4375_v3 = vpack.c.bf16 %v684_v58, %v677_v54  ;;  %4374 = vmatprep.subr.bf16.mxu0 %v4373_v61  ;;  %v5010_v6 = vsub.f32 %v236_v46, %v390_v59  ;;  %v7612_v8 = vand.u32 4294901760, %v4965_v45  ;;  %v342_v9 = vand.u32 4294901760, %v220_v60 }
  0x1c   : > { %8081 = vst [vmem:[#allocation7_spill] sm:$0xff] %v4994_v62  ;;  %8083 = vst [vmem:[#allocation9_spill] sm:$0xff] %v4998_v0  ;;  %4252 = vmatpush3.bf16.msra.mxu1 %v4994_v62  ;;  %v5022_v17 = vpack.c.bf16 %v393_v4, %v390_v59  ;;  %v5024_v18 = vsub.f32 %v237_v55, %v393_v4  ;;  %v345_v24 = vand.u32 4294901760, %v221_v5  ;;  %v691_v26 = vand.u32 4294901760, %v4996_v63  ;;  %v240_v59 = vld [vmem:[%s7608_s1 + $0xd0] sm:$0xff] }
  0x1d   : > { %4376 = vmatpush3.bf16.msra.mxu0 %v4375_v3  ;;  %v4377_v19 = vpack.c.bf16 %v7612_v8, %v7613_v7  ;;  %v5030_v25 = vsub.f32 %v220_v60, %v342_v9  ;;  %v698_v30 = vand.u32 4294901760, %v4998_v0  ;;  %v396_v31 = vand.u32 4294901760, %v238_v10  ;;  %v241_v60 = vld [vmem:[%s7608_s1 + $0xd8] sm:$0xff]  ;;  %v243_v8 = vld [vmem:[%s7608_s1 + $0xe8] sm:$0xff] }
  0x1e   : > { %8084 = vst [vmem:[#allocation10_spill] sm:$0xff] %v5022_v17  ;;  %4254 = vmatprep.subr.bf16.mxu1 %v5022_v17  ;;  %v399_v34 = vand.u32 4294901760, %v239_v11  ;;  %v7611_v37 = vand.u32 4294901760, %v5010_v6  ;;  %v5043_v40 = vpack.c.bf16 %v345_v24, %v342_v9  ;;  %v5045_v41 = vsub.f32 %v221_v5, %v345_v24 }
  0x1f   : > { %8085 = vst [vmem:[#allocation11_spill] sm:$0xff] %v5030_v25  ;;  %4378 = vmatprep.subr.bf16.mxu0 %v4377_v19  ;;  %v5048_v46 = vsub.f32 %v4996_v63, %v691_v26  ;;  %v7610_v49 = vand.u32 4294901760, %v5024_v18  ;;  %v5055_v53 = vsub.f32 %v4998_v0, %v698_v30  ;;  %v4379_v54 = vpack.c.bf16 %v698_v30, %v691_v26 }
  0x20   : > { %8086 = vst [vmem:[#allocation12_spill] sm:$0xff] %v5043_v40  ;;  %8087 = vst [vmem:[#allocation13_spill] sm:$0xff] %v5045_v41  ;;  %v5057_v55 = vpack.c.bf16 %v399_v34, %v396_v31  ;;  %v5059_v58 = vsub.f32 %v238_v10, %v396_v31  ;;  %4256 = vmatpush3.bf16.msra.mxu1 %v5043_v40  ;;  %v5070_v3 = vsub.f32 %v239_v11, %v399_v34  ;;  %v224_v34 = vld [vmem:[%s7608_s1 + $0x50] sm:$0xff] }
  0x21   : > { %v4381_v4 = vpack.c.bf16 %v7610_v49, %v7611_v37  ;;  %v348_v5 = vand.u32 4294901760, %v222_v38  ;;  %4380 = vmatpush3.bf16.msra.mxu0 %v4379_v54  ;;  %v351_v10 = vand.u32 4294901760, %v223_v52  ;;  %v705_v19 = vand.u32 4294901760, %v5030_v25 }
  0x22   : > { %8088 = vst [vmem:[#allocation14_spill] sm:$0xff] %v5057_v55  ;;  %4258 = vmatprep.subr.bf16.mxu1 %v5057_v55  ;;  %v712_v24 = vand.u32 4294901760, %v5045_v41  ;;  %v402_v26 = vand.u32 4294901760, %v240_v59  ;;  %v405_v30 = vand.u32 4294901760, %v241_v60  ;;  %v7617_v31 = vand.u32 4294901760, %v5059_v58 }
  0x23   : > { %4382 = vmatprep.subr.bf16.mxu0 %v4381_v4  ;;  %v5080_v11 = vsub.f32 %v222_v38, %v348_v5  ;;  %v5086_v54 = vpack.c.bf16 %v351_v10, %v348_v5  ;;  %v5088_v49 = vsub.f32 %v223_v52, %v351_v10  ;;  %v5091_v37 = vsub.f32 %v5030_v25, %v705_v19  ;;  %v225_v38 = vld [vmem:[%s7608_s1 + $0x58] sm:$0xff]  ;;  %v242_v4 = vld [vmem:[%s7608_s1 + $0xe0] sm:$0xff] }
  0x24   : > { %v5094_v9 = vsub.f32 %v5045_v41, %v712_v24  ;;  %v4383_v5 = vpack.c.bf16 %v712_v24, %v705_v19  ;;  %v5107_v52 = vpack.c.bf16 %v405_v30, %v402_v26  ;;  %v5109_v10 = vsub.f32 %v240_v59, %v402_v26  ;;  %v162_v25 = vld [vmem:[%s5166_s23 + $0x60] sm:$0xff] }
  0x25   : > { %8089 = vst [vmem:[#allocation15_spill] sm:$0xff] %v5080_v11  ;;  %8090 = vst [vmem:[#allocation16_spill] sm:$0xff] %v5086_v54  ;;  %v5111_v61 = vsub.f32 %v241_v60, %v405_v30  ;;  %4260 = vmatpush3.bf16.msra.mxu1 %v5086_v54  ;;  %v7616_v12 = vand.u32 4294901760, %v5070_v3  ;;  %v354_v19 = vand.u32 4294901760, %v224_v34  ;;  %v357_v59 = vand.u32 4294901760, %v225_v38 }
  0x26   : > { %8091 = vst [vmem:[#allocation17_spill] sm:$0xff] %v5088_v49  ;;  %8092 = vst [vmem:[#allocation18_spill] sm:$0xff] %v5107_v52  ;;  %4384 = vmatpush3.bf16.msra.mxu0 %v4383_v5  ;;  %4262 = vmatprep.subr.bf16.mxu1 %v5107_v52  ;;  %v719_v60 = vand.u32 4294901760, %v5080_v11  ;;  %v726_v24 = vand.u32 4294901760, %v5088_v49  ;;  %v408_v26 = vand.u32 4294901760, %v242_v4  ;;  %v411_v13 = vand.u32 4294901760, %v243_v8 }
  0x27   : > { %v4385_v30 = vpack.c.bf16 %v7616_v12, %v7617_v31  ;;  %v5127_v7 = vsub.f32 %v224_v34, %v354_v19  ;;  %v226_v5 = vld [vmem:[%s7608_s1 + $0x60] sm:$0xff]  ;;  %v5134_v50 = vpack.c.bf16 %v357_v59, %v354_v19  ;;  %v5136_v57 = vsub.f32 %v225_v38, %v357_v59  ;;  %v227_v34 = vld [vmem:[%s7608_s1 + $0x68] sm:$0xff]  ;;  %v244_v12 = vld [vmem:[%s7608_s1 + $0xf0] sm:$0xff] }
  0x28   : > { %v5139_v56 = vsub.f32 %v5080_v11, %v719_v60  ;;  %v5142_v43 = vsub.f32 %v5088_v49, %v726_v24  ;;  %v4387_v31 = vpack.c.bf16 %v726_v24, %v719_v60  ;;  %v5150_v19 = vpack.c.bf16 %v411_v13, %v408_v26 }
  0x29   : > { %8093 = vst [vmem:[#allocation19_spill] sm:$0xff] %v5127_v7  ;;  %8094 = vst [vmem:[#allocation20_spill] sm:$0xff] %v5134_v50  ;;  %4386 = vmatprep.subr.bf16.mxu0 %v4385_v30  ;;  %v5152_v38 = vsub.f32 %v242_v4, %v408_v26  ;;  %v5154_v59 = vsub.f32 %v243_v8, %v411_v13  ;;  %4264 = vmatpush3.bf16.msra.mxu1 %v5134_v50  ;;  %v7632_v54 = vand.u32 4294901760, %v5111_v61 }
  0x2a   : > { %8095 = vst [vmem:[#allocation21_spill] sm:$0xff] %v5136_v57  ;;  %8096 = vst [vmem:[#allocation22_spill] sm:$0xff] %v5150_v19  ;;  %v360_v30 = vand.u32 4294901760, %v226_v5  ;;  %4388 = vmatpush3.bf16.msra.mxu0 %v4387_v31  ;;  %4266 = vmatprep.subr.bf16.mxu1 %v5150_v19  ;;  %v363_v8 = vand.u32 4294901760, %v227_v34  ;;  %v733_v13 = vand.u32 4294901760, %v5127_v7  ;;  %v740_v4 = vand.u32 4294901760, %v5136_v57 }
  0x2b   : > { %8097 = vst [vmem:[#allocation23_spill] sm:$0xff] %v5152_v38  ;;  %8098 = vst [vmem:[#allocation24_spill] sm:$0xff] %v5154_v59  ;;  %v414_v60 = vand.u32 4294901760, %v244_v12  ;;  %v8099_v24 = vand.u32 4294901760, %v5109_v10  ;;  %v417_v51 = vand.u32 4294901760, %v245_v42  ;;  %v228_v19 = vld [vmem:[%s7608_s1 + $0x70] sm:$0xff] }
  0x2c   : > { %v5175_v52 = vsub.f32 %v226_v5, %v360_v30  ;;  %v5181_v50 = vpack.c.bf16 %v363_v8, %v360_v30  ;;  %v5183_v55 = vsub.f32 %v227_v34, %v363_v8  ;;  %v5186_v40 = vsub.f32 %v5127_v7, %v733_v13  ;;  %v229_v5 = vld [vmem:[%s7608_s1 + $0x78] sm:$0xff]  ;;  %v150_v34 = vld [vmem:[%s5166_s23] sm:$0xff] }
  0x2d   : > { %v4389_v26 = vpack.c.bf16 %v7632_v54, %v8099_v24  ;;  %v5189_v17 = vsub.f32 %v5136_v57, %v740_v4  ;;  %v151_v24 = vld [vmem:[%s5166_s23 + $0x8] sm:$0xff]  ;;  %v4391_v54 = vpack.c.bf16 %v740_v4, %v733_v13  ;;  %v5195_v31 = vpack.c.bf16 %v417_v51, %v414_v60  ;;  %v158_v7 = vld [vmem:[%s5166_s23 + $0x40] sm:$0xff] }
  0x2e   : > { %8100 = vst [vmem:[#allocation25_spill] sm:$0xff] %v5175_v52  ;;  %8101 = vst [vmem:[#allocation26_spill] sm:$0xff] %v5181_v50  ;;  %v5197_v62 = vsub.f32 %v244_v12, %v414_v60  ;;  %v5199_v30 = vsub.f32 %v245_v42, %v417_v51  ;;  %4268 = vmatpush3.bf16.msra.mxu1 %v5181_v50  ;;  %v7647_v35 = vand.u32 4294901760, %v5154_v59  ;;  %v366_v21 = vand.u32 4294901760, %v228_v19 }
  0x2f   : > { %8102 = vst [vmem:[#allocation27_spill] sm:$0xff] %v5183_v55  ;;  %4390 = vmatprep.subr.bf16.mxu0 %v4389_v26  ;;  %8103 = vst [vmem:[#allocation28_spill] sm:$0xff] %v5195_v31  ;;  %4270 = vmatprep.subr.bf16.mxu1 %v5195_v31  ;;  %v369_v13 = vand.u32 4294901760, %v229_v5  ;;  %v747_v4 = vand.u32 4294901760, %v5175_v52  ;;  %v754_v12 = vand.u32 4294901760, %v5183_v55  ;;  %v5209_v42 = vand.u32 4294901760, %v151_v24 }
  0x30   : > { %8104 = vst [vmem:[#allocation29_spill] sm:$0xff] %v5197_v62  ;;  %8105 = vst [vmem:[#allocation30_spill] sm:$0xff] %v5199_v30  ;;  %4392 = vmatpush3.bf16.msra.mxu0 %v4391_v54  ;;  %v8107_v51 = vand.u32 4294901760, %v5152_v38  ;;  %v5215_v26 = vsub.f32 %v228_v19, %v366_v21  ;;  %v5217_v39 = vand.u32 4294901760, %v150_v34  ;;  %v8116_v54 = vand.u32 4294901760, %v4945_v33 }
  0x31   : > { %8106 = vst [vmem:[#allocation31_spill] sm:$0xff] %v5209_v42  ;;  %v5220_v8 = vpack.c.bf16 %v369_v13, %v366_v21  ;;  %v5222_v31 = vsub.f32 %v229_v5, %v369_v13  ;;  %v5225_v50 = vsub.f32 %v5175_v52, %v747_v4  ;;  %v5228_v20 = vsub.f32 %v5183_v55, %v754_v12  ;;  %v155_v5 = vld [vmem:[%s5166_s23 + $0x28] sm:$0xff] }
  0x32   : > { %v4393_v60 = vpack.c.bf16 %v7647_v35, %v8107_v51  ;;  %8108 = vst [vmem:[#allocation32_spill] sm:$0xff] %v5215_v26  ;;  %8109 = vst [vmem:[#allocation33_spill] sm:$0xff] %v5217_v39  ;;  %1704 = vmatprep.mubr.f32.mxu0 %v5209_v42  ;;  %v4395_v19 = vpack.c.bf16 %v754_v12, %v747_v4  ;;  %v5232_v51 = vsub.f32 %v151_v24, %v5209_v42  ;;  %v154_v4 = vld [vmem:[%s5166_s23 + $0x20] sm:$0xff] }
  0x33   : > { %8110 = vst [vmem:[#allocation34_spill] sm:$0xff] %v5220_v8  ;;  %8111 = vst [vmem:[#allocation35_spill] sm:$0xff] %v5222_v31  ;;  %v5235_v35 = vsub.f32 %v150_v34, %v5217_v39  ;;  %v7655_v21 = vand.u32 4294901760, %v5199_v30  ;;  %4272 = vmatpush3.bf16.msra.mxu1 %v5220_v8  ;;  %v761_v14 = vand.u32 4294901760, %v5215_v26  ;;  %v8114_v12 = vand.u32 4294901760, %v5197_v62 }
  0x34   : > { %4394 = vmatprep.subr.bf16.mxu0 %v4393_v60  ;;  %8112 = vst [vmem:[#allocation36_spill] sm:$0xff] %v5232_v51  ;;  %v768_v60 = vand.u32 4294901760, %v5222_v31  ;;  %v8115_v13 = vand.u32 4294901760, %v4942_v32  ;;  %v5266_v57 = vand.u32 4294901760, %v155_v5  ;;  %v5271_v32 = vld [vmem:[%s7608_s1 + $0x108] sm:$0xff]  ;;  %v8120_v33 = vand.u32 4294901760, %v5232_v51 }
  0x35   : > { %8113 = vst [vmem:[#allocation37_spill] sm:$0xff] %v5235_v35  ;;  %4396 = vmatpush3.bf16.msra.mxu0 %v4395_v19  ;;  %v4397_v8 = vpack.c.bf16 %v7655_v21, %v8114_v12  ;;  %v5258_v19 = vld [vmem:[%s7608_s1 + $0x100] sm:$0xff]  ;;  %v5261_v24 = vsub.f32 %v5215_v26, %v761_v14  ;;  %8119 = vst [vmem:[#allocation40_spill] sm:$0xff] %v5271_v32  ;;  %v8122_v21 = vand.u32 4294901760, %v4972_v47  ;;  %v159_v26 = vld [vmem:[%s5166_s23 + $0x48] sm:$0xff] }
  0x36   : > { %v4273_v55 = vpack.c.bf16 %v8116_v54, %v8115_v13  ;;  %8117 = vst [vmem:[#allocation38_spill] sm:$0xff] %v5258_v19  ;;  %v5264_v34 = vsub.f32 %v5222_v31, %v768_v60  ;;  %v4399_v52 = vpack.c.bf16 %v768_v60, %v761_v14  ;;  %8118 = vst [vmem:[#allocation39_spill] sm:$0xff] %v5266_v57  ;;  %v8121_v13 = vand.u32 4294901760, %v5235_v35 }
  0x37   : > { %v422_v54 = vsub.f32 %v5232_v51, %v8120_v33  ;;  %4398 = vmatprep.subr.bf16.mxu0 %v4397_v8  ;;  %v8123_v14 = vand.u32 4294901760, %v4975_v48  ;;  %v5283_v31 = vand.u32 4294901760, %v154_v4  ;;  %v5290_v33 = vsub.f32 %v155_v5, %v5266_v57 }
  0x38   : > { %v428_v12 = vsub.f32 %v5235_v35, %v8121_v13  ;;  %4274 = vmatprep.subr.bf16.mxu1 %v4273_v55  ;;  %v7663_v13 = vand.u32 4294901760, %v5258_v19  ;;  %v7664_v48 = vand.u32 4294901760, %v5271_v32  ;;  %v5304_v11 = vand.u32 4294901760, %v159_v26 }
  0x39   : > { %v4275_v60 = vpack.c.bf16 %v8123_v14, %v8122_v21  ;;  %8124 = vst [vmem:[#allocation41_spill] sm:$0xff] %v5283_v31  ;;  %8125 = vst [vmem:[#allocation42_spill] sm:$0xff] %v5290_v33  ;;  %v423_v8 = vand.u32 4294901760, %v422_v54  ;;  %4400 = vmatpush3.bf16.msra.mxu0 %v4399_v52  ;;  %v5294_v47 = vsub.f32 %v154_v4, %v5283_v31  ;;  %v7666_v21 = vand.u32 4294901760, %v5290_v33 }
  0x3a   : > { %v429_v55 = vand.u32 4294901760, %v428_v12  ;;  %v7661_v14 = vmov 0.0|0.0   ;;  %v5302_v5 = vsub.f32 %v5258_v19, %v7663_v13  ;;  %8128 = vst [vmem:[#allocation45_spill] sm:$0xff] %v5304_v11  ;;  %v5306_v54 = vand.u32 4294901760, %v158_v7 }
  0x3b   : > { %8126 = vst [vmem:[#allocation43_spill] sm:$0xff] %v5294_v47  ;;  %4475 = vmatprep.subr.bf16.mxu0 %v7661_v14  ;;  %424 = vmatprep.mubr.f32.mxu1 %v423_v8  ;;  %v5312_v4 = vsub.f32 %v5271_v32, %v7664_v48  ;;  %v8131_v12 = vand.u32 4294901760, %v4926_v22  ;;  %v8132_v14 = vand.u32 4294901760, %v4928_v23  ;;  %v437_v8 = vsub.f32 %v5290_v33, %v7666_v21  ;;  %v163_v21 = vld [vmem:[%s5166_s23 + $0x68] sm:$0xff] }
  0x3c   : > { %8127 = vst [vmem:[#allocation44_spill] sm:$0xff] %v5302_v5  ;;  %8129 = vst [vmem:[#allocation46_spill] sm:$0xff] %v5306_v54  ;;  %430 = vmatmul.mubr.f32.vlgmr.msra.gmra.mrb[0].mxu1 %v429_v55  ;;  %1706 = vmatmul.mubr.f32.vlgmr.msra.gmra.mrb[0].mxu0 %v5217_v39  ;;  %v5326_v48 = vsub.f32 %v159_v26, %v5304_v11  ;;  %v5329_v32 = vsub.f32 %v158_v7, %v5306_v54  ;;  %v8136_v55 = vand.u32 4294901760, %v5294_v47  ;;  %v5344_v7 = vld [vmem:[%s7608_s1 + $0x118] sm:$0xff] }
  0x3d   : > { %8130 = vst [vmem:[#allocation47_spill] sm:$0xff] %v5312_v4  ;;  %v790_v49 = vsub.f32 %v4926_v22, %v8131_v12  ;;  %v797_v13 = vsub.f32 %v4928_v23, %v8132_v14  ;;  %v5334_v14 = vld [vmem:[%s7608_s1 + $0x110] sm:$0xff]  ;;  %4276 = vmatpush3.bf16.msra.mxu1 %v4275_v60  ;;  %1711 = vmatprep.mubr.f32.mxu0 %v5266_v57  ;;  %8137 = vst [vmem:[#allocation51_spill] sm:$0xff] %v5344_v7  ;;  %v438_v19 = vand.u32 4294901760, %v437_v8 }
  0x3e   : > { %8133 = vst [vmem:[#allocation48_spill] sm:$0xff] %v5326_v48  ;;  %8134 = vst [vmem:[#allocation49_spill] sm:$0xff] %v5329_v32  ;;  %v443_v12 = vsub.f32 %v5294_v47, %v8136_v55  ;;  %v8138_v33 = vand.u32 4294901760, %v5302_v5  ;;  %v7680_v35 = vand.u32 4294901760, %v5326_v48  ;;  %v7679_v55 = vand.u32 4294901760, %v5329_v32 }
  0x3f   : > { %8135 = vst [vmem:[#allocation50_spill] sm:$0xff] %v5334_v14  ;;  %v791_v26 = vand.u32 4294901760, %v790_v49  ;;  %v798_v52 = vand.u32 4294901760, %v797_v13  ;;  %v8139_v49 = vand.u32 4294901760, %v5312_v4  ;;  %v7681_v41 = vand.u32 4294901760, %v5334_v14  ;;  %439 = vmatprep.mubr.f32.mxu1 %v438_v19 }
  0x40   : > { %v2362_v60 = vsub.f32 %v5302_v5, %v8138_v33  ;;  %v444_v47 = vand.u32 4294901760, %v443_v12  ;;  %v452_v33 = vsub.f32 %v5326_v48, %v7680_v35  ;;  %v458_v0 = vsub.f32 %v5329_v32, %v7679_v55  ;;  %1713 = vmatmul.mubr.f32.gmra.mrb[2].mxu0 %v5283_v31  ;;  %v5380_v12 = vld [vmem:[%s7608_s1 + $0x120] sm:$0xff] }
  0x41   : > { %v2369_v13 = vsub.f32 %v5312_v4, %v8139_v49  ;;  %v4277_v51 = vpack.c.bf16 %v798_v52, %v791_v26  ;;  %v167_v49 = vld [vmem:[%s5166_s23 + $0x88] sm:$0xff]  ;;  %v5369_v19 = vsub.f32 %v5334_v14, %v7681_v41  ;;  %v5371_v26 = vand.u32 4294901760, %v163_v21  ;;  %8144 = vst [vmem:[#allocation54_spill] sm:$0xff] %v5380_v12  ;;  %1718 = vmatprep.mubr.f32.mxu0 %v5304_v11  ;;  %v174_v11 = vld [vmem:[%s5166_s23 + $0xc0] sm:$0xff] }
  0x42   : > { %v2363_v8 = vand.u32 4294901760, %v2362_v60  ;;  %445 = vmatmul.mubr.f32.gmra.mrb[2].mxu1 %v444_v47  ;;  %v8142_v60 = vand.u32 4294901760, %v5001_v1  ;;  %v8143_v55 = vand.u32 4294901760, %v5004_v2  ;;  %v453_v47 = vand.u32 4294901760, %v452_v33  ;;  %v166_v2 = vld [vmem:[%s5166_s23 + $0x80] sm:$0xff] }
  0x43   : > { %v2370_v52 = vand.u32 4294901760, %v2369_v13  ;;  %4278 = vmatprep.subr.bf16.mxu1 %v4277_v51  ;;  %8140 = vst [vmem:[#allocation52_spill] sm:$0xff] %v5369_v19  ;;  %8141 = vst [vmem:[#allocation53_spill] sm:$0xff] %v5371_v26  ;;  %v5385_v51 = vld [vmem:[%s7608_s1 + $0x128] sm:$0xff]  ;;  %v459_v13 = vand.u32 4294901760, %v458_v0  ;;  %v8146_v41 = vand.u32 4294901760, %v5344_v7  ;;  %v5398_v14 = vsub.f32 %v163_v21, %v5371_v26 }
  0x44   : > { %v4279_v35 = vpack.c.bf16 %v8143_v55, %v8142_v60  ;;  %8145 = vst [vmem:[#allocation55_spill] sm:$0xff] %v5385_v51  ;;  %v5393_v1 = vand.u32 4294901760, %v162_v25  ;;  %v7687_v60 = vand.u32 4294901760, %v5369_v19  ;;  %v5400_v48 = vand.u32 4294901760, %v167_v49  ;;  %454 = vmatprep.mubr.f32.mxu1 %v453_v47  ;;  %1720 = vmatmul.mubr.f32.gmra.mrb[4].mxu0 %v5306_v54 }
  0x45   : > { %v5390_v32 = vsub.f32 %v5344_v7, %v8146_v41  ;;  %v4476_v55 = vpack.c.bf16 %v2370_v52, %v2363_v8  ;;  %8149 = vst [vmem:[#allocation58_spill] sm:$0xff] %v5398_v14  ;;  %v7697_v8 = vand.u32 4294901760, %v5385_v51  ;;  %v5416_v47 = vand.u32 4294901760, %v166_v2  ;;  %1725 = vmatprep.mubr.f32.mxu0 %v5371_v26 }
  0x46   : > { %8148 = vst [vmem:[#allocation57_spill] sm:$0xff] %v5393_v1  ;;  %4280 = vmatpush3.bf16.msra.mxu1 %v4279_v35  ;;  %8150 = vst [vmem:[#allocation59_spill] sm:$0xff] %v5400_v48  ;;  %v5404_v41 = vsub.f32 %v162_v25, %v5393_v1  ;;  %v2376_v35 = vsub.f32 %v5369_v19, %v7687_v60  ;;  %v5414_v52 = vsub.f32 %v167_v49, %v5400_v48  ;;  %v8154_v25 = vmov 0.0|0.0  }
  0x47   : > { %8147 = vst [vmem:[#allocation56_spill] sm:$0xff] %v5390_v32  ;;  %v7689_v0 = vand.u32 4294901760, %v5390_v32  ;;  %4477 = vmatpush1.bf16.msra.mxu0 %v4476_v55  ;;  %460 = vmatmul.mubr.f32.gmra.mrb[4].mxu1 %v459_v13  ;;  %8153 = vst [vmem:[#allocation62_spill] sm:$0xff] %v5416_v47  ;;  %v8155_v13 = vand.u32 4294901760, %v5380_v12  ;;  %v5432_v49 = vsub.f32 %v5385_v51, %v7697_v8  ;;  %v8158_v7 = vand.u32 4294901760, %v5398_v14 }
  0x48   : > { %8151 = vst [vmem:[#allocation60_spill] sm:$0xff] %v5404_v41  ;;  %8152 = vst [vmem:[#allocation61_spill] sm:$0xff] %v5414_v52  ;;  %4478 = vmatprep.subr.bf16.mxu0 %v8154_v25  ;;  %v2377_v21 = vand.u32 4294901760, %v2376_v35  ;;  %v7703_v55 = vand.u32 4294901760, %v5414_v52  ;;  %v5439_v26 = vsub.f32 %v166_v2, %v5416_v47  ;;  %1727 = vmatmul.mubr.f32.gmra.mrb[6].mxu0 %v5393_v1  ;;  %v5465_v2 = vld [vmem:[%s7608_s1 + $0x130] sm:$0xff]  ;;  %v175_v1 = vld [vmem:[%s5166_s23 + $0xc8] sm:$0xff] }
  0x49   : > { %v2383_v33 = vsub.f32 %v5390_v32, %v7689_v0  ;;  %v5427_v60 = vsub.f32 %v5380_v12, %v8155_v13  ;;  %8157 = vst [vmem:[#allocation64_spill] sm:$0xff] %v5432_v49  ;;  %v467_v0 = vsub.f32 %v5398_v14, %v8158_v7  ;;  %v8160_v32 = vand.u32 4294901760, %v5404_v41  ;;  %1732 = vmatprep.mubr.f32.mxu0 %v5400_v48  ;;  %v170_v48 = vld [vmem:[%s5166_s23 + $0xa0] sm:$0xff] }
  0x4a   : > { %8159 = vst [vmem:[#allocation65_spill] sm:$0xff] %v5439_v26  ;;  %v482_v7 = vsub.f32 %v5414_v52, %v7703_v55  ;;  %v8163_v14 = vand.u32 4294901760, %v5432_v49  ;;  %8164 = vst [vmem:[#allocation66_spill] sm:$0xff] %v5465_v2 }
  0x4b   : > { %8156 = vst [vmem:[#allocation63_spill] sm:$0xff] %v5427_v60  ;;  %v2384_v54 = vand.u32 4294901760, %v2383_v33  ;;  %v473_v13 = vsub.f32 %v5404_v41, %v8160_v32  ;;  %v468_v35 = vand.u32 4294901760, %v467_v0  ;;  %v8161_v33 = vand.u32 4294901760, %v4963_v44  ;;  %v171_v32 = vld [vmem:[%s5166_s23 + $0xa8] sm:$0xff] }
  0x4c   : > { %v8162_v41 = vand.u32 4294901760, %v5427_v60  ;;  %v2397_v55 = vsub.f32 %v5432_v49, %v8163_v14  ;;  %v8167_v14 = vand.u32 4294901760, %v4965_v45  ;;  %v5480_v19 = vand.u32 4294901760, %v171_v32  ;;  %1734 = vmatmul.mubr.f32.gmra.mrb[8].mxu0 %v5416_v47 }
  0x4d   : > { %v804_v51 = vsub.f32 %v4963_v44, %v8161_v33  ;;  %v4479_v12 = vpack.c.bf16 %v2384_v54, %v2377_v21  ;;  %v474_v8 = vand.u32 4294901760, %v473_v13  ;;  %v5470_v33 = vld [vmem:[%s7608_s1 + $0x138] sm:$0xff]  ;;  %469 = vmatprep.mubr.f32.mxu1 %v468_v35  ;;  %v483_v54 = vand.u32 4294901760, %v482_v7 }
  0x4e   : > { %v2390_v0 = vsub.f32 %v5427_v60, %v8162_v41  ;;  %8165 = vst [vmem:[#allocation67_spill] sm:$0xff] %v5470_v33  ;;  %v8166_v21 = vand.u32 4294901760, %v5439_v26  ;;  %v811_v52 = vsub.f32 %v4965_v45, %v8167_v14  ;;  %v2398_v60 = vand.u32 4294901760, %v2397_v55  ;;  %8168 = vst [vmem:[#allocation68_spill] sm:$0xff] %v5480_v19  ;;  %1739 = vmatprep.mubr.f32.mxu0 %v5480_v19 }
  0x4f   : > { %v805_v13 = vand.u32 4294901760, %v804_v51  ;;  %4480 = vmatpush1.bf16.msra.mxu0 %v4479_v12  ;;  %475 = vmatmul.mubr.f32.gmra.mrb[6].mxu1 %v474_v8  ;;  %v8169_v35 = vand.u32 4294901760, %v5048_v46  ;;  %v8170_v7 = vand.u32 4294901760, %v5055_v53  ;;  %v7720_v14 = vand.u32 4294901760, %v5465_v2  ;;  %v5493_v8 = vld [vmem:[%s7608_s1 + $0x140] sm:$0xff] }
  0x50   : > { %v488_v41 = vsub.f32 %v5439_v26, %v8166_v21  ;;  %v2391_v49 = vand.u32 4294901760, %v2390_v0  ;;  %4481 = vmatprep.subr.bf16.mxu0 %v8154_v25  ;;  %484 = vmatprep.mubr.f32.mxu1 %v483_v54  ;;  %v812_v21 = vand.u32 4294901760, %v811_v52  ;;  %v7719_v12 = vand.u32 4294901760, %v5470_v33  ;;  %8171 = vst [vmem:[#allocation69_spill] sm:$0xff] %v5493_v8  ;;  %v5506_v52 = vld [vmem:[%s7608_s1 + $0x148] sm:$0xff] }
  0x51   : > { %v4283_v63 = vpack.c.bf16 %v8170_v7, %v8169_v35  ;;  %v5496_v46 = vsub.f32 %v171_v32, %v5480_v19  ;;  %v5498_v53 = vand.u32 4294901760, %v170_v48  ;;  %v5501_v0 = vand.u32 4294901760, %v175_v1  ;;  %8175 = vst [vmem:[#allocation73_spill] sm:$0xff] %v5506_v52 }
  0x52   : > { %v489_v51 = vand.u32 4294901760, %v488_v41  ;;  %v4482_v55 = vpack.c.bf16 %v2398_v60, %v2391_v49  ;;  %v4281_v54 = vpack.c.bf16 %v812_v21, %v805_v13  ;;  %v5511_v41 = vsub.f32 %v5465_v2, %v7720_v14 }
  0x53   : > { %8172 = vst [vmem:[#allocation70_spill] sm:$0xff] %v5496_v46  ;;  %8173 = vst [vmem:[#allocation71_spill] sm:$0xff] %v5498_v53  ;;  %v5516_v60 = vsub.f32 %v5470_v33, %v7719_v12  ;;  %v5519_v49 = vand.u32 4294901760, %v174_v11  ;;  %v7721_v32 = vand.u32 4294901760, %v5496_v46  ;;  %v5523_v13 = vsub.f32 %v170_v48, %v5498_v53  ;;  %1741 = vmatmul.mubr.f32.gmra.mrb[10].mxu0 %v5498_v53 }
  0x54   : > { %8174 = vst [vmem:[#allocation72_spill] sm:$0xff] %v5501_v0  ;;  %8176 = vst [vmem:[#allocation74_spill] sm:$0xff] %v5511_v41  ;;  %4483 = vmatpush1.bf16.msra.mxu0 %v4482_v55  ;;  %490 = vmatmul.mubr.f32.gmra.mrb[8].mxu1 %v489_v51  ;;  %v5526_v35 = vsub.f32 %v175_v1, %v5501_v0  ;;  %v7722_v7 = vand.u32 4294901760, %v5493_v8  ;;  %v7724_v21 = vand.u32 4294901760, %v5511_v41  ;;  %v7731_v51 = vand.u32 4294901760, %v5506_v52 }
  0x55   : > { %8177 = vst [vmem:[#allocation75_spill] sm:$0xff] %v5516_v60  ;;  %8178 = vst [vmem:[#allocation76_spill] sm:$0xff] %v5519_v49  ;;  %4282 = vmatprep.subr.bf16.mxu1 %v4281_v54  ;;  %4484 = vmatprep.subr.bf16.mxu0 %v8154_v25  ;;  %v7727_v12 = vand.u32 4294901760, %v5516_v60  ;;  %v5533_v55 = vsub.f32 %v174_v11, %v5519_v49  ;;  %v497_v48 = vsub.f32 %v5496_v46, %v7721_v32 }
  0x56   : > { %8179 = vst [vmem:[#allocation77_spill] sm:$0xff] %v5523_v13  ;;  %8180 = vst [vmem:[#allocation78_spill] sm:$0xff] %v5526_v35  ;;  %4284 = vmatpush3.bf16.msra.mxu1 %v4283_v63  ;;  %v7734_v1 = vand.u32 4294901760, %v5523_v13  ;;  %v5545_v14 = vsub.f32 %v5493_v8, %v7722_v7  ;;  %v2404_v11 = vsub.f32 %v5511_v41, %v7724_v21  ;;  %1746 = vmatprep.mubr.f32.mxu0 %v5501_v0 }
  0x57   : > { %8181 = vst [vmem:[#allocation79_spill] sm:$0xff] %v5533_v55  ;;  %v2411_v63 = vsub.f32 %v5516_v60, %v7727_v12  ;;  %v5557_v54 = vsub.f32 %v5506_v52, %v7731_v51  ;;  %v498_v7 = vand.u32 4294901760, %v497_v48  ;;  %v8184_v21 = vand.u32 4294901760, %v5526_v35  ;;  %v179_v48 = vld [vmem:[%s5166_s23 + $0xe8] sm:$0xff]  ;;  %1748 = vmatmul.mubr.f32.gmra.mrb[12].mxu0 %v5519_v49  ;;  %v182_v49 = vld [vmem:[%s5166_s23 + $0x100] sm:$0xff] }
  0x58   : > { %8182 = vst [vmem:[#allocation80_spill] sm:$0xff] %v5545_v14  ;;  %v503_v8 = vsub.f32 %v5523_v13, %v7734_v1  ;;  %v7737_v12 = vand.u32 4294901760, %v5545_v14  ;;  %v2405_v32 = vand.u32 4294901760, %v2404_v11  ;;  %v8185_v33 = vand.u32 4294901760, %v5533_v55  ;;  %v183_v13 = vld [vmem:[%s5166_s23 + $0x108] sm:$0xff] }
  0x59   : > { %8183 = vst [vmem:[#allocation81_spill] sm:$0xff] %v5557_v54  ;;  %v512_v46 = vsub.f32 %v5526_v35, %v8184_v21  ;;  %v2412_v26 = vand.u32 4294901760, %v2411_v63  ;;  %499 = vmatprep.mubr.f32.mxu1 %v498_v7  ;;  %v8186_v35 = vand.u32 4294901760, %v5010_v6  ;;  %v178_v63 = vld [vmem:[%s5166_s23 + $0xe0] sm:$0xff] }
  0x5a   : > { %v518_v51 = vsub.f32 %v5533_v55, %v8185_v33  ;;  %v504_v2 = vand.u32 4294901760, %v503_v8  ;;  %v2418_v21 = vsub.f32 %v5545_v14, %v7737_v12  ;;  %v5583_v33 = vld [vmem:[%s7608_s1 + $0x150] sm:$0xff]  ;;  %v8188_v8 = vand.u32 4294901760, %v5557_v54 }
  0x5b   : > { %v513_v1 = vand.u32 4294901760, %v512_v46  ;;  %v818_v11 = vsub.f32 %v5010_v6, %v8186_v35  ;;  %8187 = vst [vmem:[#allocation82_spill] sm:$0xff] %v5583_v33  ;;  %v4485_v52 = vpack.c.bf16 %v2412_v26, %v2405_v32  ;;  %v8189_v12 = vand.u32 4294901760, %v5024_v18  ;;  %v5594_v35 = vld [vmem:[%s7608_s1 + $0x158] sm:$0xff] }
  0x5c   : > { %v519_v7 = vand.u32 4294901760, %v518_v51  ;;  %v2425_v46 = vsub.f32 %v5557_v54, %v8188_v8  ;;  %8190 = vst [vmem:[#allocation83_spill] sm:$0xff] %v5594_v35  ;;  %505 = vmatmul.mubr.f32.gmra.mrb[10].mxu1 %v504_v2  ;;  %v2419_v0 = vand.u32 4294901760, %v2418_v21  ;;  %v5598_v26 = vand.u32 4294901760, %v179_v48 }
  0x5d   : > { %v825_v55 = vsub.f32 %v5024_v18, %v8189_v12  ;;  %v819_v53 = vand.u32 4294901760, %v818_v11  ;;  %v8192_v32 = vand.u32 4294901760, %v5091_v37  ;;  %v8193_v51 = vand.u32 4294901760, %v5094_v9  ;;  %4486 = vmatpush1.bf16.msra.mxu0 %v4485_v52  ;;  %514 = vmatprep.mubr.f32.mxu1 %v513_v1  ;;  %v5620_v9 = vld [vmem:[%s7608_s1 + $0x160] sm:$0xff]  ;;  %v5625_v52 = vld [vmem:[%s7608_s1 + $0x168] sm:$0xff] }
  0x5e   : > { %8191 = vst [vmem:[#allocation84_spill] sm:$0xff] %v5598_v26  ;;  %v2426_v12 = vand.u32 4294901760, %v2425_v46  ;;  %v5604_v14 = vand.u32 4294901760, %v178_v63  ;;  %v7755_v19 = vand.u32 4294901760, %v5583_v33  ;;  %4487 = vmatprep.subr.bf16.mxu0 %v8154_v25  ;;  %v5609_v2 = vsub.f32 %v179_v48, %v5598_v26  ;;  %1753 = vmatprep.mubr.f32.mxu0 %v5598_v26  ;;  %8198 = vst [vmem:[#allocation89_spill] sm:$0xff] %v5620_v9 }
  0x5f   : > { %v4287_v8 = vpack.c.bf16 %v8193_v51, %v8192_v32  ;;  %v826_v54 = vand.u32 4294901760, %v825_v55  ;;  %v7754_v21 = vand.u32 4294901760, %v5594_v35  ;;  %v5612_v11 = vand.u32 4294901760, %v183_v13  ;;  %8199 = vst [vmem:[#allocation90_spill] sm:$0xff] %v5625_v52 }
  0x60   : > { %8194 = vst [vmem:[#allocation85_spill] sm:$0xff] %v5604_v14  ;;  %8195 = vst [vmem:[#allocation86_spill] sm:$0xff] %v5609_v2  ;;  %v5615_v37 = vand.u32 4294901760, %v182_v49  ;;  %v4488_v55 = vpack.c.bf16 %v2426_v12, %v2419_v0  ;;  %v5628_v48 = vsub.f32 %v178_v63, %v5604_v14  ;;  %v5633_v46 = vsub.f32 %v5583_v33, %v7755_v19 }
  0x61   : > { %8196 = vst [vmem:[#allocation87_spill] sm:$0xff] %v5612_v11  ;;  %v4285_v1 = vpack.c.bf16 %v826_v54, %v819_v53  ;;  %1755 = vmatmul.mubr.f32.gmra.mrb[14].mxu0 %v5604_v14  ;;  %520 = vmatmul.mubr.f32.gmra.mrb[12].mxu1 %v519_v7  ;;  %v7756_v32 = vand.u32 4294901760, %v5609_v2  ;;  %v5640_v51 = vsub.f32 %v5594_v35, %v7754_v21  ;;  %v7761_v7 = vand.u32 4294901760, %v5620_v9  ;;  %v190_v14 = vld [vmem:[%s5166_s23 + $0x140] sm:$0xff] }
  0x62   : > { %8197 = vst [vmem:[#allocation88_spill] sm:$0xff] %v5615_v37  ;;  %8200 = vst [vmem:[#allocation91_spill] sm:$0xff] %v5628_v48  ;;  %v5643_v53 = vsub.f32 %v183_v13, %v5612_v11  ;;  %v5646_v0 = vsub.f32 %v182_v49, %v5615_v37  ;;  %1760 = vmatprep.mubr.f32.mxu0 %v5612_v11  ;;  %4489 = vmatpush1.bf16.msra.mxu0 %v4488_v55  ;;  %v7757_v54 = vand.u32 4294901760, %v5628_v48 }
  0x63   : > { %8201 = vst [vmem:[#allocation92_spill] sm:$0xff] %v5633_v46  ;;  %8202 = vst [vmem:[#allocation93_spill] sm:$0xff] %v5640_v51  ;;  %4286 = vmatprep.subr.bf16.mxu1 %v4285_v1  ;;  %v7758_v63 = vand.u32 4294901760, %v5633_v46  ;;  %v7766_v12 = vand.u32 4294901760, %v5625_v52  ;;  %v527_v13 = vsub.f32 %v5609_v2, %v7756_v32  ;;  %4490 = vmatprep.subr.bf16.mxu0 %v8154_v25  ;;  %v7769_v49 = vand.u32 4294901760, %v5640_v51 }
  0x64   : > { %8203 = vst [vmem:[#allocation94_spill] sm:$0xff] %v5643_v53  ;;  %8204 = vst [vmem:[#allocation95_spill] sm:$0xff] %v5646_v0  ;;  %4288 = vmatpush3.bf16.msra.mxu1 %v4287_v8  ;;  %v7772_v55 = vand.u32 4294901760, %v5643_v53  ;;  %v533_v21 = vsub.f32 %v5628_v48, %v7757_v54  ;;  %v5669_v8 = vsub.f32 %v5620_v9, %v7761_v7  ;;  %v8207_v48 = vand.u32 4294901760, %v5646_v0  ;;  %v187_v9 = vld [vmem:[%s5166_s23 + $0x128] sm:$0xff] }
  0x65   : > { %v2432_v19 = vsub.f32 %v5633_v46, %v7758_v63  ;;  %v5674_v32 = vsub.f32 %v5625_v52, %v7766_v12  ;;  %1762 = vmatmul.mubr.f32.gmra.mrb[16].mxu0 %v5615_v37  ;;  %v528_v1 = vand.u32 4294901760, %v527_v13  ;;  %v2439_v54 = vsub.f32 %v5640_v51, %v7769_v49  ;;  %v186_v52 = vld [vmem:[%s5166_s23 + $0x120] sm:$0xff] }
  0x66   : > { %8205 = vst [vmem:[#allocation96_spill] sm:$0xff] %v5669_v8  ;;  %v542_v63 = vsub.f32 %v5643_v53, %v7772_v55  ;;  %v548_v7 = vsub.f32 %v5646_v0, %v8207_v48  ;;  %v534_v2 = vand.u32 4294901760, %v533_v21  ;;  %v7776_v12 = vand.u32 4294901760, %v5669_v8 }
  0x67   : > { %8206 = vst [vmem:[#allocation97_spill] sm:$0xff] %v5674_v32  ;;  %v2433_v35 = vand.u32 4294901760, %v2432_v19  ;;  %v7775_v13 = vand.u32 4294901760, %v5674_v32  ;;  %529 = vmatprep.mubr.f32.mxu1 %v528_v1  ;;  %v2440_v33 = vand.u32 4294901760, %v2439_v54  ;;  %v8208_v55 = vand.u32 4294901760, %v5059_v58 }
  0x68   : > { %v543_v49 = vand.u32 4294901760, %v542_v63  ;;  %v549_v37 = vand.u32 4294901760, %v548_v7  ;;  %535 = vmatmul.mubr.f32.gmra.mrb[14].mxu1 %v534_v2  ;;  %v2446_v19 = vsub.f32 %v5669_v8, %v7776_v12  ;;  %v8209_v48 = vand.u32 4294901760, %v5070_v3  ;;  %v5707_v7 = vld [vmem:[%s7608_s1 + $0x170] sm:$0xff]  ;;  %v5712_v2 = vld [vmem:[%s7608_s1 + $0x178] sm:$0xff] }
  0x69   : > { %v832_v53 = vsub.f32 %v5059_v58, %v8208_v55  ;;  %v2453_v21 = vsub.f32 %v5674_v32, %v7775_v13  ;;  %v5702_v63 = vand.u32 4294901760, %v187_v9  ;;  %8211 = vst [vmem:[#allocation99_spill] sm:$0xff] %v5707_v7  ;;  %8212 = vst [vmem:[#allocation100_spill] sm:$0xff] %v5712_v2  ;;  %v191_v55 = vld [vmem:[%s5166_s23 + $0x148] sm:$0xff]  ;;  %v4491_v1 = vpack.c.bf16 %v2440_v33, %v2433_v35 }
  0x6a   : > { %v839_v54 = vsub.f32 %v5070_v3, %v8209_v48  ;;  %544 = vmatprep.mubr.f32.mxu1 %v543_v49  ;;  %v8213_v12 = vand.u32 4294901760, %v5139_v56  ;;  %v8214_v48 = vand.u32 4294901760, %v5142_v43  ;;  %v5719_v11 = vand.u32 4294901760, %v186_v52 }
  0x6b   : > { %8210 = vst [vmem:[#allocation98_spill] sm:$0xff] %v5702_v63  ;;  %v833_v13 = vand.u32 4294901760, %v832_v53  ;;  %v2447_v26 = vand.u32 4294901760, %v2446_v19  ;;  %v2454_v47 = vand.u32 4294901760, %v2453_v21  ;;  %v5723_v41 = vsub.f32 %v187_v9, %v5702_v63  ;;  %1767 = vmatprep.mubr.f32.mxu0 %v5702_v63  ;;  %4492 = vmatpush1.bf16.msra.mxu0 %v4491_v1 }
  0x6c   : > { %v4291_v0 = vpack.c.bf16 %v8214_v48, %v8213_v12  ;;  %8215 = vst [vmem:[#allocation101_spill] sm:$0xff] %v5719_v11  ;;  %v840_v60 = vand.u32 4294901760, %v839_v54  ;;  %v5727_v33 = vsub.f32 %v186_v52, %v5719_v11  ;;  %v7794_v56 = vand.u32 4294901760, %v5707_v7  ;;  %550 = vmatmul.mubr.f32.gmra.mrb[16].mxu1 %v549_v37  ;;  %4493 = vmatprep.subr.bf16.mxu0 %v8154_v25 }
  0x6d   : > { %8216 = vst [vmem:[#allocation102_spill] sm:$0xff] %v5723_v41  ;;  %v7793_v43 = vand.u32 4294901760, %v5712_v2  ;;  %v5731_v35 = vand.u32 4294901760, %v191_v55  ;;  %v4494_v53 = vpack.c.bf16 %v2454_v47, %v2447_v26  ;;  %v7792_v9 = vand.u32 4294901760, %v5723_v41  ;;  %1769 = vmatmul.mubr.f32.gmra.mrb[18].mxu0 %v5719_v11 }
  0x6e   : > { %8217 = vst [vmem:[#allocation103_spill] sm:$0xff] %v5727_v33  ;;  %v4289_v12 = vpack.c.bf16 %v840_v60, %v833_v13  ;;  %v5735_v49 = vand.u32 4294901760, %v190_v14  ;;  %v7791_v19 = vand.u32 4294901760, %v5727_v33  ;;  %v5741_v52 = vsub.f32 %v5707_v7, %v7794_v56  ;;  %v199_v7 = vld [vmem:[%s5166_s23 + $0x188] sm:$0xff] }
  0x6f   : > { %8218 = vst [vmem:[#allocation104_spill] sm:$0xff] %v5731_v35  ;;  %v5746_v21 = vsub.f32 %v5712_v2, %v7793_v43  ;;  %v5749_v37 = vsub.f32 %v191_v55, %v5731_v35  ;;  %v557_v47 = vsub.f32 %v5723_v41, %v7792_v9  ;;  %v8224_v26 = vand.u32 4294901760, %v5109_v10  ;;  %4495 = vmatpush1.bf16.msra.mxu0 %v4494_v53  ;;  %v5778_v53 = vld [vmem:[%s7608_s1 + $0x188] sm:$0xff]  ;;  %v194_v2 = vld [vmem:[%s5166_s23 + $0x160] sm:$0xff] }
  0x70   : > { %8219 = vst [vmem:[#allocation105_spill] sm:$0xff] %v5735_v49  ;;  %8220 = vst [vmem:[#allocation106_spill] sm:$0xff] %v5741_v52  ;;  %4290 = vmatprep.subr.bf16.mxu1 %v4289_v12  ;;  %v5756_v60 = vsub.f32 %v190_v14, %v5735_v49  ;;  %v8225_v54 = vand.u32 4294901760, %v5111_v61  ;;  %v563_v1 = vsub.f32 %v5727_v33, %v7791_v19  ;;  %v7799_v48 = vand.u32 4294901760, %v5741_v52  ;;  %v195_v43 = vld [vmem:[%s5166_s23 + $0x168] sm:$0xff] }
  0x71   : > { %8221 = vst [vmem:[#allocation107_spill] sm:$0xff] %v5746_v21  ;;  %8222 = vst [vmem:[#allocation108_spill] sm:$0xff] %v5749_v37  ;;  %v846_v13 = vsub.f32 %v5109_v10, %v8224_v26  ;;  %4292 = vmatpush3.bf16.msra.mxu1 %v4291_v0  ;;  %v7802_v14 = vand.u32 4294901760, %v5746_v21  ;;  %v5773_v26 = vld [vmem:[%s7608_s1 + $0x180] sm:$0xff]  ;;  %v558_v0 = vand.u32 4294901760, %v557_v47  ;;  %4496 = vmatprep.subr.bf16.mxu0 %v8154_v25  ;;  %v8228_v33 = vand.u32 4294901760, %v5749_v37 }
  0x72   : > { %8223 = vst [vmem:[#allocation109_spill] sm:$0xff] %v5756_v60  ;;  %v853_v55 = vsub.f32 %v5111_v61, %v8225_v54  ;;  %8226 = vst [vmem:[#allocation110_spill] sm:$0xff] %v5773_v26  ;;  %v7807_v54 = vand.u32 4294901760, %v5756_v60  ;;  %1774 = vmatprep.mubr.f32.mxu0 %v5731_v35  ;;  %v564_v56 = vand.u32 4294901760, %v563_v1  ;;  %v2460_v12 = vsub.f32 %v5741_v52, %v7799_v48 }
  0x73   : > { %8227 = vst [vmem:[#allocation111_spill] sm:$0xff] %v5778_v53  ;;  %v847_v19 = vand.u32 4294901760, %v846_v13  ;;  %v2467_v47 = vsub.f32 %v5746_v21, %v7802_v14  ;;  %v572_v41 = vsub.f32 %v5749_v37, %v8228_v33  ;;  %1776 = vmatmul.mubr.f32.gmra.mrb[20].mxu0 %v5735_v49  ;;  %559 = vmatprep.mubr.f32.mxu1 %v558_v0  ;;  %v7812_v1 = vand.u32 4294901760, %v5773_v26  ;;  %v5806_v0 = vld [vmem:[%s7608_s1 + $0x190] sm:$0xff] }
  0x74   : > { %v854_v9 = vand.u32 4294901760, %v853_v55  ;;  %v578_v13 = vsub.f32 %v5756_v60, %v7807_v54  ;;  %v7813_v48 = vand.u32 4294901760, %v5778_v53  ;;  %565 = vmatmul.mubr.f32.gmra.mrb[18].mxu1 %v564_v56  ;;  %v2461_v14 = vand.u32 4294901760, %v2460_v12  ;;  %8230 = vst [vmem:[#allocation113_spill] sm:$0xff] %v5806_v0  ;;  %v198_v60 = vld [vmem:[%s5166_s23 + $0x180] sm:$0xff] }
  0x75   : > { %v2468_v35 = vand.u32 4294901760, %v2467_v47  ;;  %v573_v11 = vand.u32 4294901760, %v572_v41  ;;  %v5801_v33 = vand.u32 4294901760, %v195_v43  ;;  %v5816_v56 = vsub.f32 %v5773_v26, %v7812_v1 }
  0x76   : > { %v4293_v55 = vpack.c.bf16 %v854_v9, %v847_v19  ;;  %v5811_v9 = vld [vmem:[%s7608_s1 + $0x198] sm:$0xff]  ;;  %v579_v19 = vand.u32 4294901760, %v578_v13  ;;  %v5821_v41 = vsub.f32 %v5778_v53, %v7813_v48  ;;  %v8234_v12 = vand.u32 4294901760, %v5186_v40 }
  0x77   : > { %8229 = vst [vmem:[#allocation112_spill] sm:$0xff] %v5801_v33  ;;  %8231 = vst [vmem:[#allocation114_spill] sm:$0xff] %v5811_v9  ;;  %v8235_v47 = vand.u32 4294901760, %v5189_v17  ;;  %v4497_v37 = vpack.c.bf16 %v2468_v35, %v2461_v14  ;;  %574 = vmatprep.mubr.f32.mxu1 %v573_v11  ;;  %v5829_v13 = vsub.f32 %v195_v43, %v5801_v33  ;;  %v5833_v1 = vand.u32 4294901760, %v199_v7 }
  0x78   : > { %4294 = vmatprep.subr.bf16.mxu1 %v4293_v55  ;;  %8232 = vst [vmem:[#allocation115_spill] sm:$0xff] %v5816_v56  ;;  %8233 = vst [vmem:[#allocation116_spill] sm:$0xff] %v5821_v41  ;;  %v5831_v55 = vand.u32 4294901760, %v194_v2  ;;  %1781 = vmatprep.mubr.f32.mxu0 %v5801_v33  ;;  %v7817_v48 = vand.u32 4294901760, %v5816_v56  ;;  %v7816_v49 = vand.u32 4294901760, %v5821_v41  ;;  %v7818_v17 = vand.u32 4294901760, %v5806_v0 }
  0x79   : > { %v4295_v54 = vpack.c.bf16 %v8235_v47, %v8234_v12  ;;  %8236 = vst [vmem:[#allocation117_spill] sm:$0xff] %v5829_v13  ;;  %8238 = vst [vmem:[#allocation119_spill] sm:$0xff] %v5833_v1  ;;  %v7821_v40 = vand.u32 4294901760, %v5811_v9  ;;  %4498 = vmatpush1.bf16.msra.mxu0 %v4497_v37  ;;  %580 = vmatmul.mubr.f32.gmra.mrb[20].mxu1 %v579_v19  ;;  %v7824_v11 = vand.u32 4294901760, %v5829_v13  ;;  %v5847_v14 = vand.u32 4294901760, %v198_v60 }
  0x7a   : > { %8237 = vst [vmem:[#allocation118_spill] sm:$0xff] %v5831_v55  ;;  %v5842_v43 = vsub.f32 %v194_v2, %v5831_v55  ;;  %v5845_v35 = vsub.f32 %v199_v7, %v5833_v1  ;;  %4499 = vmatprep.subr.bf16.mxu0 %v8154_v25  ;;  %v2481_v37 = vsub.f32 %v5821_v41, %v7816_v49  ;;  %v8251_v53 = vand.u32 4294901760, %v5225_v50 }
  0x7b   : > { %4296 = vmatpush3.bf16.msra.mxu1 %v4295_v54  ;;  %8241 = vst [vmem:[#allocation122_spill] sm:$0xff] %v5847_v14  ;;  %v2474_v54 = vsub.f32 %v5816_v56, %v7817_v48  ;;  %v5859_v2 = vsub.f32 %v5806_v0, %v7818_v17  ;;  %v5864_v7 = vsub.f32 %v5811_v9, %v7821_v40  ;;  %v207_v0 = vld [vmem:[%s5166_s23 + $0x1c8] sm:$0xff]  ;;  %v8252_v26 = vand.u32 4294901760, %v5228_v20  ;;  %v5938_v20 = vld [vmem:[%s7608_s1 + $0x1b8] sm:$0xff] }
  0x7c   : > { %8239 = vst [vmem:[#allocation120_spill] sm:$0xff] %v5842_v43  ;;  %8240 = vst [vmem:[#allocation121_spill] sm:$0xff] %v5845_v35  ;;  %v587_v19 = vsub.f32 %v5829_v13, %v7824_v11  ;;  %v7831_v12 = vand.u32 4294901760, %v5842_v43  ;;  %v7832_v47 = vand.u32 4294901760, %v5845_v35  ;;  %v5872_v49 = vsub.f32 %v198_v60, %v5847_v14  ;;  %1783 = vmatmul.mubr.f32.gmra.mrb[22].mxu0 %v5831_v55 }
  0x7d   : > { %8242 = vst [vmem:[#allocation123_spill] sm:$0xff] %v5859_v2  ;;  %8243 = vst [vmem:[#allocation124_spill] sm:$0xff] %v5864_v7  ;;  %v2475_v48 = vand.u32 4294901760, %v2474_v54  ;;  %v2482_v17 = vand.u32 4294901760, %v2481_v37  ;;  %v7833_v33 = vand.u32 4294901760, %v5859_v2  ;;  %1788 = vmatprep.mubr.f32.mxu0 %v5833_v1  ;;  %v203_v54 = vld [vmem:[%s5166_s23 + $0x1a8] sm:$0xff] }
  0x7e   : > { %8244 = vst [vmem:[#allocation125_spill] sm:$0xff] %v5872_v49  ;;  %v588_v63 = vand.u32 4294901760, %v587_v19  ;;  %v593_v11 = vsub.f32 %v5842_v43, %v7831_v12  ;;  %v602_v60 = vsub.f32 %v5845_v35, %v7832_v47  ;;  %v7840_v13 = vand.u32 4294901760, %v5872_v49  ;;  %v5898_v47 = vld [vmem:[%s7608_s1 + $0x1a0] sm:$0xff]  ;;  %8256 = vst [vmem:[#allocation132_spill] sm:$0xff] %v5938_v20 }
  0x7f   : > { %v4500_v37 = vpack.c.bf16 %v2482_v17, %v2475_v48  ;;  %v2488_v40 = vsub.f32 %v5859_v2, %v7833_v33  ;;  %v8245_v1 = vand.u32 4294901760, %v5864_v7  ;;  %v8246_v55 = vand.u32 4294901760, %v5152_v38  ;;  %8247 = vst [vmem:[#allocation126_spill] sm:$0xff] %v5898_v47  ;;  %v202_v43 = vld [vmem:[%s5166_s23 + $0x1a0] sm:$0xff] }
  0x80   : > { %589 = vmatprep.mubr.f32.mxu1 %v588_v63  ;;  %v594_v48 = vand.u32 4294901760, %v593_v11  ;;  %v603_v17 = vand.u32 4294901760, %v602_v60  ;;  %v608_v33 = vsub.f32 %v5872_v49, %v7840_v13  ;;  %1790 = vmatmul.mubr.f32.gmra.mrb[24].mxu0 %v5847_v14  ;;  %v5913_v9 = vand.u32 4294901760, %v203_v54  ;;  %v206_v13 = vld [vmem:[%s5166_s23 + $0x1c0] sm:$0xff] }
  0x81   : > { %v2495_v19 = vsub.f32 %v5864_v7, %v8245_v1  ;;  %v860_v12 = vsub.f32 %v5152_v38, %v8246_v55  ;;  %v8248_v1 = vand.u32 4294901760, %v5154_v59  ;;  %v5909_v55 = vld [vmem:[%s7608_s1 + $0x1a8] sm:$0xff]  ;;  %4501 = vmatpush1.bf16.msra.mxu0 %v4500_v37  ;;  %v2489_v63 = vand.u32 4294901760, %v2488_v40  ;;  %v5926_v40 = vld [vmem:[%s7608_s1 + $0x1b0] sm:$0xff] }
  0x82   : > { %8249 = vst [vmem:[#allocation127_spill] sm:$0xff] %v5909_v55  ;;  %8250 = vst [vmem:[#allocation128_spill] sm:$0xff] %v5913_v9  ;;  %595 = vmatmul.mubr.f32.gmra.mrb[22].mxu1 %v594_v48  ;;  %4502 = vmatprep.subr.bf16.mxu0 %v8154_v25  ;;  %v7849_v14 = vand.u32 4294901760, %v5898_v47  ;;  %v5929_v37 = vsub.f32 %v203_v54, %v5913_v9  ;;  %v5947_v54 = vand.u32 4294901760, %v206_v13 }
  0x83   : > { %v867_v35 = vsub.f32 %v5154_v59, %v8248_v1  ;;  %v2496_v11 = vand.u32 4294901760, %v2495_v19  ;;  %v861_v60 = vand.u32 4294901760, %v860_v12  ;;  %v609_v1 = vand.u32 4294901760, %v608_v33  ;;  %8253 = vst [vmem:[#allocation129_spill] sm:$0xff] %v5926_v40  ;;  %604 = vmatprep.mubr.f32.mxu1 %v603_v17  ;;  %1795 = vmatprep.mubr.f32.mxu0 %v5913_v9 }
  0x84   : > { %v4299_v59 = vpack.c.bf16 %v8252_v26, %v8251_v53  ;;  %8254 = vst [vmem:[#allocation130_spill] sm:$0xff] %v5929_v37  ;;  %v7848_v33 = vand.u32 4294901760, %v5909_v55  ;;  %v5943_v26 = vsub.f32 %v5898_v47, %v7849_v14  ;;  %v5945_v53 = vand.u32 4294901760, %v207_v0  ;;  %8259 = vst [vmem:[#allocation135_spill] sm:$0xff] %v5947_v54 }
  0x85   : > { %v868_v49 = vand.u32 4294901760, %v867_v35  ;;  %v4503_v12 = vpack.c.bf16 %v2496_v11, %v2489_v63  ;;  %v5932_v35 = vand.u32 4294901760, %v202_v43  ;;  %v7850_v19 = vand.u32 4294901760, %v5929_v37 }
  0x86   : > { %8257 = vst [vmem:[#allocation133_spill] sm:$0xff] %v5943_v26  ;;  %8258 = vst [vmem:[#allocation134_spill] sm:$0xff] %v5945_v53  ;;  %v5953_v48 = vsub.f32 %v5909_v55, %v7848_v33  ;;  %610 = vmatmul.mubr.f32.gmra.mrb[24].mxu1 %v609_v1  ;;  %v7852_v63 = vand.u32 4294901760, %v5943_v26  ;;  %v5961_v11 = vsub.f32 %v207_v0, %v5945_v53  ;;  %v8271_v47 = vand.u32 4294901760, %v5261_v24 }
  0x87   : > { %8255 = vst [vmem:[#allocation131_spill] sm:$0xff] %v5932_v35  ;;  %v4297_v50 = vpack.c.bf16 %v868_v49, %v861_v60  ;;  %4504 = vmatpush1.bf16.msra.mxu0 %v4503_v12  ;;  %v5956_v17 = vsub.f32 %v202_v43, %v5932_v35  ;;  %v7851_v49 = vand.u32 4294901760, %v5926_v40  ;;  %v5964_v60 = vsub.f32 %v206_v13, %v5947_v54 }
  0x88   : > { %8260 = vst [vmem:[#allocation136_spill] sm:$0xff] %v5953_v48  ;;  %8262 = vst [vmem:[#allocation138_spill] sm:$0xff] %v5961_v11  ;;  %v7855_v12 = vand.u32 4294901760, %v5938_v20  ;;  %4505 = vmatprep.subr.bf16.mxu0 %v8154_v25  ;;  %v617_v43 = vsub.f32 %v5929_v37, %v7850_v19  ;;  %v7860_v1 = vand.u32 4294901760, %v5953_v48  ;;  %v2502_v13 = vsub.f32 %v5943_v26, %v7852_v63 }
  0x89   : > { %8261 = vst [vmem:[#allocation137_spill] sm:$0xff] %v5956_v17  ;;  %4298 = vmatprep.subr.bf16.mxu1 %v4297_v50  ;;  %8263 = vst [vmem:[#allocation139_spill] sm:$0xff] %v5964_v60  ;;  %v7863_v50 = vand.u32 4294901760, %v5956_v17  ;;  %v5976_v0 = vsub.f32 %v5926_v40, %v7851_v49  ;;  %1797 = vmatmul.mubr.f32.gmra.mrb[26].mxu0 %v5932_v35  ;;  %v8266_v37 = vand.u32 4294901760, %v5961_v11  ;;  %v8267_v35 = vand.u32 4294901760, %v5964_v60 }
  0x8a   : > { %4300 = vmatpush3.bf16.msra.mxu1 %v4299_v59  ;;  %v5987_v59 = vsub.f32 %v5938_v20, %v7855_v12  ;;  %v618_v19 = vand.u32 4294901760, %v617_v43  ;;  %v2509_v49 = vsub.f32 %v5953_v48, %v7860_v1  ;;  %1802 = vmatprep.mubr.f32.mxu0 %v5945_v53  ;;  %v2503_v14 = vand.u32 4294901760, %v2502_v13  ;;  %v211_v1 = vld [vmem:[%s5166_s23 + $0x1e8] sm:$0xff]  ;;  %v210_v53 = vld [vmem:[%s5166_s23 + $0x1e0] sm:$0xff] }
  0x8b   : > { %8264 = vst [vmem:[#allocation140_spill] sm:$0xff] %v5976_v0  ;;  %v623_v63 = vsub.f32 %v5956_v17, %v7863_v50  ;;  %v7873_v33 = vand.u32 4294901760, %v5976_v0  ;;  %v632_v12 = vsub.f32 %v5961_v11, %v8266_v37  ;;  %v638_v43 = vsub.f32 %v5964_v60, %v8267_v35 }
  0x8c   : > { %8265 = vst [vmem:[#allocation141_spill] sm:$0xff] %v5987_v59  ;;  %v7872_v9 = vand.u32 4294901760, %v5987_v59  ;;  %619 = vmatprep.mubr.f32.mxu1 %v618_v19  ;;  %v2510_v20 = vand.u32 4294901760, %v2509_v49  ;;  %v8268_v13 = vand.u32 4294901760, %v5197_v62  ;;  %v8269_v60 = vand.u32 4294901760, %v5199_v30  ;;  %v6022_v49 = vld [vmem:[%s7608_s1 + $0x1c0] sm:$0xff] }
  0x8d   : > { %v624_v40 = vand.u32 4294901760, %v623_v63  ;;  %v2516_v50 = vsub.f32 %v5976_v0, %v7873_v33  ;;  %v633_v37 = vand.u32 4294901760, %v632_v12  ;;  %v639_v11 = vand.u32 4294901760, %v638_v43  ;;  %1804 = vmatmul.mubr.f32.gmra.mrb[28].mxu0 %v5947_v54  ;;  %v6027_v63 = vld [vmem:[%s7608_s1 + $0x1c8] sm:$0xff]  ;;  %v6032_v12 = vld [vmem:[%s7608_s1 + $0x1d0] sm:$0xff]  ;;  %v6039_v33 = vld [vmem:[%s7608_s1 + $0x1d8] sm:$0xff] }
  0x8e   : > { %v874_v17 = vsub.f32 %v5197_v62, %v8268_v13  ;;  %v2523_v35 = vsub.f32 %v5987_v59, %v7872_v9  ;;  %v881_v19 = vsub.f32 %v5199_v30, %v8269_v60  ;;  %v4506_v43 = vpack.c.bf16 %v2510_v20, %v2503_v14 }
  0x8f   : > { %625 = vmatmul.mubr.f32.gmra.mrb[26].mxu1 %v624_v40  ;;  %v2517_v60 = vand.u32 4294901760, %v2516_v50  ;;  %v6034_v9 = vand.u32 4294901760, %v211_v1  ;;  %v8272_v30 = vand.u32 4294901760, %v5264_v34  ;;  %v6045_v38 = vand.u32 4294901760, %v210_v53 }
  0x90   : > { %v875_v13 = vand.u32 4294901760, %v874_v17  ;;  %634 = vmatprep.mubr.f32.mxu1 %v633_v37  ;;  %v2524_v54 = vand.u32 4294901760, %v2523_v35  ;;  %v882_v55 = vand.u32 4294901760, %v881_v19  ;;  %4507 = vmatpush1.bf16.msra.mxu0 %v4506_v43  ;;  %v7890_v40 = vand.u32 4294901760, %v6022_v49 }
  0x91   : > { %8270 = vst [vmem:[#allocation142_spill] sm:$0xff] %v6034_v9  ;;  %v4303_v62 = vpack.c.bf16 %v8272_v30, %v8271_v47  ;;  %8273 = vst [vmem:[#allocation143_spill] sm:$0xff] %v6045_v38  ;;  %v6048_v14 = vsub.f32 %v211_v1, %v6034_v9  ;;  %v7887_v20 = vand.u32 4294901760, %v6027_v63  ;;  %1809 = vmatprep.mubr.f32.mxu0 %v6034_v9  ;;  %v7885_v17 = vand.u32 4294901760, %v6032_v12 }
  0x92   : > { %4508 = vmatprep.subr.bf16.mxu0 %v8154_v25  ;;  %v4509_v24 = vpack.c.bf16 %v2524_v54, %v2517_v60  ;;  %v4301_v50 = vpack.c.bf16 %v882_v55, %v875_v13  ;;  %v6056_v30 = vsub.f32 %v210_v53, %v6045_v38  ;;  %1811 = vmatmul.mubr.f32.gmra.mrb[30].mxu0 %v6045_v38  ;;  %v7882_v34 = vand.u32 4294901760, %v6039_v33  ;;  %v153_v13 = vld [vmem:[%s5166_s23 + $0x18] sm:$0xff] }
  0x93   : > { %8274 = vst [vmem:[#allocation144_spill] sm:$0xff] %v6048_v14  ;;  %640 = vmatmul.mubr.f32.gmra.mrb[28].mxu1 %v639_v11  ;;  %v7881_v47 = vand.u32 4294901760, %v6048_v14  ;;  %v6064_v1 = vsub.f32 %v6022_v49, %v7890_v40  ;;  %v6069_v55 = vsub.f32 %v6027_v63, %v7887_v20  ;;  %v6074_v53 = vsub.f32 %v6032_v12, %v7885_v17  ;;  %v8293_v40 = vld [vmem:[#allocation13_spill] sm:$0xff] }
  0x94   : > { %8275 = vst [vmem:[#allocation145_spill] sm:$0xff] %v6056_v30  ;;  %4302 = vmatprep.subr.bf16.mxu1 %v4301_v50  ;;  %v7883_v54 = vand.u32 4294901760, %v6056_v30  ;;  %v6080_v11 = vsub.f32 %v6039_v33, %v7882_v34  ;;  %v4305_v37 = vpack.c.bf16 %v4914_v16, %v4912_v15  ;;  %4510 = vmatpush1.bf16.msra.mxu0 %v4509_v24 }
  0x95   : > { %8276 = vst [vmem:[#allocation146_spill] sm:$0xff] %v6064_v1  ;;  %8277 = vst [vmem:[#allocation147_spill] sm:$0xff] %v6069_v55  ;;  %v647_v35 = vsub.f32 %v6048_v14, %v7881_v47  ;;  %4304 = vmatpush3.bf16.msra.mxu1 %v4303_v62  ;;  %v7884_v19 = vand.u32 4294901760, %v6064_v1  ;;  %v7886_v43 = vand.u32 4294901760, %v6069_v55  ;;  %v7888_v60 = vand.u32 4294901760, %v6074_v53  ;;  %4511 = vmatprep.subr.bf16.mxu0 %v8154_v25  ;;  %v8333_v14 = vld [vmem:[#allocation111_spill] sm:$0xff] }
  0x96   : > { %8278 = vst [vmem:[#allocation148_spill] sm:$0xff] %v6074_v53  ;;  %8279 = vst [vmem:[#allocation149_spill] sm:$0xff] %v6080_v11  ;;  %v653_v50 = vsub.f32 %v6056_v30, %v7883_v54  ;;  %v7889_v15 = vand.u32 4294901760, %v6080_v11  ;;  %4306 = vmatprep.subr.bf16.mxu1 %v4305_v37 }
  0x97   : > { %v648_v16 = vand.u32 4294901760, %v647_v35  ;;  %v2530_v62 = vsub.f32 %v6064_v1, %v7884_v19  ;;  %v2537_v24 = vsub.f32 %v6069_v55, %v7886_v43  ;;  %v2544_v47 = vsub.f32 %v6074_v53, %v7888_v60 }
  0x98   : > { %v654_v34 = vand.u32 4294901760, %v653_v50  ;;  %v2551_v37 = vsub.f32 %v6080_v11, %v7889_v15  ;;  %v6109_v35 = vsel %vm274_vm0, %v153_v13, 0  ;;  %v4307_v50 = vpack.c.bf16 %v4938_v29, %v4936_v28  ;;  %v157_v13 = vld [vmem:[%s5166_s23 + $0x38] sm:$0xff]  ;;  %v8290_v15 = vld [vmem:[#allocation46_spill] sm:$0xff] }
  0x99   : > { %649 = vmatprep.mubr.f32.mxu1 %v648_v16  ;;  %v2531_v54 = vand.u32 4294901760, %v2530_v62  ;;  %v2538_v19 = vand.u32 4294901760, %v2537_v24  ;;  %v2545_v17 = vand.u32 4294901760, %v2544_v47  ;;  %v6112_v43 = vand.u32 4294901760, %v6109_v35  ;;  %v6122_v62 = vld [vmem:[%s5166_s23 + $0x10] sm:$0xff]  ;;  %v8285_v24 = vld [vmem:[#allocation9_spill] sm:$0xff] }
  0x9a   : > { %655 = vmatmul.mubr.f32.gmra.mrb[30].mxu1 %v654_v34  ;;  %v2552_v20 = vand.u32 4294901760, %v2551_v37  ;;  %v4309_v16 = vpack.c.bf16 %v4928_v23, %v4926_v22  ;;  %v6127_v34 = vsel %vm274_vm0, %v157_v13, 0  ;;  %v4311_v28 = vpack.c.bf16 %v4949_v36, %v4933_v27  ;;  %v161_v22 = vld [vmem:[%s5166_s23 + $0x58] sm:$0xff] }
  0x9b   : > { %8280 = vst [vmem:[#allocation150_spill] sm:$0xff] %v6112_v43  ;;  %v4512_v60 = vpack.c.bf16 %v2538_v19, %v2531_v54  ;;  %885 = vmatprep.mubr.f32.mxu1 %v5209_v42  ;;  %2563 = vmatprep.mubr.f32.mxu0 %v6112_v43  ;;  %v6134_v23 = vand.u32 4294901760, %v6122_v62  ;;  %v4313_v29 = vpack.c.bf16 %v4965_v45, %v4963_v44  ;;  %v6144_v54 = vld [vmem:[%s5166_s23 + $0x30] sm:$0xff]  ;;  %v6151_v36 = vsel %vm274_vm0, %v161_v22, 0  ;;  %v8283_v45 = vld [vmem:[#allocation45_spill] sm:$0xff]  ;;  %v8292_v44 = vld [vmem:[#allocation11_spill] sm:$0xff] }
  0x9c   : > { %v4515_v47 = vpack.c.bf16 %v2552_v20, %v2545_v17  ;;  %v4518_v20 = vpack.c.bf16 %v5312_v4, %v5302_v5  ;;  %v6141_v17 = vand.u32 4294901760, %v6127_v34  ;;  %v165_v19 = vld [vmem:[%s5166_s23 + $0x78] sm:$0xff]  ;;  %v4317_v13 = vpack.c.bf16 %v5024_v18, %v5010_v6  ;;  %v8301_v18 = vld [vmem:[#allocation15_spill] sm:$0xff] }
  0x9d   : > { %4513 = vmatpush1.bf16.msra.mxu0 %v4512_v60  ;;  %8281 = vst [vmem:[#allocation151_spill] sm:$0xff] %v6134_v23  ;;  %v8284_v60 = vld [vmem:[#allocation8_spill] sm:$0xff]  ;;  %v6181_v6 = vsel %vm274_vm0, %v165_v19, 0  ;;  %v4319_v27 = vpack.c.bf16 %v8293_v40, %v8292_v44  ;;  %v4321_v19 = vpack.c.bf16 %v5070_v3, %v5059_v58  ;;  %v8296_v40 = vld [vmem:[#allocation63_spill] sm:$0xff] }
  0x9e   : > { %887 = vmatmul.mubr.f32.vlgmr.msra.gmra.mrb[32].mxu1 %v5217_v39  ;;  %4514 = vmatprep.subr.bf16.mxu0 %v8154_v25  ;;  %8282 = vst [vmem:[#allocation152_spill] sm:$0xff] %v6141_v17  ;;  %v4315_v37 = vpack.c.bf16 %v8285_v24, %v8284_v60  ;;  %v6171_v60 = vand.u32 4294901760, %v6151_v36  ;;  %v6174_v24 = vld [vmem:[%s5166_s23 + $0x50] sm:$0xff]  ;;  %v8300_v3 = vld [vmem:[#allocation59_spill] sm:$0xff] }
  0x9f   : > { %892 = vmatprep.mubr.f32.mxu1 %v5266_v57  ;;  %4308 = vmatpush3.bf16.msra.mxu1 %v4307_v50  ;;  %v6161_v50 = vand.u32 4294901760, %v6144_v54  ;;  %v8297_v44 = vld [vmem:[#allocation64_spill] sm:$0xff]  ;;  %v8302_v57 = vld [vmem:[#allocation17_spill] sm:$0xff]  ;;  %v8325_v4 = vld [vmem:[#allocation27_spill] sm:$0xff] }
  0xa0   : > { %4310 = vmatprep.subr.bf16.mxu1 %v4309_v16  ;;  %8289 = vst [vmem:[#allocation9_spill] sm:$0xff] %v6171_v60  ;;  %v169_v16 = vld [vmem:[%s5166_s23 + $0x98] sm:$0xff]  ;;  %v4323_v39 = vpack.c.bf16 %v8302_v57, %v8301_v18  ;;  %v8307_v57 = vld [vmem:[#allocation75_spill] sm:$0xff] }
  0xa1   : > { %4516 = vmatpush1.bf16.msra.mxu0 %v4515_v47  ;;  %8286 = vst [vmem:[#allocation8_spill] sm:$0xff] %v6161_v50  ;;  %v8287_v47 = vld [vmem:[#allocation52_spill] sm:$0xff]  ;;  %v6212_v58 = vsel %vm274_vm0, %v169_v16, 0  ;;  %v4325_v16 = vpack.c.bf16 %v5111_v61, %v5109_v10  ;;  %v177_v10 = vld [vmem:[%s5166_s23 + $0xd8] sm:$0xff] }
  0xa2   : > { %894 = vmatmul.mubr.f32.gmra.mrb[34].mxu1 %v5283_v31  ;;  %4517 = vmatprep.subr.bf16.mxu0 %v8154_v25  ;;  %v8298_v31 = vld [vmem:[#allocation57_spill] sm:$0xff]  ;;  %8299 = vst [vmem:[#allocation153_spill] sm:$0xff] %v6212_v58  ;;  %v8311_v61 = vld [vmem:[#allocation68_spill] sm:$0xff] }
  0xa3   : > { %899 = vmatprep.mubr.f32.mxu1 %v8283_v45  ;;  %4312 = vmatpush3.bf16.msra.mxu1 %v4311_v28  ;;  %v8288_v28 = vld [vmem:[#allocation56_spill] sm:$0xff] }
  0xa4   : > { %2565 = vmatmul.mubr.f32.vlgmr.msra.gmra.mrb[32].mxu0 %v6134_v23  ;;  %4314 = vmatprep.subr.bf16.mxu1 %v4313_v29  ;;  %v4521_v22 = vpack.c.bf16 %v8288_v28, %v8287_v47  ;;  %v6191_v29 = vand.u32 4294901760, %v6174_v24  ;;  %v6205_v45 = vld [vmem:[%s5166_s23 + $0x70] sm:$0xff]  ;;  %v8320_v47 = vld [vmem:[#allocation81_spill] sm:$0xff] }
  0xa5   : > { %4519 = vmatpush1.bf16.msra.mxu0 %v4518_v20  ;;  %2570 = vmatprep.mubr.f32.mxu0 %v6141_v17  ;;  %v8291_v20 = vld [vmem:[#allocation53_spill] sm:$0xff] }
  0xa6   : > { %901 = vmatmul.mubr.f32.gmra.mrb[36].mxu1 %v8290_v15  ;;  %4520 = vmatprep.subr.bf16.mxu0 %v8154_v25  ;;  %8294 = vst [vmem:[#allocation11_spill] sm:$0xff] %v6191_v29  ;;  %v213_v15 = vld [vmem:[%s5166_s23 + $0x1f8] sm:$0xff] }
  0xa7   : > { %906 = vmatprep.mubr.f32.mxu1 %v8291_v20  ;;  %4316 = vmatpush3.bf16.msra.mxu1 %v4315_v37  ;;  %v6200_v37 = vand.u32 4294901760, %v6181_v6  ;;  %v4524_v20 = vpack.c.bf16 %v8297_v44, %v8296_v40  ;;  %v6219_v42 = vsel %vm274_vm0, %v213_v15, 0  ;;  %v6234_v15 = vld [vmem:[%s5166_s23 + $0x90] sm:$0xff]  ;;  %v8313_v44 = vld [vmem:[#allocation21_spill] sm:$0xff] }
  0xa8   : > { %2572 = vmatmul.mubr.f32.gmra.mrb[34].mxu0 %v6161_v50  ;;  %4318 = vmatprep.subr.bf16.mxu1 %v4317_v13  ;;  %8303 = vst [vmem:[#allocation15_spill] sm:$0xff] %v6219_v42  ;;  %v6223_v13 = vand.u32 4294901760, %v6205_v45  ;;  %8308 = vst [vmem:[#allocation155_spill] sm:$0xff] %v6234_v15 }
  0xa9   : > { %4522 = vmatpush1.bf16.msra.mxu0 %v4521_v22  ;;  %2577 = vmatprep.mubr.f32.mxu0 %v6171_v60  ;;  %8295 = vst [vmem:[#allocation13_spill] sm:$0xff] %v6200_v37  ;;  %v173_v22 = vld [vmem:[%s5166_s23 + $0xb8] sm:$0xff] }
  0xaa   : > { %908 = vmatmul.mubr.f32.gmra.mrb[38].mxu1 %v8298_v31  ;;  %4523 = vmatprep.subr.bf16.mxu0 %v8154_v25  ;;  %8304 = vst [vmem:[#allocation17_spill] sm:$0xff] %v6223_v13  ;;  %v8309_v31 = vld [vmem:[#allocation62_spill] sm:$0xff] }
  0xab   : > { %913 = vmatprep.mubr.f32.mxu1 %v8300_v3  ;;  %4320 = vmatpush3.bf16.msra.mxu1 %v4319_v27  ;;  %v6229_v27 = vand.u32 4294901760, %v6212_v58  ;;  %v8306_v3 = vld [vmem:[#allocation74_spill] sm:$0xff] }
  0xac   : > { %2579 = vmatmul.mubr.f32.gmra.mrb[36].mxu0 %v6191_v29  ;;  %4322 = vmatprep.subr.bf16.mxu1 %v4321_v19  ;;  %v4527_v18 = vpack.c.bf16 %v8307_v57, %v8306_v3  ;;  %v6239_v19 = vsel %vm274_vm0, %v173_v22, 0  ;;  %v6247_v57 = vand.u32 4294901760, %v6234_v15  ;;  %v8316_v3 = vld [vmem:[#allocation24_spill] sm:$0xff] }
  0xad   : > { %2584 = vmatprep.mubr.f32.mxu0 %v6200_v37  ;;  %4525 = vmatpush1.bf16.msra.mxu0 %v4524_v20  ;;  %8305 = vst [vmem:[#allocation154_spill] sm:$0xff] %v6229_v27  ;;  %8310 = vst [vmem:[#allocation156_spill] sm:$0xff] %v6239_v19  ;;  %v8312_v20 = vld [vmem:[#allocation19_spill] sm:$0xff]  ;;  %v6253_v22 = vand.u32 4294901760, %v6239_v19 }
  0xae   : > { %915 = vmatmul.mubr.f32.gmra.mrb[40].mxu1 %v8309_v31  ;;  %4526 = vmatprep.subr.bf16.mxu0 %v8154_v25  ;;  %v4327_v40 = vpack.c.bf16 %v8313_v44, %v8312_v20  ;;  %8314 = vst [vmem:[#allocation19_spill] sm:$0xff] %v6247_v57  ;;  %v8315_v31 = vld [vmem:[#allocation23_spill] sm:$0xff] }
  0xaf   : > { %920 = vmatprep.mubr.f32.mxu1 %v8311_v61  ;;  %4324 = vmatpush3.bf16.msra.mxu1 %v4323_v39  ;;  %v4329_v28 = vpack.c.bf16 %v8316_v3, %v8315_v31  ;;  %8317 = vst [vmem:[#allocation21_spill] sm:$0xff] %v6253_v22  ;;  %v6256_v61 = vld [vmem:[%s5166_s23 + $0xb0] sm:$0xff]  ;;  %v8321_v20 = vld [vmem:[#allocation71_spill] sm:$0xff]  ;;  %v181_v3 = vld [vmem:[%s5166_s23 + $0xf8] sm:$0xff] }
  0xb0   : > { %2586 = vmatmul.mubr.f32.gmra.mrb[38].mxu0 %v6223_v13  ;;  %4326 = vmatprep.subr.bf16.mxu1 %v4325_v16  ;;  %8318 = vst [vmem:[#allocation23_spill] sm:$0xff] %v6256_v61  ;;  %v8319_v39 = vld [vmem:[#allocation80_spill] sm:$0xff]  ;;  %v6263_v16 = vsel %vm274_vm0, %v177_v10, 0  ;;  %v6271_v30 = vand.u32 4294901760, %v6256_v61  ;;  %v8338_v19 = vld [vmem:[#allocation35_spill] sm:$0xff] }
  0xb1   : > { %2591 = vmatprep.mubr.f32.mxu0 %v6229_v27  ;;  %4528 = vmatpush1.bf16.msra.mxu0 %v4527_v18  ;;  %v4530_v44 = vpack.c.bf16 %v8320_v47, %v8319_v39  ;;  %8322 = vst [vmem:[#allocation24_spill] sm:$0xff] %v6263_v16  ;;  %v8323_v31 = vld [vmem:[#allocation72_spill] sm:$0xff]  ;;  %v8324_v18 = vld [vmem:[#allocation25_spill] sm:$0xff]  ;;  %v8328_v47 = vld [vmem:[#allocation30_spill] sm:$0xff]  ;;  %v6277_v10 = vand.u32 4294901760, %v6263_v16 }
  0xb2   : > { %922 = vmatmul.mubr.f32.gmra.mrb[42].mxu1 %v8321_v20  ;;  %4529 = vmatprep.subr.bf16.mxu0 %v8154_v25  ;;  %v4331_v5 = vpack.c.bf16 %v8325_v4, %v8324_v18  ;;  %8326 = vst [vmem:[#allocation25_spill] sm:$0xff] %v6271_v30  ;;  %v8327_v20 = vld [vmem:[#allocation29_spill] sm:$0xff]  ;;  %v6285_v4 = vsel %vm274_vm0, %v181_v3, 0  ;;  %v8337_v61 = vld [vmem:[#allocation32_spill] sm:$0xff] }
  0xb3   : > { %927 = vmatprep.mubr.f32.mxu1 %v8323_v31  ;;  %4328 = vmatpush3.bf16.msra.mxu1 %v4327_v40  ;;  %v4333_v39 = vpack.c.bf16 %v8328_v47, %v8327_v20  ;;  %8329 = vst [vmem:[#allocation27_spill] sm:$0xff] %v6277_v10  ;;  %v6280_v31 = vld [vmem:[%s5166_s23 + $0xd0] sm:$0xff]  ;;  %v8334_v47 = vand.u32 4294901760, %v8333_v14  ;;  %v185_v16 = vld [vmem:[%s5166_s23 + $0x118] sm:$0xff] }
  0xb4   : > { %2593 = vmatmul.mubr.f32.gmra.mrb[40].mxu0 %v6247_v57  ;;  %4330 = vmatprep.subr.bf16.mxu1 %v4329_v28  ;;  %v8330_v40 = vld [vmem:[#allocation76_spill] sm:$0xff]  ;;  %v8331_v28 = vld [vmem:[#allocation110_spill] sm:$0xff]  ;;  %v6305_v14 = vand.u32 4294901760, %v6280_v31 }
  0xb5   : > { %2598 = vmatprep.mubr.f32.mxu0 %v6253_v22  ;;  %4531 = vmatpush1.bf16.msra.mxu0 %v4530_v44  ;;  %v8332_v18 = vand.u32 4294901760, %v8331_v28  ;;  %v8336_v44 = vld [vmem:[#allocation84_spill] sm:$0xff]  ;;  %v4335_v22 = vpack.c.bf16 %v8338_v19, %v8337_v61  ;;  %v8341_v57 = vld [vmem:[#allocation114_spill] sm:$0xff]  ;;  %v8352_v19 = vld [vmem:[#allocation129_spill] sm:$0xff] }
  0xb6   : > { %929 = vmatmul.mubr.f32.gmra.mrb[44].mxu1 %v8330_v40  ;;  %4532 = vmatprep.subr.bf16.mxu0 %v8154_v25  ;;  %v8339_v40 = vld [vmem:[#allocation113_spill] sm:$0xff]  ;;  %v8342_v58 = vand.u32 4294901760, %v8341_v57  ;;  %8344 = vst [vmem:[#allocation110_spill] sm:$0xff] %v6305_v14  ;;  %v8345_v28 = vld [vmem:[#allocation126_spill] sm:$0xff]  ;;  %v8350_v57 = vpack.c.bf16 %v5640_v51, %v5633_v46  ;;  %v8353_v61 = vand.u32 4294901760, %v8352_v19  ;;  %v8361_v46 = vld [vmem:[#allocation87_spill] sm:$0xff] }
  0xb7   : > { %v6291_v20 = vpack.c.bf16 %v8334_v47, %v8332_v18  ;;  %934 = vmatprep.mubr.f32.mxu1 %v8336_v44  ;;  %4332 = vmatpush3.bf16.msra.mxu1 %v4331_v5  ;;  %v8340_v15 = vand.u32 4294901760, %v8339_v40  ;;  %v8346_v18 = vand.u32 4294901760, %v8345_v28  ;;  %v8347_v47 = vld [vmem:[#allocation127_spill] sm:$0xff]  ;;  %v189_v19 = vld [vmem:[%s5166_s23 + $0x138] sm:$0xff] }
  0xb8   : > { %2600 = vmatmul.mubr.f32.gmra.mrb[42].mxu0 %v6271_v30  ;;  %4334 = vmatprep.subr.bf16.mxu1 %v4333_v39  ;;  %v8348_v5 = vand.u32 4294901760, %v8347_v47  ;;  %v8354_v39 = vld [vmem:[#allocation132_spill] sm:$0xff]  ;;  %v6332_v47 = vsel %vm274_vm0, %v185_v16, 0 }
  0xb9   : > { %8335 = vst [vmem:[#allocation29_spill] sm:$0xff] %v6291_v20  ;;  %v6301_v3 = vpack.c.bf16 %v8342_v58, %v8340_v15  ;;  %2605 = vmatprep.mubr.f32.mxu0 %v6277_v10  ;;  %4534 = vmatpush1.bf16.msra.mxu0 %v8350_v57  ;;  %v6318_v58 = vand.u32 4294901760, %v6285_v4  ;;  %v6321_v15 = vld [vmem:[%s5166_s23 + $0xf0] sm:$0xff]  ;;  %v8355_v40 = vand.u32 4294901760, %v8354_v39  ;;  %v8359_v57 = vand.u32 4294901760, %v6027_v63 }
  0xba   : > { %v6311_v44 = vpack.c.bf16 %v8348_v5, %v8346_v18  ;;  %v8357_v18 = vld [vmem:[#allocation85_spill] sm:$0xff]  ;;  %4535 = vmatprep.subr.bf16.mxu0 %v8154_v25  ;;  %v8358_v5 = vand.u32 4294901760, %v6022_v49  ;;  %v8363_v39 = vand.u32 4294901760, %v6039_v33  ;;  %v6350_v16 = vand.u32 4294901760, %v6321_v15  ;;  %v8366_v49 = vld [vmem:[#allocation2_spill] sm:$0xff]  ;;  %v6361_v33 = vld [vmem:[%s5166_s23 + $0x110] sm:$0xff] }
  0xbb   : > { %8343 = vst [vmem:[#allocation30_spill] sm:$0xff] %v6301_v3  ;;  %8351 = vst [vmem:[#allocation32_spill] sm:$0xff] %v6318_v58  ;;  %v6327_v28 = vpack.c.bf16 %v8355_v40, %v8353_v61  ;;  %936 = vmatmul.mubr.f32.gmra.mrb[46].mxu1 %v8357_v18  ;;  %v8362_v61 = vand.u32 4294901760, %v6032_v12  ;;  %v8367_v63 = vpack.c.bf16 %v5674_v32, %v5669_v8  ;;  %v6358_v12 = vand.u32 4294901760, %v6332_v47  ;;  %v8375_v18 = vld [vmem:[#allocation104_spill] sm:$0xff]  ;;  %v197_v32 = vld [vmem:[%s5166_s23 + $0x178] sm:$0xff] }
  0xbc   : > { %8349 = vst [vmem:[#allocation111_spill] sm:$0xff] %v6311_v44  ;;  %v6338_v51 = vpack.c.bf16 %v8359_v57, %v8358_v5  ;;  %941 = vmatprep.mubr.f32.mxu1 %v8361_v46  ;;  %4336 = vmatpush3.bf16.msra.mxu1 %v4335_v22  ;;  %8365 = vst [vmem:[#allocation126_spill] sm:$0xff] %v6350_v16  ;;  %v8369_v22 = vld [vmem:[#allocation88_spill] sm:$0xff]  ;;  %v6366_v5 = vsel %vm274_vm0, %v189_v19, 0  ;;  %v8370_v57 = vld [vmem:[#allocation98_spill] sm:$0xff] }
  0xbd   : > { %8356 = vst [vmem:[#allocation35_spill] sm:$0xff] %v6327_v28  ;;  %v6346_v40 = vpack.c.bf16 %v8363_v39, %v8362_v61  ;;  %2607 = vmatmul.mubr.f32.gmra.mrb[44].mxu0 %v6305_v14  ;;  %4338 = vmatprep.subr.bf16.mxu1 %v8366_v49  ;;  %8368 = vst [vmem:[#allocation127_spill] sm:$0xff] %v6358_v12  ;;  %v193_v61 = vld [vmem:[%s5166_s23 + $0x158] sm:$0xff]  ;;  %v6372_v39 = vand.u32 4294901760, %v6361_v33  ;;  %v6382_v19 = vld [vmem:[%s5166_s23 + $0x130] sm:$0xff] }
  0xbe   : > { %8360 = vst [vmem:[#allocation113_spill] sm:$0xff] %v6338_v51  ;;  %2612 = vmatprep.mubr.f32.mxu0 %v6318_v58  ;;  %4537 = vmatpush1.bf16.msra.mxu0 %v8367_v63  ;;  %v8372_v63 = vpack.c.bf16 %v5746_v21, %v5741_v52  ;;  %v8374_v46 = vld [vmem:[#allocation101_spill] sm:$0xff]  ;;  %v8377_v21 = vpack.c.bf16 %v5821_v41, %v5816_v56  ;;  %v8380_v8 = vld [vmem:[#allocation112_spill] sm:$0xff]  ;;  %v8385_v56 = vld [vmem:[#allocation118_spill] sm:$0xff] }
  0xbf   : > { %8364 = vst [vmem:[#allocation114_spill] sm:$0xff] %v6346_v40  ;;  %943 = vmatmul.mubr.f32.gmra.mrb[48].mxu1 %v8369_v22  ;;  %4538 = vmatprep.subr.bf16.mxu0 %v8154_v25  ;;  %8371 = vst [vmem:[#allocation129_spill] sm:$0xff] %v6372_v39  ;;  %v6379_v22 = vand.u32 4294901760, %v6366_v5  ;;  %v8379_v52 = vld [vmem:[#allocation105_spill] sm:$0xff]  ;;  %v8387_v51 = vld [vmem:[#allocation119_spill] sm:$0xff] }
  0xc0   : > { %948 = vmatprep.mubr.f32.mxu1 %v8370_v57  ;;  %v6387_v57 = vsel %vm274_vm0, %v193_v61, 0  ;;  %v6403_v61 = vld [vmem:[%s5166_s23 + $0x150] sm:$0xff]  ;;  %v201_v40 = vld [vmem:[%s5166_s23 + $0x198] sm:$0xff] }
  0xc1   : > { %2614 = vmatmul.mubr.f32.gmra.mrb[46].mxu0 %v6350_v16  ;;  %8373 = vst [vmem:[#allocation132_spill] sm:$0xff] %v6379_v22  ;;  %v205_v28 = vld [vmem:[%s5166_s23 + $0x1b8] sm:$0xff] }
  0xc2   : > { %2619 = vmatprep.mubr.f32.mxu0 %v6358_v12  ;;  %4540 = vmatpush1.bf16.msra.mxu0 %v8372_v63  ;;  %v6393_v63 = vand.u32 4294901760, %v6382_v19 }
  0xc3   : > { %950 = vmatmul.mubr.f32.gmra.mrb[50].mxu1 %v8374_v46  ;;  %4541 = vmatprep.subr.bf16.mxu0 %v8154_v25  ;;  %v6400_v46 = vand.u32 4294901760, %v6387_v57 }
  0xc4   : > { %955 = vmatprep.mubr.f32.mxu1 %v8375_v18  ;;  %8376 = vst [vmem:[#allocation2_spill] sm:$0xff] %v6393_v63  ;;  %v6408_v18 = vsel %vm274_vm0, %v197_v32, 0  ;;  %v6424_v32 = vld [vmem:[%s5166_s23 + $0x170] sm:$0xff] }
  0xc5   : > { %2621 = vmatmul.mubr.f32.gmra.mrb[48].mxu0 %v6372_v39  ;;  %8378 = vst [vmem:[#allocation157_spill] sm:$0xff] %v6400_v46  ;;  %v6418_v41 = vand.u32 4294901760, %v6408_v18  ;;  %8384 = vst [vmem:[#allocation160_spill] sm:$0xff] %v6424_v32  ;;  %v6435_v44 = vand.u32 4294901760, %v6424_v32  ;;  %v209_v32 = vld [vmem:[%s5166_s23 + $0x1d8] sm:$0xff] }
  0xc6   : > { %2626 = vmatprep.mubr.f32.mxu0 %v6379_v22  ;;  %4543 = vmatpush1.bf16.msra.mxu0 %v8377_v21  ;;  %v6414_v21 = vand.u32 4294901760, %v6403_v61 }
  0xc7   : > { %957 = vmatmul.mubr.f32.gmra.mrb[52].mxu1 %v8379_v52  ;;  %4544 = vmatprep.subr.bf16.mxu0 %v8154_v25  ;;  %8382 = vst [vmem:[#allocation159_spill] sm:$0xff] %v6418_v41  ;;  %v8383_v52 = vpack.c.bf16 %v5864_v7, %v5859_v2  ;;  %8388 = vst [vmem:[#allocation162_spill] sm:$0xff] %v6435_v44  ;;  %v8392_v7 = vld [vmem:[#allocation122_spill] sm:$0xff]  ;;  %v8394_v2 = vld [vmem:[#allocation128_spill] sm:$0xff] }
  0xc8   : > { %962 = vmatprep.mubr.f32.mxu1 %v8380_v8  ;;  %8381 = vst [vmem:[#allocation158_spill] sm:$0xff] %v6414_v21  ;;  %v6429_v8 = vsel %vm274_vm0, %v201_v40, 0  ;;  %v6445_v40 = vld [vmem:[%s5166_s23 + $0x190] sm:$0xff] }
  0xc9   : > { %2628 = vmatmul.mubr.f32.gmra.mrb[50].mxu0 %v6393_v63  ;;  %8386 = vst [vmem:[#allocation161_spill] sm:$0xff] %v6429_v8  ;;  %8391 = vst [vmem:[#allocation164_spill] sm:$0xff] %v6445_v40 }
  0xca   : > { %2633 = vmatprep.mubr.f32.mxu0 %v6400_v46  ;;  %4546 = vmatpush1.bf16.msra.mxu0 %v8383_v52  ;;  %v6439_v52 = vand.u32 4294901760, %v6429_v8  ;;  %v6456_v8 = vand.u32 4294901760, %v6445_v40  ;;  %v8399_v40 = vld [vmem:[#allocation134_spill] sm:$0xff] }
  0xcb   : > { %964 = vmatmul.mubr.f32.gmra.mrb[54].mxu1 %v8385_v56  ;;  %4547 = vmatprep.subr.bf16.mxu0 %v8154_v25  ;;  %v8390_v56 = vpack.c.bf16 %v5953_v48, %v5943_v26  ;;  %v8398_v48 = vld [vmem:[#allocation131_spill] sm:$0xff]  ;;  %v6472_v26 = vsel %vm274_vm0, %v209_v32, 0  ;;  %v4557_v32 = vpack.c.bf16 %v6080_v11, %v6074_v53  ;;  %v6513_v11 = vsub.f32 %v6109_v35, %v6112_v43  ;;  %v8408_v53 = vld [vmem:[#allocation37_spill] sm:$0xff]  ;;  %v8414_v35 = vld [vmem:[#allocation40_spill] sm:$0xff] }
  0xcc   : > { %969 = vmatprep.mubr.f32.mxu1 %v8387_v51  ;;  %8389 = vst [vmem:[#allocation163_spill] sm:$0xff] %v6439_v52  ;;  %v6449_v51 = vsel %vm274_vm0, %v205_v28, 0  ;;  %8395 = vst [vmem:[#allocation166_spill] sm:$0xff] %v6456_v8  ;;  %v8397_v28 = vpack.c.bf16 %v5987_v59, %v5976_v0  ;;  %v6521_v59 = vsub.f32 %v6122_v62, %v6134_v23  ;;  %v8411_v0 = vld [vmem:[#allocation4_spill] sm:$0xff]  ;;  %v8415_v43 = vand.u32 4294901760, %v8414_v35  ;;  %v8419_v62 = vld [vmem:[#allocation5_spill] sm:$0xff] }
  0xcd   : > { %2635 = vmatmul.mubr.f32.gmra.mrb[52].mxu0 %v6414_v21  ;;  %8393 = vst [vmem:[#allocation165_spill] sm:$0xff] %v6449_v51  ;;  %v6541_v23 = vsub.f32 %v6144_v54, %v6161_v50  ;;  %v8427_v54 = vld [vmem:[#allocation58_spill] sm:$0xff]  ;;  %v8428_v50 = vld [vmem:[#allocation7_spill] sm:$0xff] }
  0xce   : > { %2640 = vmatprep.mubr.f32.mxu0 %v6418_v41  ;;  %4549 = vmatpush1.bf16.msra.mxu0 %v8390_v56  ;;  %v6460_v56 = vand.u32 4294901760, %v6449_v51 }
  0xcf   : > { %971 = vmatmul.mubr.f32.gmra.mrb[56].mxu1 %v8392_v7  ;;  %4550 = vmatprep.subr.bf16.mxu0 %v8154_v25  ;;  %v6463_v7 = vld [vmem:[%s5166_s23 + $0x1b0] sm:$0xff] }
  0xd0   : > { %976 = vmatprep.mubr.f32.mxu1 %v8394_v2  ;;  %8396 = vst [vmem:[#allocation167_spill] sm:$0xff] %v6460_v56  ;;  %v4554_v2 = vpack.c.bf16 %v6069_v55, %v6064_v1  ;;  %v6478_v51 = vand.u32 4294901760, %v6463_v7  ;;  %v6485_v55 = vld [vmem:[%s5166_s23 + $0x1d0] sm:$0xff]  ;;  %v6498_v1 = vand.u32 4294901760, %v6219_v42 }
  0xd1   : > { %2642 = vmatmul.mubr.f32.gmra.mrb[54].mxu0 %v6435_v44 }
  0xd2   : > { %2647 = vmatprep.mubr.f32.mxu0 %v6439_v52  ;;  %4552 = vmatpush1.bf16.msra.mxu0 %v8397_v28  ;;  %8400 = vst [vmem:[#allocation168_spill] sm:$0xff] %v6478_v51  ;;  %v6482_v28 = vand.u32 4294901760, %v6472_v26  ;;  %8404 = vst [vmem:[#allocation171_spill] sm:$0xff] %v6498_v1 }
  0xd3   : > { %978 = vmatmul.mubr.f32.gmra.mrb[58].mxu1 %v8398_v48  ;;  %4553 = vmatprep.subr.bf16.mxu0 %v8154_v25  ;;  %v8402_v48 = vld [vmem:[#allocation135_spill] sm:$0xff] }
  0xd4   : > { %983 = vmatprep.mubr.f32.mxu1 %v8399_v40  ;;  %8401 = vst [vmem:[#allocation169_spill] sm:$0xff] %v6482_v28  ;;  %v6494_v40 = vand.u32 4294901760, %v6485_v55 }
  0xd5   : > { %2649 = vmatmul.mubr.f32.gmra.mrb[56].mxu0 %v6456_v8 }
  0xd6   : > { %2654 = vmatprep.mubr.f32.mxu0 %v6460_v56  ;;  %4555 = vmatpush1.bf16.msra.mxu0 %v4554_v2  ;;  %8403 = vst [vmem:[#allocation170_spill] sm:$0xff] %v6494_v40  ;;  %v6501_v2 = vld [vmem:[%s5166_s23 + $0x1f0] sm:$0xff]  ;;  %s3757_s23 = sshll.u32 %s8825_s21, 3 }
  0xd7   : > { %985 = vmatmul.mubr.f32.gmra.mrb[60].mxu1 %v8402_v48  ;;  %4556 = vmatprep.subr.bf16.mxu0 %v8154_v25  ;;  %8405 = vst [vmem:[#allocation172_spill] sm:$0xff] %v6501_v2  ;;  %v8406_v48 = vld [vmem:[#allocation36_spill] sm:$0xff]  ;;  %s7556_s7 = scalar_lea.vmem %s7609_s2, %s3757_s23 }
  0xd8   : > { %990 = vmatprep.mubr.f32.mxu1 %v6034_v9  ;;  %v6508_v9 = vand.u32 4294901760, %v6501_v2  ;;  %v8412_v2 = vld [vmem:[#allocation38_spill] sm:$0xff] }
  0xd9   : > { %2656 = vmatmul.mubr.f32.gmra.mrb[58].mxu0 %v6478_v51 }
  0xda   : > { %2661 = vmatprep.mubr.f32.mxu0 %v6482_v28  ;;  %4558 = vmatpush1.bf16.msra.mxu0 %v4557_v32  ;;  %8407 = vst [vmem:[#allocation173_spill] sm:$0xff] %v6508_v9  ;;  %v8409_v32 = vld [vmem:[#allocation42_spill] sm:$0xff] }
  0xdb   : > { %992 = vmatmul.mubr.f32.gmra.mrb[62].mxu1 %v6045_v38  ;;  %4559 = vmatprep.subr.bf16.mxu0 %v8154_v25  ;;  %v8410_v38 = vld [vmem:[#allocation3_spill] sm:$0xff] }
  0xdc   : > { %1127 = vmatprep.mubr.f32.mxu1 %v8406_v48  ;;  %v8413_v48 = vand.u32 4294901760, %v8412_v2  ;;  %v8420_v2 = vld [vmem:[#allocation6_spill] sm:$0xff] }
  0xdd   : > { %2663 = vmatmul.mubr.f32.gmra.mrb[60].mxu0 %v6494_v40 }
  0xde   : > { %2668 = vmatprep.mubr.f32.mxu0 %v6498_v1  ;;  %v6529_v42 = vpack.c.bf16 %v8415_v43, %v8413_v48  ;;  %v8421_v48 = vld [vmem:[#allocation50_spill] sm:$0xff] }
  0xdf   : > { %1130 = vmatmul.mubr.f32.vlgmr.msra.gmra.mrb[64].mxu1 %v8408_v53  ;;  %v8418_v53 = vld [vmem:[#allocation48_spill] sm:$0xff]  ;;  %v8422_v43 = vand.u32 4294901760, %v8421_v48  ;;  %v6563_v48 = vsub.f32 %v6174_v24, %v6191_v29  ;;  %v8438_v24 = vld [vmem:[#allocation61_spill] sm:$0xff] }
  0xe0   : > { %1136 = vmatprep.mubr.f32.mxu1 %v8409_v32  ;;  %4340 = vmatpush3.bf16.msra.mxu1 %v8410_v38  ;;  %8416 = vst [vmem:[#allocation4_spill] sm:$0xff] %v6529_v42  ;;  %v6533_v32 = vsub.f32 %v6127_v34, %v6141_v17  ;;  %v8417_v38 = vld [vmem:[#allocation43_spill] sm:$0xff]  ;;  %v8439_v29 = vld [vmem:[#allocation12_spill] sm:$0xff] }
  0xe1   : > { %2670 = vmatmul.mubr.f32.gmra.mrb[62].mxu0 %v6508_v9  ;;  %4342 = vmatprep.subr.bf16.mxu1 %v8411_v0  ;;  %v8423_v34 = vld [vmem:[#allocation51_spill] sm:$0xff]  ;;  %8429 = vst [vmem:[#allocation40_spill] sm:$0xff] %v6563_v48 }
  0xe2   : > { %2797 = vmatprep.mubr.f32.mxu0 %v6513_v11  ;;  %v8424_v35 = vand.u32 4294901760, %v8423_v34  ;;  %v8432_v34 = vld [vmem:[#allocation54_spill] sm:$0xff] }
  0xe3   : > { %1139 = vmatmul.mubr.f32.gmra.mrb[66].mxu1 %v8417_v38 }
  0xe4   : > { %1145 = vmatprep.mubr.f32.mxu1 %v8418_v53  ;;  %4344 = vmatpush3.bf16.msra.mxu1 %v8419_v62  ;;  %v6550_v17 = vpack.c.bf16 %v8424_v35, %v8422_v43  ;;  %v6554_v62 = vsub.f32 %v6151_v36, %v6171_v60  ;;  %v8426_v53 = vld [vmem:[#allocation49_spill] sm:$0xff]  ;;  %v8430_v43 = vld [vmem:[#allocation10_spill] sm:$0xff]  ;;  %v6570_v36 = vsub.f32 %v6181_v6, %v6200_v37  ;;  %v8433_v35 = vand.u32 4294901760, %v8432_v34  ;;  %v8434_v60 = vld [vmem:[#allocation55_spill] sm:$0xff] }
  0xe5   : > { %2800 = vmatmul.mubr.f32.vlgmr.msra.gmra.mrb[32].mxu0 %v6521_v59  ;;  %4346 = vmatprep.subr.bf16.mxu1 %v8420_v2  ;;  %v6585_v6 = vsub.f32 %v6205_v45, %v6223_v13  ;;  %v8441_v37 = vld [vmem:[#allocation14_spill] sm:$0xff]  ;;  %v8450_v13 = vld [vmem:[#allocation16_spill] sm:$0xff] }
  0xe6   : > { %4561 = vmatpush1.bf16.msra.mxu0 %v6529_v42  ;;  %2806 = vmatprep.mubr.f32.mxu0 %v6533_v32  ;;  %8425 = vst [vmem:[#allocation38_spill] sm:$0xff] %v6550_v17  ;;  %8431 = vst [vmem:[#allocation43_spill] sm:$0xff] %v6570_v36  ;;  %v8435_v42 = vand.u32 4294901760, %v8434_v60  ;;  %v8443_v34 = vld [vmem:[#allocation66_spill] sm:$0xff] }
  0xe7   : > { %1148 = vmatmul.mubr.f32.gmra.mrb[68].mxu1 %v8426_v53  ;;  %4562 = vmatprep.subr.bf16.mxu0 %v8154_v25  ;;  %8440 = vst [vmem:[#allocation50_spill] sm:$0xff] %v6585_v6  ;;  %v8449_v45 = vld [vmem:[#allocation70_spill] sm:$0xff] }
  0xe8   : > { %1154 = vmatprep.mubr.f32.mxu1 %v8427_v54  ;;  %4348 = vmatpush3.bf16.msra.mxu1 %v8428_v50  ;;  %v6576_v50 = vpack.c.bf16 %v8435_v42, %v8433_v35  ;;  %v8437_v54 = vld [vmem:[#allocation60_spill] sm:$0xff]  ;;  %v8442_v42 = vld [vmem:[#allocation153_spill] sm:$0xff]  ;;  %v8444_v35 = vand.u32 4294901760, %v8443_v34 }
  0xe9   : > { %2809 = vmatmul.mubr.f32.gmra.mrb[34].mxu0 %v6541_v23  ;;  %4350 = vmatprep.subr.bf16.mxu1 %v8430_v43  ;;  %v6592_v60 = vsub.f32 %v8442_v42, %v6229_v27  ;;  %v8453_v27 = vld [vmem:[#allocation18_spill] sm:$0xff] }
  0xea   : > { %4564 = vmatpush1.bf16.msra.mxu0 %v6550_v17  ;;  %2815 = vmatprep.mubr.f32.mxu0 %v6554_v62  ;;  %8436 = vst [vmem:[#allocation6_spill] sm:$0xff] %v6576_v50  ;;  %v8445_v17 = vld [vmem:[#allocation67_spill] sm:$0xff] }
  0xeb   : > { %1157 = vmatmul.mubr.f32.gmra.mrb[70].mxu1 %v8437_v54  ;;  %4565 = vmatprep.subr.bf16.mxu0 %v8154_v25  ;;  %v8448_v54 = vld [vmem:[#allocation65_spill] sm:$0xff] }
  0xec   : > { %1163 = vmatprep.mubr.f32.mxu1 %v8438_v24  ;;  %4352 = vmatpush3.bf16.msra.mxu1 %v8439_v29  ;;  %v8446_v29 = vand.u32 4294901760, %v8445_v17  ;;  %v8454_v17 = vld [vmem:[#allocation21_spill] sm:$0xff] }
  0xed   : > { %2818 = vmatmul.mubr.f32.gmra.mrb[36].mxu0 %v6563_v48  ;;  %4354 = vmatprep.subr.bf16.mxu1 %v8441_v37  ;;  %v8452_v37 = vld [vmem:[#allocation155_spill] sm:$0xff] }
  0xee   : > { %2824 = vmatprep.mubr.f32.mxu0 %v6570_v36  ;;  %4567 = vmatpush1.bf16.msra.mxu0 %v6576_v50  ;;  %v6598_v24 = vpack.c.bf16 %v8446_v29, %v8444_v35  ;;  %v8451_v50 = vld [vmem:[#allocation19_spill] sm:$0xff]  ;;  %v8455_v29 = vld [vmem:[#allocation156_spill] sm:$0xff]  ;;  %v8456_v35 = vld [vmem:[#allocation69_spill] sm:$0xff] }
  0xef   : > { %1166 = vmatmul.mubr.f32.gmra.mrb[72].mxu1 %v8448_v54  ;;  %4568 = vmatprep.subr.bf16.mxu0 %v8154_v25  ;;  %v6607_v42 = vsub.f32 %v8452_v37, %v8451_v50  ;;  %v6614_v34 = vsub.f32 %v8455_v29, %v8454_v17  ;;  %v8458_v54 = vld [vmem:[#allocation73_spill] sm:$0xff]  ;;  %v8462_v37 = vld [vmem:[#allocation78_spill] sm:$0xff]  ;;  %v8463_v50 = vld [vmem:[#allocation20_spill] sm:$0xff] }
  0xf0   : > { %8447 = vst [vmem:[#allocation51_spill] sm:$0xff] %v6598_v24  ;;  %1172 = vmatprep.mubr.f32.mxu1 %v8449_v45  ;;  %4356 = vmatpush3.bf16.msra.mxu1 %v8450_v13  ;;  %v8457_v45 = vand.u32 4294901760, %v8456_v35  ;;  %v8459_v13 = vand.u32 4294901760, %v8458_v54  ;;  %v8465_v17 = vld [vmem:[#allocation22_spill] sm:$0xff] }
  0xf1   : > { %2827 = vmatmul.mubr.f32.gmra.mrb[38].mxu0 %v6585_v6  ;;  %4358 = vmatprep.subr.bf16.mxu1 %v8453_v27  ;;  %v8461_v6 = vld [vmem:[#allocation77_spill] sm:$0xff]  ;;  %v8472_v27 = vld [vmem:[#allocation79_spill] sm:$0xff] }
  0xf2   : > { %2833 = vmatprep.mubr.f32.mxu0 %v6592_v60  ;;  %4570 = vmatpush1.bf16.msra.mxu0 %v6598_v24  ;;  %v6620_v36 = vpack.c.bf16 %v8459_v13, %v8457_v45  ;;  %v8464_v24 = vld [vmem:[#allocation23_spill] sm:$0xff]  ;;  %v8466_v13 = vld [vmem:[#allocation24_spill] sm:$0xff]  ;;  %v8467_v45 = vld [vmem:[#allocation82_spill] sm:$0xff] }
  0xf3   : > { %1175 = vmatmul.mubr.f32.gmra.mrb[74].mxu1 %v8461_v6  ;;  %4571 = vmatprep.subr.bf16.mxu0 %v8154_v25  ;;  %v6629_v29 = vsub.f32 %v8464_v24, %v6271_v30  ;;  %v6636_v54 = vsub.f32 %v8466_v13, %v6277_v10  ;;  %v8468_v35 = vand.u32 4294901760, %v8467_v45  ;;  %v8473_v24 = vld [vmem:[#allocation86_spill] sm:$0xff]  ;;  %v6651_v13 = vsub.f32 %v6280_v31, %v6305_v14  ;;  %v8475_v10 = vld [vmem:[#allocation28_spill] sm:$0xff] }
  0xf4   : > { %8460 = vst [vmem:[#allocation49_spill] sm:$0xff] %v6620_v36  ;;  %1181 = vmatprep.mubr.f32.mxu1 %v8462_v37  ;;  %4360 = vmatpush3.bf16.msra.mxu1 %v8463_v50  ;;  %v8469_v37 = vld [vmem:[#allocation83_spill] sm:$0xff]  ;;  %v8474_v30 = vld [vmem:[#allocation26_spill] sm:$0xff] }
  0xf5   : > { %2836 = vmatmul.mubr.f32.gmra.mrb[40].mxu0 %v6607_v42  ;;  %4362 = vmatprep.subr.bf16.mxu1 %v8465_v17  ;;  %v8470_v50 = vand.u32 4294901760, %v8469_v37  ;;  %v8476_v37 = vld [vmem:[#allocation89_spill] sm:$0xff]  ;;  %v8482_v31 = vld [vmem:[#allocation94_spill] sm:$0xff] }
  0xf6   : > { %2842 = vmatprep.mubr.f32.mxu0 %v6614_v34  ;;  %4573 = vmatpush1.bf16.msra.mxu0 %v6620_v36  ;;  %v8477_v45 = vand.u32 4294901760, %v8476_v37  ;;  %v8483_v14 = vld [vmem:[#allocation34_spill] sm:$0xff]  ;;  %v8484_v37 = vld [vmem:[#allocation99_spill] sm:$0xff] }
  0xf7   : > { %v6642_v6 = vpack.c.bf16 %v8470_v50, %v8468_v35  ;;  %1184 = vmatmul.mubr.f32.gmra.mrb[76].mxu1 %v8472_v27  ;;  %4574 = vmatprep.subr.bf16.mxu0 %v8154_v25  ;;  %v6658_v50 = vsub.f32 %v6285_v4, %v6318_v58  ;;  %v8478_v35 = vld [vmem:[#allocation90_spill] sm:$0xff]  ;;  %v6673_v4 = vsub.f32 %v6321_v15, %v6350_v16 }
  0xf8   : > { %1190 = vmatprep.mubr.f32.mxu1 %v8473_v24  ;;  %4364 = vmatpush3.bf16.msra.mxu1 %v8474_v30  ;;  %v8479_v36 = vand.u32 4294901760, %v8478_v35  ;;  %v8481_v24 = vld [vmem:[#allocation91_spill] sm:$0xff]  ;;  %v8486_v35 = vld [vmem:[#allocation100_spill] sm:$0xff]  ;;  %v8490_v15 = vld [vmem:[#allocation102_spill] sm:$0xff] }
  0xf9   : > { %8471 = vst [vmem:[#allocation10_spill] sm:$0xff] %v6642_v6  ;;  %2845 = vmatmul.mubr.f32.gmra.mrb[42].mxu0 %v6629_v29  ;;  %4366 = vmatprep.subr.bf16.mxu1 %v8475_v10  ;;  %v8487_v58 = vand.u32 4294901760, %v8486_v35  ;;  %v8494_v35 = vld [vmem:[#allocation117_spill] sm:$0xff]  ;;  %v8511_v16 = vld [vmem:[#allocation138_spill] sm:$0xff] }
  0xfa   : > { %2851 = vmatprep.mubr.f32.mxu0 %v6636_v54  ;;  %4576 = vmatpush1.bf16.msra.mxu0 %v6642_v6  ;;  %v6664_v30 = vpack.c.bf16 %v8479_v36, %v8477_v45  ;;  %v6680_v36 = vsub.f32 %v6332_v47, %v6358_v12  ;;  %v8485_v45 = vand.u32 4294901760, %v8484_v37  ;;  %v8491_v47 = vld [vmem:[#allocation103_spill] sm:$0xff]  ;;  %v8492_v37 = vld [vmem:[#allocation108_spill] sm:$0xff] }
  0xfb   : > { %1193 = vmatmul.mubr.f32.gmra.mrb[78].mxu1 %v8481_v24  ;;  %4577 = vmatprep.subr.bf16.mxu0 %v8154_v25  ;;  %v8505_v12 = vld [vmem:[#allocation164_spill] sm:$0xff] }
  0xfc   : > { %8480 = vst [vmem:[#allocation54_spill] sm:$0xff] %v6664_v30  ;;  %1199 = vmatprep.mubr.f32.mxu1 %v8482_v31  ;;  %4368 = vmatpush3.bf16.msra.mxu1 %v8483_v14  ;;  %v6686_v6 = vpack.c.bf16 %v8487_v58, %v8485_v45  ;;  %v8489_v14 = vld [vmem:[#allocation95_spill] sm:$0xff]  ;;  %v6700_v58 = vsub.f32 %v6366_v5, %v6379_v22  ;;  %v8493_v45 = vld [vmem:[#allocation109_spill] sm:$0xff]  ;;  %v8498_v22 = vld [vmem:[#allocation160_spill] sm:$0xff] }
  0xfd   : > { %2854 = vmatmul.mubr.f32.gmra.mrb[44].mxu0 %v6651_v13  ;;  %4402 = vmatprep.subr.bf16.mxu1 %v8366_v49  ;;  %v6694_v49 = vsub.f32 %v6361_v33, %v6372_v39  ;;  %v6708_v33 = vsub.f32 %v6382_v19, %v6393_v63  ;;  %v6714_v5 = vsub.f32 %v6387_v57, %v6400_v46  ;;  %v8496_v57 = vld [vmem:[#allocation120_spill] sm:$0xff]  ;;  %v8497_v46 = vld [vmem:[#allocation121_spill] sm:$0xff] }
  0xfe   : > { %2860 = vmatprep.mubr.f32.mxu0 %v6658_v50  ;;  %4579 = vmatpush1.bf16.msra.mxu0 %v6664_v30  ;;  %8488 = vst [vmem:[#allocation55_spill] sm:$0xff] %v6686_v6  ;;  %v6722_v19 = vsub.f32 %v6403_v61, %v6414_v21  ;;  %v6727_v63 = vsub.f32 %v6408_v18, %v6418_v41  ;;  %v8500_v21 = vld [vmem:[#allocation161_spill] sm:$0xff]  ;;  %v8502_v41 = vld [vmem:[#allocation111_spill] sm:$0xff] }
  0xff   : > { %1202 = vmatmul.mubr.f32.gmra.mrb[80].mxu1 %v8489_v14  ;;  %4580 = vmatprep.subr.bf16.mxu0 %v8154_v25  ;;  %v6736_v61 = vsub.f32 %v8498_v22, %v6435_v44  ;;  %v6741_v18 = vsub.f32 %v8500_v21, %v6439_v52  ;;  %v8503_v39 = vld [vmem:[#allocation125_spill] sm:$0xff]  ;;  %v6750_v22 = vsub.f32 %v8505_v12, %v6456_v8  ;;  %v8509_v52 = vld [vmem:[#allocation35_spill] sm:$0xff] }
 0x100   : > { %1208 = vmatprep.mubr.f32.mxu1 %v8490_v15  ;;  %8495 = vst [vmem:[#allocation153_spill] sm:$0xff] %v6727_v63  ;;  %v8507_v44 = vld [vmem:[#allocation165_spill] sm:$0xff]  ;;  %v6764_v12 = vsub.f32 %v6463_v7, %v6478_v51  ;;  %v8515_v8 = vld [vmem:[#allocation139_spill] sm:$0xff]  ;;  %v6778_v7 = vsub.f32 %v6485_v55, %v6494_v40 }
 0x101   : > { %2863 = vmatmul.mubr.f32.gmra.mrb[46].mxu0 %v6673_v4  ;;  %8499 = vst [vmem:[#allocation66_spill] sm:$0xff] %v6736_v61  ;;  %8501 = vst [vmem:[#allocation67_spill] sm:$0xff] %v6741_v18  ;;  %v6755_v21 = vsub.f32 %v8507_v44, %v6460_v56  ;;  %v6769_v44 = vsub.f32 %v6472_v26, %v6482_v28  ;;  %v8514_v56 = vld [vmem:[#allocation113_spill] sm:$0xff]  ;;  %v8518_v51 = vld [vmem:[#allocation15_spill] sm:$0xff] }
 0x102   : > { %2869 = vmatprep.mubr.f32.mxu0 %v6680_v36  ;;  %4582 = vmatpush1.bf16.msra.mxu0 %v6686_v6  ;;  %8506 = vst [vmem:[#allocation155_spill] sm:$0xff] %v6750_v22  ;;  %8512 = vst [vmem:[#allocation69_spill] sm:$0xff] %v6764_v12  ;;  %v6783_v26 = vsub.f32 %v8518_v51, %v6498_v1  ;;  %v8520_v28 = vld [vmem:[#allocation114_spill] sm:$0xff]  ;;  %v8521_v6 = vld [vmem:[#allocation145_spill] sm:$0xff] }
 0x103   : > { %1211 = vmatmul.mubr.f32.gmra.mrb[82].mxu1 %v8491_v47  ;;  %4583 = vmatprep.subr.bf16.mxu0 %v8154_v25  ;;  %8508 = vst [vmem:[#allocation156_spill] sm:$0xff] %v6755_v21  ;;  %8513 = vst [vmem:[#allocation73_spill] sm:$0xff] %v6769_v44  ;;  %v8526_v51 = vld [vmem:[#allocation172_spill] sm:$0xff] }
 0x104   : > { %1217 = vmatprep.mubr.f32.mxu1 %v8492_v37  ;;  %8517 = vst [vmem:[#allocation23_spill] sm:$0xff] %v6778_v7  ;;  %8519 = vst [vmem:[#allocation22_spill] sm:$0xff] %v6783_v26  ;;  %v6797_v1 = vsub.f32 %v8526_v51, %v6508_v9 }
 0x105   : > { %2872 = vmatmul.mubr.f32.gmra.mrb[48].mxu0 %v6694_v49 }
 0x106   : > { %2878 = vmatprep.mubr.f32.mxu0 %v6700_v58  ;;  %4585 = vmatpush1.bf16.msra.mxu0 %v6291_v20  ;;  %8527 = vst [vmem:[#allocation83_spill] sm:$0xff] %v6797_v1 }
 0x107   : > { %1220 = vmatmul.mubr.f32.gmra.mrb[84].mxu1 %v8493_v45  ;;  %4586 = vmatprep.subr.bf16.mxu0 %v8154_v25 }
 0x108   : > { %1226 = vmatprep.mubr.f32.mxu1 %v8494_v35 }
 0x109   : > { %2881 = vmatmul.mubr.f32.gmra.mrb[50].mxu0 %v6708_v33 }
 0x10a   : > { %2887 = vmatprep.mubr.f32.mxu0 %v6714_v5  ;;  %4588 = vmatpush1.bf16.msra.mxu0 %v6301_v3  ;;  %v8504_v3 = vld [vmem:[#allocation130_spill] sm:$0xff] }
 0x10b   : > { %1229 = vmatmul.mubr.f32.gmra.mrb[86].mxu1 %v8496_v57  ;;  %4589 = vmatprep.subr.bf16.mxu0 %v8154_v25 }
 0x10c   : > { %1235 = vmatprep.mubr.f32.mxu1 %v8497_v46 }
 0x10d   : > { %2890 = vmatmul.mubr.f32.gmra.mrb[52].mxu0 %v6722_v19 }
 0x10e   : > { %2896 = vmatprep.mubr.f32.mxu0 %v6727_v63  ;;  %4591 = vmatpush1.bf16.msra.mxu0 %v8502_v41  ;;  %v8510_v41 = vld [vmem:[#allocation137_spill] sm:$0xff] }
 0x10f   : > { %1238 = vmatmul.mubr.f32.gmra.mrb[88].mxu1 %v8503_v39  ;;  %4592 = vmatprep.subr.bf16.mxu0 %v8154_v25  ;;  %v4113_v20 = vpop.f32.mrb[0].mxu0 }
 0x110   : > { %1244 = vmatprep.mubr.f32.mxu1 %v8504_v3 }
 0x111   : > { %2899 = vmatmul.mubr.f32.gmra.mrb[54].mxu0 %v6736_v61 }
 0x112   : > { %2905 = vmatprep.mubr.f32.mxu0 %v6741_v18  ;;  %4594 = vmatpush1.bf16.msra.mxu0 %v8509_v52  ;;  %v8516_v52 = vld [vmem:[#allocation144_spill] sm:$0xff] }
 0x113   : > { %1247 = vmatmul.mubr.f32.gmra.mrb[90].mxu1 %v8510_v41  ;;  %4595 = vmatprep.subr.bf16.mxu0 %v8154_v25 }
 0x114   : > { %1253 = vmatprep.mubr.f32.mxu1 %v8511_v16 }
 0x115   : > { %2908 = vmatmul.mubr.f32.gmra.mrb[56].mxu0 %v6750_v22 }
 0x116   : > { %2914 = vmatprep.mubr.f32.mxu0 %v6755_v21  ;;  %4597 = vmatpush1.bf16.msra.mxu0 %v8514_v56  ;;  %v3793_v56 = vpop.f32.mrb[0].mxu1 }
 0x117   : > { %1256 = vmatmul.mubr.f32.gmra.mrb[92].mxu1 %v8515_v8  ;;  %4598 = vmatprep.subr.bf16.mxu0 %v8154_v25  ;;  %v3794_v30 = vpop.f32.mrb[1].mxu1  ;;  %v8522_v8 = vld [vmem:[#allocation36_spill] sm:$0xff] }
 0x118   : > { %1262 = vmatprep.mubr.f32.mxu1 %v8516_v52  ;;  %v4114_v52 = vpop.f32.mrb[1].mxu0  ;;  %v6790_v55 = vadd.f32 %v3794_v30, %v3793_v56  ;;  %v8530_v30 = vld [vmem:[#allocation42_spill] sm:$0xff] }
 0x119   : > { %2917 = vmatmul.mubr.f32.gmra.mrb[58].mxu0 %v6764_v12  ;;  %v8523_v12 = vand.u32 4294901760, %v8522_v8  ;;  %v6792_v40 = vadd.f32 %v4114_v52, %v4113_v20  ;;  %v3796_v8 = vpop.f32.mrb[2].mxu1  ;;  %v8531_v56 = vand.u32 4294901760, %v8530_v30  ;;  %v8532_v20 = vld [vmem:[#allocation3_spill] sm:$0xff] }
 0x11a   : > { %2923 = vmatprep.mubr.f32.mxu0 %v6769_v44  ;;  %4600 = vmatpush1.bf16.msra.mxu0 %v8520_v28  ;;  %8524 = vst [vmem:[#allocation24_spill] sm:$0xff] %v6790_v55  ;;  %v8528_v44 = vld [vmem:[#allocation37_spill] sm:$0xff]  ;;  %v3797_v52 = vpop.f32.mrb[3].mxu1  ;;  %v8537_v30 = vld [vmem:[#allocation47_spill] sm:$0xff] }
 0x11b   : > { %1265 = vmatmul.mubr.f32.gmra.mrb[94].mxu1 %v8521_v6  ;;  %4601 = vmatprep.subr.bf16.mxu0 %v8154_v25  ;;  %8525 = vst [vmem:[#allocation82_spill] sm:$0xff] %v6792_v40  ;;  %v4116_v6 = vpop.f32.mrb[2].mxu0  ;;  %v8529_v16 = vand.u32 4294901760, %v8528_v44  ;;  %v6811_v28 = vadd.f32 %v3797_v52, %v3796_v8  ;;  %v8535_v44 = vld [vmem:[#allocation44_spill] sm:$0xff]  ;;  %v8542_v8 = vld [vmem:[#allocation5_spill] sm:$0xff] }
 0x11c   : > { %1369 = vmatprep.mubr.f32.mxu1 %v8523_v12  ;;  %v4117_v12 = vpop.f32.mrb[3].mxu0  ;;  %v8536_v9 = vand.u32 4294901760, %v8535_v44  ;;  %v8544_v44 = vand.u32 4294901760, %v6521_v59 }
 0x11d   : > { %2926 = vmatmul.mubr.f32.gmra.mrb[60].mxu0 %v6778_v7  ;;  %v6806_v40 = vadd.f32 %v4117_v12, %v4116_v6  ;;  %v4119_v6 = vpop.f32.mrb[4].mxu0  ;;  %v8539_v12 = vand.u32 4294901760, %v8417_v38  ;;  %v8545_v38 = vld [vmem:[#allocation52_spill] sm:$0xff] }
 0x11e   : > { %2932 = vmatprep.mubr.f32.mxu0 %v6783_v26  ;;  %v4120_v51 = vpop.f32.mrb[5].mxu0 }
 0x11f   : > { %1373 = vmatmul.mubr.f32.vlgmr.msra.gmra.mrb[96].mxu1 %v8529_v16  ;;  %8533 = vst [vmem:[#allocation79_spill] sm:$0xff] %v6806_v40  ;;  %v8534_v16 = vand.u32 4294901760, %v6513_v11  ;;  %v3799_v40 = vpop.f32.mrb[4].mxu1 }
 0x120   : > { %1380 = vmatprep.mubr.f32.mxu1 %v8531_v56  ;;  %4404 = vmatpush3.bf16.msra.mxu1 %v8532_v20  ;;  %v8538_v56 = vand.u32 4294901760, %v8537_v30  ;;  %v8031_v20 = vand.u32 4294901760, %v6533_v32  ;;  %v3800_v52 = vpop.f32.mrb[5].mxu1 }
 0x121   : > { %2935 = vmatmul.mubr.f32.gmra.mrb[62].mxu0 %v6797_v1  ;;  %4406 = vmatprep.subr.bf16.mxu1 %v8411_v0  ;;  %v8540_v1 = vld [vmem:[#allocation48_spill] sm:$0xff]  ;;  %v6831_v30 = vadd.f32 %v3800_v52, %v3799_v40  ;;  %v8550_v40 = vld [vmem:[#allocation58_spill] sm:$0xff] }
 0x122   : > { %3035 = vmatprep.mubr.f32.mxu0 %v8534_v16  ;;  %v4602_v55 = vpack.c.bf16 %v8538_v56, %v8536_v9  ;;  %v8541_v0 = vand.u32 4294901760, %v8540_v1  ;;  %v6825_v16 = vadd.f32 %v4120_v51, %v4119_v6  ;;  %v8030_v9 = vand.u32 4294901760, %v6541_v23  ;;  %v8547_v56 = vld [vmem:[#allocation56_spill] sm:$0xff]  ;;  %v4122_v6 = vpop.f32.mrb[6].mxu0 }
 0x123   : > { %1384 = vmatmul.mubr.f32.gmra.mrb[98].mxu1 %v8539_v12  ;;  %v8546_v1 = vand.u32 4294901760, %v8545_v38  ;;  %v8548_v12 = vand.u32 4294901760, %v8547_v56  ;;  %v8032_v51 = vand.u32 4294901760, %v6554_v62  ;;  %v8551_v52 = vand.u32 4294901760, %v8550_v40  ;;  %v8555_v56 = vld [vmem:[#allocation63_spill] sm:$0xff] }
 0x124   : > { %1391 = vmatprep.mubr.f32.mxu1 %v8541_v0  ;;  %4408 = vmatpush3.bf16.msra.mxu1 %v8542_v8  ;;  %8543 = vst [vmem:[#allocation28_spill] sm:$0xff] %v6825_v16  ;;  %v8549_v8 = vand.u32 4294901760, %v8426_v53  ;;  %v8033_v38 = vand.u32 4294901760, %v6563_v48  ;;  %v8554_v53 = vld [vmem:[#allocation43_spill] sm:$0xff] }
 0x125   : > { %3039 = vmatmul.mubr.f32.vlgmr.msra.gmra.mrb[32].mxu0 %v8544_v44  ;;  %4410 = vmatprep.subr.bf16.mxu1 %v8420_v2  ;;  %v4605_v0 = vpack.c.bf16 %v8548_v12, %v8546_v1  ;;  %v4123_v2 = vpop.f32.mrb[7].mxu0  ;;  %v8556_v12 = vand.u32 4294901760, %v8555_v56  ;;  %v8564_v56 = vld [vmem:[#allocation50_spill] sm:$0xff] }
 0x126   : > { %4603 = vmatpush1.bf16.msra.mxu0 %v4602_v55  ;;  %3046 = vmatprep.mubr.f32.mxu0 %v8031_v20  ;;  %v8552_v55 = vld [vmem:[#allocation7_spill] sm:$0xff]  ;;  %v6846_v44 = vadd.f32 %v4123_v2, %v4122_v6  ;;  %v3802_v6 = vpop.f32.mrb[6].mxu1  ;;  %v8559_v2 = vld [vmem:[#allocation60_spill] sm:$0xff]  ;;  %v8561_v20 = vld [vmem:[#allocation61_spill] sm:$0xff]  ;;  %v4125_v1 = vpop.f32.mrb[8].mxu0 }
 0x127   : > { %1395 = vmatmul.mubr.f32.gmra.mrb[100].mxu1 %v8549_v8  ;;  %4604 = vmatprep.subr.bf16.mxu0 %v8154_v25  ;;  %v8557_v8 = vld [vmem:[#allocation64_spill] sm:$0xff] }
 0x128   : > { %1402 = vmatprep.mubr.f32.mxu1 %v8551_v52  ;;  %4412 = vmatpush3.bf16.msra.mxu1 %v8552_v55  ;;  %8553 = vst [vmem:[#allocation89_spill] sm:$0xff] %v6846_v44  ;;  %v8558_v40 = vand.u32 4294901760, %v8557_v8  ;;  %v8560_v55 = vand.u32 4294901760, %v8559_v2  ;;  %v8565_v8 = vld [vmem:[#allocation14_spill] sm:$0xff]  ;;  %v8566_v2 = vand.u32 4294901760, %v8554_v53 }
 0x129   : > { %3050 = vmatmul.mubr.f32.gmra.mrb[34].mxu0 %v8030_v9  ;;  %4414 = vmatprep.subr.bf16.mxu1 %v8430_v43  ;;  %v3803_v9 = vpop.f32.mrb[7].mxu1  ;;  %v8562_v43 = vand.u32 4294901760, %v8561_v20  ;;  %v8037_v20 = vand.u32 4294901760, %v6592_v60 }
 0x12a   : > { %4606 = vmatpush1.bf16.msra.mxu0 %v4605_v0  ;;  %3057 = vmatprep.mubr.f32.mxu0 %v8032_v51  ;;  %v4608_v52 = vpack.c.bf16 %v8558_v40, %v8556_v12  ;;  %v8563_v0 = vld [vmem:[#allocation12_spill] sm:$0xff]  ;;  %v6865_v51 = vadd.f32 %v3803_v9, %v3802_v6  ;;  %v4126_v40 = vpop.f32.mrb[9].mxu0  ;;  %v3805_v44 = vpop.f32.mrb[8].mxu1  ;;  %v8574_v12 = vld [vmem:[#allocation70_spill] sm:$0xff] }
 0x12b   : > { %1406 = vmatmul.mubr.f32.gmra.mrb[102].mxu1 %v8560_v55  ;;  %4607 = vmatprep.subr.bf16.mxu0 %v8154_v25  ;;  %v8567_v55 = vld [vmem:[#allocation74_spill] sm:$0xff]  ;;  %v6878_v16 = vadd.f32 %v4126_v40, %v4125_v1  ;;  %v8575_v53 = vand.u32 4294901760, %v8574_v12 }
 0x12c   : > { %1413 = vmatprep.mubr.f32.mxu1 %v8562_v43  ;;  %4416 = vmatpush3.bf16.msra.mxu1 %v8563_v0  ;;  %v8568_v43 = vand.u32 4294901760, %v8567_v55  ;;  %v8569_v0 = vld [vmem:[#allocation75_spill] sm:$0xff]  ;;  %v4128_v55 = vpop.f32.mrb[10].mxu0  ;;  %v8578_v40 = vld [vmem:[#allocation18_spill] sm:$0xff] }
 0x12d   : > { %3061 = vmatmul.mubr.f32.gmra.mrb[36].mxu0 %v8033_v38  ;;  %4418 = vmatprep.subr.bf16.mxu1 %v8565_v8  ;;  %v8570_v9 = vand.u32 4294901760, %v8569_v0  ;;  %8571 = vst [vmem:[#allocation90_spill] sm:$0xff] %v6878_v16  ;;  %v8572_v38 = vld [vmem:[#allocation65_spill] sm:$0xff]  ;;  %v3806_v8 = vpop.f32.mrb[9].mxu1  ;;  %v8577_v0 = vand.u32 4294901760, %v8564_v56  ;;  %v8588_v16 = vld [vmem:[#allocation20_spill] sm:$0xff] }
 0x12e   : > { %3068 = vmatprep.mubr.f32.mxu0 %v8566_v2  ;;  %4609 = vmatpush1.bf16.msra.mxu0 %v4608_v52  ;;  %v8573_v48 = vand.u32 4294901760, %v8572_v38  ;;  %v8576_v52 = vld [vmem:[#allocation16_spill] sm:$0xff]  ;;  %v6886_v2 = vadd.f32 %v3806_v8, %v3805_v44  ;;  %v4129_v38 = vpop.f32.mrb[11].mxu0 }
 0x12f   : > { %v4611_v6 = vpack.c.bf16 %v8570_v9, %v8568_v43  ;;  %4610 = vmatprep.subr.bf16.mxu0 %v8154_v25  ;;  %v8581_v43 = vld [vmem:[#allocation81_spill] sm:$0xff]  ;;  %v6899_v8 = vadd.f32 %v4129_v38, %v4128_v55  ;;  %v8039_v55 = vand.u32 4294901760, %v6636_v54  ;;  %v8590_v38 = vld [vmem:[#allocation92_spill] sm:$0xff] }
 0x130   : > { %1417 = vmatmul.mubr.f32.gmra.mrb[104].mxu1 %v8573_v48  ;;  %v8038_v48 = vand.u32 4294901760, %v6614_v34  ;;  %v8582_v44 = vand.u32 4294901760, %v8581_v43 }
 0x131   : > { %1424 = vmatprep.mubr.f32.mxu1 %v8575_v53  ;;  %4420 = vmatpush3.bf16.msra.mxu1 %v8576_v52  ;;  %v8579_v53 = vld [vmem:[#allocation80_spill] sm:$0xff]  ;;  %8583 = vst [vmem:[#allocation91_spill] sm:$0xff] %v6899_v8  ;;  %v8584_v52 = vld [vmem:[#allocation77_spill] sm:$0xff]  ;;  %v8694_v8 = vld [vmem:[#allocation19_spill] sm:$0xff] }
 0x132   : > { %3072 = vmatmul.mubr.f32.gmra.mrb[38].mxu0 %v8577_v0  ;;  %4422 = vmatprep.subr.bf16.mxu1 %v8578_v40  ;;  %v8580_v12 = vand.u32 4294901760, %v8579_v53  ;;  %v8585_v0 = vand.u32 4294901760, %v8584_v52  ;;  %v8586_v40 = vld [vmem:[#allocation78_spill] sm:$0xff]  ;;  %v3808_v52 = vpop.f32.mrb[10].mxu1 }
 0x133   : > { %3079 = vmatprep.mubr.f32.mxu0 %v8037_v20  ;;  %4612 = vmatpush1.bf16.msra.mxu0 %v4611_v6  ;;  %v8587_v1 = vand.u32 4294901760, %v8586_v40  ;;  %v4131_v6 = vpop.f32.mrb[12].mxu0  ;;  %v8589_v20 = vand.u32 4294901760, %v6607_v42  ;;  %v8596_v40 = vld [vmem:[#allocation86_spill] sm:$0xff] }
 0x134   : > { %v4614_v9 = vpack.c.bf16 %v8582_v44, %v8580_v12  ;;  %1428 = vmatmul.mubr.f32.gmra.mrb[106].mxu1 %v8585_v0  ;;  %4613 = vmatprep.subr.bf16.mxu0 %v8154_v25  ;;  %v4132_v43 = vpop.f32.mrb[13].mxu0  ;;  %v8591_v12 = vand.u32 4294901760, %v8590_v38  ;;  %v8597_v53 = vand.u32 4294901760, %v8596_v40  ;;  %v8599_v38 = vand.u32 4294901760, %v6629_v29 }
 0x135   : > { %1435 = vmatprep.mubr.f32.mxu1 %v8587_v1  ;;  %4424 = vmatpush3.bf16.msra.mxu1 %v8588_v16  ;;  %v8592_v1 = vld [vmem:[#allocation93_spill] sm:$0xff]  ;;  %v6918_v0 = vadd.f32 %v4132_v43, %v4131_v6  ;;  %v4134_v6 = vpop.f32.mrb[14].mxu0  ;;  %v8600_v43 = vld [vmem:[#allocation96_spill] sm:$0xff] }
 0x136   : > { %3083 = vmatmul.mubr.f32.gmra.mrb[40].mxu0 %v8589_v20  ;;  %4426 = vmatprep.subr.bf16.mxu1 %v8465_v17  ;;  %v8593_v44 = vand.u32 4294901760, %v8592_v1  ;;  %v8595_v20 = vand.u32 4294901760, %v8472_v27  ;;  %v3809_v17 = vpop.f32.mrb[11].mxu1  ;;  %v8051_v27 = vand.u32 4294901760, %v6658_v50  ;;  %v8602_v1 = vld [vmem:[#allocation97_spill] sm:$0xff] }
 0x137   : > { %3090 = vmatprep.mubr.f32.mxu0 %v8038_v48  ;;  %4615 = vmatpush1.bf16.msra.mxu0 %v4614_v9  ;;  %8594 = vst [vmem:[#allocation94_spill] sm:$0xff] %v6918_v0  ;;  %v6925_v9 = vadd.f32 %v3809_v17, %v3808_v52  ;;  %v8598_v48 = vld [vmem:[#allocation26_spill] sm:$0xff]  ;;  %v8604_v17 = vand.u32 4294901760, %v8481_v24  ;;  %v8041_v24 = vand.u32 4294901760, %v6680_v36 }
 0x138   : > { %v4617_v16 = vpack.c.bf16 %v8593_v44, %v8591_v12  ;;  %1439 = vmatmul.mubr.f32.gmra.mrb[108].mxu1 %v8595_v20  ;;  %4616 = vmatprep.subr.bf16.mxu0 %v8154_v25  ;;  %v8057_v12 = vand.u32 4294901760, %v6651_v13  ;;  %v8603_v44 = vand.u32 4294901760, %v8602_v1  ;;  %v4135_v20 = vpop.f32.mrb[15].mxu0  ;;  %v8610_v1 = vld [vmem:[#allocation107_spill] sm:$0xff]  ;;  %v8690_v0 = vld [vmem:[#allocation154_spill] sm:$0xff] }
 0x139   : > { %1446 = vmatprep.mubr.f32.mxu1 %v8597_v53  ;;  %4428 = vmatpush3.bf16.msra.mxu1 %v8598_v48  ;;  %v8601_v53 = vand.u32 4294901760, %v8600_v43  ;;  %v3811_v48 = vpop.f32.mrb[12].mxu1  ;;  %v8050_v43 = vand.u32 4294901760, %v6673_v4 }
 0x13a   : > { %3094 = vmatmul.mubr.f32.gmra.mrb[42].mxu0 %v8599_v38  ;;  %4430 = vmatprep.subr.bf16.mxu1 %v8475_v10  ;;  %v3812_v40 = vpop.f32.mrb[13].mxu1  ;;  %v6942_v10 = vadd.f32 %v4135_v20, %v4134_v6  ;;  %v8606_v38 = vand.u32 4294901760, %v8482_v31  ;;  %v8608_v31 = vld [vmem:[#allocation106_spill] sm:$0xff]  ;;  %v8612_v20 = vand.u32 4294901760, %v8489_v14  ;;  %v8042_v14 = vand.u32 4294901760, %v6700_v58 }
 0x13b   : > { %3101 = vmatprep.mubr.f32.mxu0 %v8039_v55  ;;  %4618 = vmatpush1.bf16.msra.mxu0 %v4617_v16  ;;  %v4620_v52 = vpack.c.bf16 %v8603_v44, %v8601_v53  ;;  %v6946_v16 = vadd.f32 %v3812_v40, %v3811_v48  ;;  %v8607_v55 = vld [vmem:[#allocation34_spill] sm:$0xff]  ;;  %v4137_v53 = vpop.f32.mrb[16].mxu0  ;;  %v8609_v6 = vand.u32 4294901760, %v8608_v31  ;;  %v8611_v44 = vand.u32 4294901760, %v8610_v1  ;;  %v8615_v31 = vld [vmem:[#allocation115_spill] sm:$0xff]  ;;  %v8617_v1 = vld [vmem:[#allocation116_spill] sm:$0xff] }
 0x13c   : > { %1450 = vmatmul.mubr.f32.gmra.mrb[110].mxu1 %v8604_v17  ;;  %4619 = vmatprep.subr.bf16.mxu0 %v8154_v25  ;;  %8605 = vst [vmem:[#allocation99_spill] sm:$0xff] %v6942_v10  ;;  %v8614_v40 = vand.u32 4294901760, %v8490_v15  ;;  %v8619_v15 = vand.u32 4294901760, %v8491_v47  ;;  %v8043_v47 = vand.u32 4294901760, %v6714_v5 }
 0x13d   : > { %1457 = vmatprep.mubr.f32.mxu1 %v8606_v38  ;;  %4432 = vmatpush3.bf16.msra.mxu1 %v8607_v55  ;;  %v4623_v48 = vpack.c.bf16 %v8611_v44, %v8609_v6  ;;  %v4138_v55 = vpop.f32.mrb[17].mxu0  ;;  %v3814_v38 = vpop.f32.mrb[14].mxu1  ;;  %v8616_v6 = vand.u32 4294901760, %v8615_v31 }
 0x13e   : > { %3105 = vmatmul.mubr.f32.gmra.mrb[44].mxu0 %v8057_v12  ;;  %4433 = vmatprep.subr.bf16.mxu1 %v8154_v25  ;;  %v6963_v17 = vadd.f32 %v4138_v55, %v4137_v53  ;;  %v8618_v53 = vand.u32 4294901760, %v8617_v1  ;;  %v3815_v55 = vpop.f32.mrb[15].mxu1  ;;  %v8671_v12 = vld [vmem:[#allocation38_spill] sm:$0xff] }
 0x13f   : > { %3112 = vmatprep.mubr.f32.mxu0 %v8051_v27  ;;  %4621 = vmatpush1.bf16.msra.mxu0 %v4620_v52  ;;  %v8040_v52 = vand.u32 4294901760, %v6694_v49  ;;  %v3817_v31 = vpop.f32.mrb[16].mxu1 }
 0x140   : > { %1461 = vmatmul.mubr.f32.gmra.mrb[112].mxu1 %v8612_v20  ;;  %4622 = vmatprep.subr.bf16.mxu0 %v8154_v25  ;;  %8613 = vst [vmem:[#allocation100_spill] sm:$0xff] %v6963_v17  ;;  %v4626_v44 = vpack.c.bf16 %v8618_v53, %v8616_v6  ;;  %v6980_v20 = vadd.f32 %v3815_v55, %v3814_v38  ;;  %v8621_v6 = vld [vmem:[#allocation123_spill] sm:$0xff]  ;;  %v8623_v53 = vld [vmem:[#allocation124_spill] sm:$0xff]  ;;  %v8689_v17 = vld [vmem:[#allocation17_spill] sm:$0xff] }
 0x141   : > { %1468 = vmatprep.mubr.f32.mxu1 %v8614_v40  ;;  %v8620_v40 = vand.u32 4294901760, %v8492_v37  ;;  %v8622_v1 = vand.u32 4294901760, %v8621_v6  ;;  %v8624_v38 = vand.u32 4294901760, %v8623_v53  ;;  %v4140_v37 = vpop.f32.mrb[18].mxu0  ;;  %v8044_v6 = vand.u32 4294901760, %v6722_v19  ;;  %v8630_v53 = vld [vmem:[#allocation136_spill] sm:$0xff] }
 0x142   : > { %3116 = vmatmul.mubr.f32.gmra.mrb[46].mxu0 %v8050_v43 }
 0x143   : > { %3123 = vmatprep.mubr.f32.mxu0 %v8041_v24  ;;  %4624 = vmatpush1.bf16.msra.mxu0 %v4623_v48  ;;  %v8047_v48 = vand.u32 4294901760, %v6708_v33  ;;  %v4629_v55 = vpack.c.bf16 %v8624_v38, %v8622_v1  ;;  %v4141_v24 = vpop.f32.mrb[19].mxu0  ;;  %v8628_v1 = vld [vmem:[#allocation133_spill] sm:$0xff]  ;;  %v8631_v38 = vand.u32 4294901760, %v8630_v53 }
 0x144   : > { %1472 = vmatmul.mubr.f32.gmra.mrb[114].mxu1 %v8619_v15  ;;  %4625 = vmatprep.subr.bf16.mxu0 %v8154_v25  ;;  %v3818_v15 = vpop.f32.mrb[17].mxu1 }
 0x145   : > { %1479 = vmatprep.mubr.f32.mxu1 %v8620_v40  ;;  %v8625_v40 = vand.u32 4294901760, %v8493_v45  ;;  %v8046_v45 = vand.u32 4294901760, %v6727_v63  ;;  %v8711_v63 = vld [vmem:[#allocation127_spill] sm:$0xff] }
 0x146   : > { %3127 = vmatmul.mubr.f32.gmra.mrb[48].mxu0 %v8040_v52  ;;  %v6997_v52 = vadd.f32 %v3818_v15, %v3817_v31  ;;  %v8629_v31 = vand.u32 4294901760, %v8628_v1 }
 0x147   : > { %3134 = vmatprep.mubr.f32.mxu0 %v8042_v14  ;;  %4627 = vmatpush1.bf16.msra.mxu0 %v4626_v44  ;;  %v8626_v14 = vand.u32 4294901760, %v8494_v35  ;;  %v7001_v44 = vadd.f32 %v4141_v24, %v4140_v37  ;;  %v4143_v35 = vpop.f32.mrb[20].mxu0  ;;  %v8632_v24 = vand.u32 4294901760, %v8496_v57  ;;  %v8633_v37 = vand.u32 4294901760, %v8497_v46 }
 0x148   : > { %1483 = vmatmul.mubr.f32.gmra.mrb[116].mxu1 %v8625_v40  ;;  %4628 = vmatprep.subr.bf16.mxu0 %v8154_v25  ;;  %v4632_v15 = vpack.c.bf16 %v8631_v38, %v8629_v31  ;;  %v3820_v40 = vpop.f32.mrb[18].mxu1  ;;  %v8048_v57 = vand.u32 4294901760, %v6741_v18  ;;  %v8635_v31 = vld [vmem:[#allocation140_spill] sm:$0xff]  ;;  %v8637_v38 = vld [vmem:[#allocation141_spill] sm:$0xff] }
 0x149   : > { %1490 = vmatprep.mubr.f32.mxu1 %v8626_v14  ;;  %8627 = vst [vmem:[#allocation95_spill] sm:$0xff] %v7001_v44  ;;  %v4144_v14 = vpop.f32.mrb[21].mxu0  ;;  %v3821_v1 = vpop.f32.mrb[19].mxu1  ;;  %v8636_v53 = vand.u32 4294901760, %v8635_v31  ;;  %v8638_v46 = vand.u32 4294901760, %v8637_v38  ;;  %v8683_v44 = vld [vmem:[#allocation51_spill] sm:$0xff] }
 0x14a   : > { %3138 = vmatmul.mubr.f32.gmra.mrb[50].mxu0 %v8047_v48  ;;  %v8706_v18 = vld [vmem:[#allocation32_spill] sm:$0xff] }
 0x14b   : > { %3145 = vmatprep.mubr.f32.mxu0 %v8043_v47  ;;  %4630 = vmatpush1.bf16.msra.mxu0 %v4629_v55  ;;  %v7018_v47 = vadd.f32 %v4144_v14, %v4143_v35  ;;  %v8045_v55 = vand.u32 4294901760, %v6736_v61  ;;  %v8639_v35 = vand.u32 4294901760, %v8503_v39  ;;  %v8640_v14 = vand.u32 4294901760, %v8504_v3  ;;  %v8641_v39 = vld [vmem:[#allocation146_spill] sm:$0xff] }
 0x14c   : > { %1494 = vmatmul.mubr.f32.gmra.mrb[118].mxu1 %v8632_v24  ;;  %4631 = vmatprep.subr.bf16.mxu0 %v8154_v25  ;;  %v4635_v24 = vpack.c.bf16 %v8638_v46, %v8636_v53  ;;  %v8643_v53 = vld [vmem:[#allocation147_spill] sm:$0xff]  ;;  %v8710_v61 = vld [vmem:[#allocation126_spill] sm:$0xff] }
 0x14d   : > { %1501 = vmatprep.mubr.f32.mxu1 %v8633_v37  ;;  %8634 = vst [vmem:[#allocation102_spill] sm:$0xff] %v7018_v47  ;;  %v7030_v37 = vadd.f32 %v3821_v1, %v3820_v40  ;;  %v8052_v40 = vand.u32 4294901760, %v6755_v21  ;;  %v8642_v1 = vand.u32 4294901760, %v8641_v39  ;;  %v8644_v38 = vand.u32 4294901760, %v8643_v53  ;;  %v8653_v53 = vld [vmem:[#allocation149_spill] sm:$0xff]  ;;  %v8701_v21 = vld [vmem:[#allocation27_spill] sm:$0xff] }
 0x14e   : > { %3149 = vmatmul.mubr.f32.gmra.mrb[52].mxu0 %v8044_v6  ;;  %v3823_v6 = vpop.f32.mrb[20].mxu1  ;;  %v8676_v47 = vld [vmem:[#allocation53_spill] sm:$0xff] }
 0x14f   : > { %3156 = vmatprep.mubr.f32.mxu0 %v8046_v45  ;;  %4633 = vmatpush1.bf16.msra.mxu0 %v4632_v15  ;;  %v8049_v15 = vand.u32 4294901760, %v6750_v22  ;;  %v3824_v31 = vpop.f32.mrb[21].mxu1  ;;  %v4638_v46 = vpack.c.bf16 %v8644_v38, %v8642_v1  ;;  %v8646_v45 = vld [vmem:[#allocation138_spill] sm:$0xff]  ;;  %v8654_v38 = vand.u32 4294901760, %v8653_v53 }
 0x150   : > { %1505 = vmatmul.mubr.f32.gmra.mrb[120].mxu1 %v8639_v35  ;;  %4634 = vmatprep.subr.bf16.mxu0 %v8154_v25  ;;  %v7047_v3 = vadd.f32 %v3824_v31, %v3823_v6  ;;  %v4146_v35 = vpop.f32.mrb[22].mxu0  ;;  %v8647_v48 = vand.u32 4294901760, %v8646_v45  ;;  %v8650_v6 = vld [vmem:[#allocation73_spill] sm:$0xff]  ;;  %v8705_v22 = vld [vmem:[#allocation110_spill] sm:$0xff] }
 0x151   : > { %1512 = vmatprep.mubr.f32.mxu1 %v8640_v14  ;;  %v8645_v14 = vand.u32 4294901760, %v8510_v41  ;;  %v8053_v31 = vand.u32 4294901760, %v8650_v6  ;;  %v8651_v41 = vld [vmem:[#allocation148_spill] sm:$0xff]  ;;  %v8696_v6 = vld [vmem:[#allocation21_spill] sm:$0xff] }
 0x152   : > { %3160 = vmatmul.mubr.f32.gmra.mrb[54].mxu0 %v8045_v55  ;;  %v4147_v55 = vpop.f32.mrb[23].mxu0  ;;  %v8652_v1 = vand.u32 4294901760, %v8651_v41 }
 0x153   : > { %3167 = vmatprep.mubr.f32.mxu0 %v8048_v57  ;;  %4636 = vmatpush1.bf16.msra.mxu0 %v4635_v24  ;;  %v7054_v57 = vadd.f32 %v4147_v55, %v4146_v35  ;;  %v8649_v24 = vld [vmem:[#allocation69_spill] sm:$0xff]  ;;  %v4149_v45 = vpop.f32.mrb[24].mxu0 }
 0x154   : > { %1516 = vmatmul.mubr.f32.gmra.mrb[122].mxu1 %v8645_v14  ;;  %4637 = vmatprep.subr.bf16.mxu0 %v8154_v25  ;;  %v8056_v39 = vand.u32 4294901760, %v8649_v24  ;;  %v4641_v14 = vpack.c.bf16 %v8654_v38, %v8652_v1  ;;  %v4150_v35 = vpop.f32.mrb[25].mxu0  ;;  %v8055_v1 = vand.u32 4294901760, %v6783_v26  ;;  %v8660_v38 = vld [vmem:[#allocation145_spill] sm:$0xff] }
 0x155   : > { %1523 = vmatprep.mubr.f32.mxu1 %v8647_v48  ;;  %8648 = vst [vmem:[#allocation103_spill] sm:$0xff] %v7054_v57  ;;  %v8655_v48 = vld [vmem:[#allocation139_spill] sm:$0xff]  ;;  %v3826_v27 = vpop.f32.mrb[22].mxu1  ;;  %v8700_v24 = vld [vmem:[#allocation25_spill] sm:$0xff] }
 0x156   : > { %3171 = vmatmul.mubr.f32.gmra.mrb[56].mxu0 %v8049_v15  ;;  %v8656_v55 = vand.u32 4294901760, %v8655_v48  ;;  %v8657_v15 = vld [vmem:[#allocation144_spill] sm:$0xff]  ;;  %v3827_v41 = vpop.f32.mrb[23].mxu1  ;;  %v8663_v48 = vld [vmem:[#allocation83_spill] sm:$0xff] }
 0x157   : > { %3178 = vmatprep.mubr.f32.mxu0 %v8052_v40  ;;  %4639 = vmatpush1.bf16.msra.mxu0 %v4638_v46  ;;  %v8658_v43 = vand.u32 4294901760, %v8657_v15  ;;  %v7071_v40 = vadd.f32 %v4150_v35, %v4149_v45  ;;  %v8054_v46 = vand.u32 4294901760, %v6778_v7  ;;  %v7079_v53 = vadd.f32 %v3827_v41, %v3826_v27  ;;  %v8664_v41 = vld [vmem:[#allocation33_spill] sm:$0xff] }
 0x158   : > { %1527 = vmatmul.mubr.f32.gmra.mrb[124].mxu1 %v8656_v55  ;;  %4640 = vmatprep.subr.bf16.mxu0 %v8154_v25  ;;  %v8661_v15 = vand.u32 4294901760, %v8660_v38  ;;  %v8058_v55 = vand.u32 4294901760, %v8663_v48  ;;  %v8695_v48 = vld [vmem:[#allocation24_spill] sm:$0xff] }
 0x159   : > { %1534 = vmatprep.mubr.f32.mxu1 %v8658_v43  ;;  %8659 = vst [vmem:[#allocation108_spill] sm:$0xff] %v7071_v40  ;;  %v8662_v43 = vld [vmem:[#allocation31_spill] sm:$0xff]  ;;  %v3829_v45 = vpop.f32.mrb[24].mxu1 }
 0x15a   : > { %3182 = vmatmul.mubr.f32.gmra.mrb[58].mxu0 %v8056_v39  ;;  %v3830_v35 = vpop.f32.mrb[25].mxu1 }
 0x15b   : > { %3189 = vmatprep.mubr.f32.mxu0 %v8053_v31  ;;  %4642 = vmatpush1.bf16.msra.mxu0 %v4641_v14  ;;  %v7090_v14 = vadd.f32 %v3830_v35, %v3829_v45  ;;  %v8666_v31 = vld [vmem:[#allocation4_spill] sm:$0xff]  ;;  %v8669_v45 = vld [vmem:[#allocation41_spill] sm:$0xff] }
 0x15c   : > { %1538 = vmatmul.mubr.f32.gmra.mrb[126].mxu1 %v8661_v15  ;;  %4643 = vmatprep.subr.bf16.mxu0 %v8154_v25  ;;  %v4152_v27 = vpop.f32.mrb[26].mxu0  ;;  %v8665_v15 = vld [vmem:[#allocation39_spill] sm:$0xff] }
 0x15d   : > { %1913 = vmatprep.mubr.f32.mxu1 %v8662_v43  ;;  %v4153_v38 = vpop.f32.mrb[27].mxu0 }
 0x15e   : > { %3193 = vmatmul.mubr.f32.gmra.mrb[60].mxu0 %v8054_v46  ;;  %v7095_v43 = vadd.f32 %v4153_v38, %v4152_v27  ;;  %v8668_v46 = vld [vmem:[#allocation150_spill] sm:$0xff]  ;;  %v8673_v27 = vld [vmem:[#allocation151_spill] sm:$0xff] }
 0x15f   : > { %3200 = vmatprep.mubr.f32.mxu0 %v8055_v1 }
 0x160   : > { %1915 = vmatmul.mubr.f32.vlgmr.msra.gmra.mrb[128].mxu1 %v8664_v41  ;;  %8667 = vst [vmem:[#allocation109_spill] sm:$0xff] %v7095_v43  ;;  %v4155_v1 = vpop.f32.mrb[28].mxu0  ;;  %v8670_v41 = vld [vmem:[#allocation45_spill] sm:$0xff]  ;;  %v8675_v43 = vld [vmem:[#allocation46_spill] sm:$0xff] }
 0x161   : > { %1920 = vmatprep.mubr.f32.mxu1 %v8665_v15  ;;  %4435 = vmatpush1.bf16.msra.mxu1 %v8666_v31  ;;  %v4156_v39 = vpop.f32.mrb[29].mxu0 }
 0x162   : > { %3204 = vmatmul.mubr.f32.gmra.mrb[62].mxu0 %v8058_v55  ;;  %4436 = vmatprep.subr.bf16.mxu1 %v8154_v25  ;;  %v3832_v35 = vpop.f32.mrb[26].mxu1  ;;  %v7104_v40 = vadd.f32 %v4156_v39, %v4155_v1  ;;  %v8674_v55 = vld [vmem:[#allocation152_spill] sm:$0xff]  ;;  %v8677_v39 = vld [vmem:[#allocation6_spill] sm:$0xff] }
 0x163   : > { %3358 = vmatprep.mubr.f32.mxu0 %v8668_v46  ;;  %v3833_v15 = vpop.f32.mrb[27].mxu1 }
 0x164   : > { %1922 = vmatmul.mubr.f32.gmra.mrb[130].mxu1 %v8669_v45  ;;  %8672 = vst [vmem:[#allocation117_spill] sm:$0xff] %v7104_v40  ;;  %v7107_v38 = vadd.f32 %v3833_v15, %v3832_v35  ;;  %v8679_v15 = vld [vmem:[#allocation8_spill] sm:$0xff] }
 0x165   : > { %1927 = vmatprep.mubr.f32.mxu1 %v8670_v41  ;;  %4438 = vmatpush1.bf16.msra.mxu1 %v8671_v12  ;;  %v4158_v45 = vpop.f32.mrb[30].mxu0 }
 0x166   : > { %3360 = vmatmul.mubr.f32.vlgmr.msra.gmra.mrb[32].mxu0 %v8673_v27  ;;  %4439 = vmatprep.subr.bf16.mxu1 %v8154_v25  ;;  %v3835_v41 = vpop.f32.mrb[28].mxu1  ;;  %v4159_v57 = vpop.f32.mrb[31].mxu0 }
 0x167   : > { %4645 = vmatpush1.bf16.msra.mxu0 %v8666_v31  ;;  %3365 = vmatprep.mubr.f32.mxu0 %v8674_v55  ;;  %v3836_v1 = vpop.f32.mrb[29].mxu1  ;;  %v7116_v35 = vadd.f32 %v4159_v57, %v4158_v45  ;;  %v8680_v31 = vld [vmem:[#allocation9_spill] sm:$0xff]  ;;  %v8684_v57 = vld [vmem:[#allocation11_spill] sm:$0xff] }
 0x168   : > { %1929 = vmatmul.mubr.f32.gmra.mrb[132].mxu1 %v8675_v43  ;;  %4646 = vmatprep.subr.bf16.mxu0 %v8154_v25  ;;  %v7119_v40 = vadd.f32 %v3836_v1, %v3835_v41  ;;  %v8681_v43 = vld [vmem:[#allocation57_spill] sm:$0xff] }
 0x169   : > { %1934 = vmatprep.mubr.f32.mxu1 %v8676_v47  ;;  %4441 = vmatpush1.bf16.msra.mxu1 %v8677_v39  ;;  %8678 = vst [vmem:[#allocation120_spill] sm:$0xff] %v7116_v35  ;;  %v8682_v47 = vld [vmem:[#allocation59_spill] sm:$0xff]  ;;  %v8685_v45 = vld [vmem:[#allocation13_spill] sm:$0xff]  ;;  %v8687_v35 = vld [vmem:[#allocation68_spill] sm:$0xff] }
 0x16a   : > { %3367 = vmatmul.mubr.f32.gmra.mrb[34].mxu0 %v8679_v15  ;;  %4442 = vmatprep.subr.bf16.mxu1 %v8154_v25 }
 0x16b   : > { %4648 = vmatpush1.bf16.msra.mxu0 %v8671_v12  ;;  %3372 = vmatprep.mubr.f32.mxu0 %v8680_v31  ;;  %v8686_v12 = vld [vmem:[#allocation62_spill] sm:$0xff] }
 0x16c   : > { %1936 = vmatmul.mubr.f32.gmra.mrb[134].mxu1 %v8681_v43  ;;  %4649 = vmatprep.subr.bf16.mxu0 %v8154_v25 }
 0x16d   : > { %1941 = vmatprep.mubr.f32.mxu1 %v8682_v47  ;;  %4444 = vmatpush1.bf16.msra.mxu1 %v8683_v44  ;;  %v3838_v41 = vpop.f32.mrb[30].mxu1  ;;  %v8688_v47 = vld [vmem:[#allocation49_spill] sm:$0xff] }
 0x16e   : > { %3374 = vmatmul.mubr.f32.gmra.mrb[36].mxu0 %v8684_v57  ;;  %4445 = vmatprep.subr.bf16.mxu1 %v8154_v25  ;;  %v3839_v1 = vpop.f32.mrb[31].mxu1 }
 0x16f   : > { %3379 = vmatprep.mubr.f32.mxu0 %v8685_v45  ;;  %4651 = vmatpush1.bf16.msra.mxu0 %v8677_v39  ;;  %v7134_v43 = vadd.f32 %v3839_v1, %v3838_v41  ;;  %v8692_v1 = vld [vmem:[#allocation72_spill] sm:$0xff] }
 0x170   : > { %1943 = vmatmul.mubr.f32.gmra.mrb[136].mxu1 %v8686_v12  ;;  %4652 = vmatprep.subr.bf16.mxu0 %v8154_v25  ;;  %v8691_v12 = vld [vmem:[#allocation71_spill] sm:$0xff] }
 0x171   : > { %1948 = vmatprep.mubr.f32.mxu1 %v8687_v35  ;;  %4447 = vmatpush1.bf16.msra.mxu1 %v8688_v47  ;;  %v3873_v10 = vpop.f32.mrb[32].mxu1  ;;  %v8693_v35 = vld [vmem:[#allocation10_spill] sm:$0xff] }
 0x172   : > { %3381 = vmatmul.mubr.f32.gmra.mrb[38].mxu0 %v8689_v17  ;;  %4448 = vmatprep.subr.bf16.mxu1 %v8154_v25  ;;  %v3874_v39 = vpop.f32.mrb[33].mxu1 }
 0x173   : > { %3386 = vmatprep.mubr.f32.mxu0 %v8690_v0  ;;  %4654 = vmatpush1.bf16.msra.mxu0 %v8683_v44  ;;  %v3875_v41 = vadd.f32 %v3874_v39, %v3873_v10  ;;  %v8698_v39 = vld [vmem:[#allocation84_spill] sm:$0xff] }
 0x174   : > { %1950 = vmatmul.mubr.f32.gmra.mrb[138].mxu1 %v8691_v12  ;;  %4655 = vmatprep.subr.bf16.mxu0 %v8154_v25  ;;  %v8697_v12 = vld [vmem:[#allocation76_spill] sm:$0xff] }
 0x175   : > { %1955 = vmatprep.mubr.f32.mxu1 %v8692_v1  ;;  %4450 = vmatpush1.bf16.msra.mxu1 %v8693_v35  ;;  %v7149_v26 = vadd.f32 %v3875_v41, %v8695_v48  ;;  %v3876_v7 = vpop.f32.mrb[34].mxu1  ;;  %v8699_v1 = vld [vmem:[#allocation54_spill] sm:$0xff] }
 0x176   : > { %3388 = vmatmul.mubr.f32.gmra.mrb[40].mxu0 %v8694_v8  ;;  %4451 = vmatprep.subr.bf16.mxu1 %v8154_v25  ;;  %v3877_v44 = vpop.f32.mrb[35].mxu1 }
 0x177   : > { %3393 = vmatprep.mubr.f32.mxu0 %v8696_v6  ;;  %4657 = vmatpush1.bf16.msra.mxu0 %v8688_v47  ;;  %v3878_v10 = vadd.f32 %v3877_v44, %v3876_v7  ;;  %v8703_v44 = vld [vmem:[#allocation87_spill] sm:$0xff] }
 0x178   : > { %1957 = vmatmul.mubr.f32.gmra.mrb[140].mxu1 %v8697_v12  ;;  %4658 = vmatprep.subr.bf16.mxu0 %v8154_v25  ;;  %v8702_v12 = vld [vmem:[#allocation85_spill] sm:$0xff] }
 0x179   : > { %1962 = vmatprep.mubr.f32.mxu1 %v8698_v39  ;;  %4453 = vmatpush1.bf16.msra.mxu1 %v8699_v1  ;;  %v7160_v48 = vadd.f32 %v3878_v10, %v6811_v28  ;;  %v3879_v41 = vpop.f32.mrb[36].mxu1  ;;  %v8704_v39 = vld [vmem:[#allocation55_spill] sm:$0xff] }
 0x17a   : > { %3395 = vmatmul.mubr.f32.gmra.mrb[42].mxu0 %v8700_v24  ;;  %4454 = vmatprep.subr.bf16.mxu1 %v8154_v25  ;;  %v3880_v47 = vpop.f32.mrb[37].mxu1 }
 0x17b   : > { %3400 = vmatprep.mubr.f32.mxu0 %v8701_v21  ;;  %4660 = vmatpush1.bf16.msra.mxu0 %v8693_v35  ;;  %v3881_v7 = vadd.f32 %v3880_v47, %v3879_v41  ;;  %v8708_v47 = vld [vmem:[#allocation98_spill] sm:$0xff] }
 0x17c   : > { %1964 = vmatmul.mubr.f32.gmra.mrb[142].mxu1 %v8702_v12  ;;  %4661 = vmatprep.subr.bf16.mxu0 %v8154_v25  ;;  %v8707_v12 = vld [vmem:[#allocation88_spill] sm:$0xff] }
 0x17d   : > { %1969 = vmatprep.mubr.f32.mxu1 %v8703_v44  ;;  %4456 = vmatpush1.bf16.msra.mxu1 %v8704_v39  ;;  %v7171_v28 = vadd.f32 %v3881_v7, %v6831_v30  ;;  %v3882_v10 = vpop.f32.mrb[38].mxu1  ;;  %v8709_v44 = vld [vmem:[#allocation29_spill] sm:$0xff] }
 0x17e   : > { %3402 = vmatmul.mubr.f32.gmra.mrb[44].mxu0 %v8705_v22  ;;  %4457 = vmatprep.subr.bf16.mxu1 %v8154_v25  ;;  %v3883_v35 = vpop.f32.mrb[39].mxu1 }
 0x17f   : > { %3407 = vmatprep.mubr.f32.mxu0 %v8706_v18  ;;  %4663 = vmatpush1.bf16.msra.mxu0 %v8699_v1  ;;  %v3884_v41 = vadd.f32 %v3883_v35, %v3882_v10  ;;  %v8713_v35 = vld [vmem:[#allocation104_spill] sm:$0xff] }
 0x180   : > { %1971 = vmatmul.mubr.f32.gmra.mrb[144].mxu1 %v8707_v12  ;;  %4664 = vmatprep.subr.bf16.mxu0 %v8154_v25  ;;  %v8712_v12 = vld [vmem:[#allocation101_spill] sm:$0xff] }
 0x181   : > { %1976 = vmatprep.mubr.f32.mxu1 %v8708_v47  ;;  %4459 = vmatpush1.bf16.msra.mxu1 %v8709_v44  ;;  %v7182_v30 = vadd.f32 %v3884_v41, %v6865_v51  ;;  %v3885_v7 = vpop.f32.mrb[40].mxu1  ;;  %v8714_v47 = vld [vmem:[#allocation30_spill] sm:$0xff] }
 0x182   : > { %3409 = vmatmul.mubr.f32.gmra.mrb[46].mxu0 %v8710_v61  ;;  %4460 = vmatprep.subr.bf16.mxu1 %v8154_v25  ;;  %v3886_v1 = vpop.f32.mrb[41].mxu1  ;;  %v8715_v61 = vld [vmem:[#allocation129_spill] sm:$0xff] }
 0x183   : > { %3414 = vmatprep.mubr.f32.mxu0 %v8711_v63  ;;  %4666 = vmatpush1.bf16.msra.mxu0 %v8704_v39  ;;  %v3887_v10 = vadd.f32 %v3886_v1, %v3885_v7  ;;  %v8716_v63 = vld [vmem:[#allocation132_spill] sm:$0xff] }
 0x184   : > { %1978 = vmatmul.mubr.f32.gmra.mrb[146].mxu1 %v8712_v12  ;;  %4667 = vmatprep.subr.bf16.mxu0 %v8154_v25  ;;  %v8717_v12 = vld [vmem:[#allocation105_spill] sm:$0xff]  ;;  %v8718_v1 = vld [vmem:[#allocation112_spill] sm:$0xff] }
 0x185   : > { %1983 = vmatprep.mubr.f32.mxu1 %v8713_v35  ;;  %4462 = vmatpush1.bf16.msra.mxu1 %v8714_v47  ;;  %v7193_v51 = vadd.f32 %v3887_v10, %v6886_v2  ;;  %v3888_v41 = vpop.f32.mrb[42].mxu1  ;;  %v8719_v35 = vld [vmem:[#allocation111_spill] sm:$0xff] }
 0x186   : > { %3416 = vmatmul.mubr.f32.gmra.mrb[48].mxu0 %v8715_v61  ;;  %4463 = vmatprep.subr.bf16.mxu1 %v8154_v25  ;;  %v3889_v39 = vpop.f32.mrb[43].mxu1  ;;  %v8720_v61 = vld [vmem:[#allocation2_spill] sm:$0xff] }
 0x187   : > { %3421 = vmatprep.mubr.f32.mxu0 %v8716_v63  ;;  %4669 = vmatpush1.bf16.msra.mxu0 %v8709_v44  ;;  %v3890_v7 = vadd.f32 %v3889_v39, %v3888_v41  ;;  %v8721_v63 = vld [vmem:[#allocation157_spill] sm:$0xff]  ;;  %v8723_v39 = vld [vmem:[#allocation119_spill] sm:$0xff] }
 0x188   : > { %1985 = vmatmul.mubr.f32.gmra.mrb[148].mxu1 %v8717_v12  ;;  %4670 = vmatprep.subr.bf16.mxu0 %v8154_v25  ;;  %v8722_v12 = vld [vmem:[#allocation118_spill] sm:$0xff] }
 0x189   : > { %1990 = vmatprep.mubr.f32.mxu1 %v8718_v1  ;;  %4465 = vmatpush1.bf16.msra.mxu1 %v8719_v35  ;;  %v7204_v2 = vadd.f32 %v3890_v7, %v6925_v9  ;;  %v3891_v10 = vpop.f32.mrb[44].mxu1  ;;  %v8724_v1 = vld [vmem:[#allocation35_spill] sm:$0xff] }
 0x18a   : > { %3423 = vmatmul.mubr.f32.gmra.mrb[50].mxu0 %v8720_v61  ;;  %4466 = vmatprep.subr.bf16.mxu1 %v8154_v25  ;;  %v3892_v44 = vpop.f32.mrb[45].mxu1  ;;  %v8725_v61 = vld [vmem:[#allocation158_spill] sm:$0xff] }
 0x18b   : > { %3428 = vmatprep.mubr.f32.mxu0 %v8721_v63  ;;  %4672 = vmatpush1.bf16.msra.mxu0 %v8714_v47  ;;  %v3893_v41 = vadd.f32 %v3892_v44, %v3891_v10  ;;  %v8726_v63 = vld [vmem:[#allocation159_spill] sm:$0xff]  ;;  %v8728_v44 = vld [vmem:[#allocation128_spill] sm:$0xff] }
 0x18c   : > { %1992 = vmatmul.mubr.f32.gmra.mrb[150].mxu1 %v8722_v12  ;;  %4673 = vmatprep.subr.bf16.mxu0 %v8154_v25  ;;  %v8727_v12 = vld [vmem:[#allocation122_spill] sm:$0xff] }
 0x18d   : > { %1997 = vmatprep.mubr.f32.mxu1 %v8723_v39  ;;  %4468 = vmatpush1.bf16.msra.mxu1 %v8724_v1  ;;  %v7215_v9 = vadd.f32 %v3893_v41, %v6946_v16  ;;  %v8729_v39 = vld [vmem:[#allocation113_spill] sm:$0xff] }
 0x18e   : > { %3430 = vmatmul.mubr.f32.gmra.mrb[52].mxu0 %v8725_v61  ;;  %4469 = vmatprep.subr.bf16.mxu1 %v8154_v25  ;;  %v3894_v7 = vpop.f32.mrb[46].mxu1  ;;  %v8730_v61 = vld [vmem:[#allocation162_spill] sm:$0xff] }
 0x18f   : > { %3435 = vmatprep.mubr.f32.mxu0 %v8726_v63  ;;  %4675 = vmatpush1.bf16.msra.mxu0 %v8719_v35  ;;  %v3895_v47 = vpop.f32.mrb[47].mxu1  ;;  %v8732_v63 = vld [vmem:[#allocation163_spill] sm:$0xff] }
 0x190   : > { %1999 = vmatmul.mubr.f32.gmra.mrb[152].mxu1 %v8727_v12  ;;  %4676 = vmatprep.subr.bf16.mxu0 %v8154_v25  ;;  %v3896_v10 = vadd.f32 %v3895_v47, %v3894_v7  ;;  %v8733_v12 = vld [vmem:[#allocation131_spill] sm:$0xff]  ;;  %v8734_v47 = vld [vmem:[#allocation134_spill] sm:$0xff] }
 0x191   : > { %2004 = vmatprep.mubr.f32.mxu1 %v8728_v44  ;;  %4471 = vmatpush1.bf16.msra.mxu1 %v8729_v39  ;;  %v8735_v44 = vld [vmem:[#allocation114_spill] sm:$0xff] }
 0x192   : > { %3437 = vmatmul.mubr.f32.gmra.mrb[54].mxu0 %v8730_v61  ;;  %4472 = vmatprep.subr.bf16.mxu1 %v8154_v25  ;;  %v7226_v16 = vadd.f32 %v3896_v10, %v6980_v20  ;;  %v3897_v41 = vpop.f32.mrb[48].mxu1  ;;  %v8736_v61 = vand.u32 4294901760, %v6513_v11  ;;  %v8737_v10 = vld [vmem:[#allocation166_spill] sm:$0xff] }
 0x193   : > { %3442 = vmatprep.mubr.f32.mxu0 %v8732_v63  ;;  %4678 = vmatpush1.bf16.msra.mxu0 %v8724_v1  ;;  %v3898_v35 = vpop.f32.mrb[49].mxu1 }
 0x194   : > { %8731 = vst [vmem:[#allocation121_spill] sm:$0xff] %v7226_v16  ;;  %2006 = vmatmul.mubr.f32.gmra.mrb[154].mxu1 %v8733_v12  ;;  %4679 = vmatprep.subr.bf16.mxu0 %v8154_v25  ;;  %v3899_v7 = vadd.f32 %v3898_v35, %v3897_v41  ;;  %v2120_v20 = vsub.f32 %v6513_v11, %v8736_v61  ;;  %v8739_v16 = vld [vmem:[#allocation167_spill] sm:$0xff]  ;;  %v8741_v35 = vand.u32 4294901760, %v6521_v59  ;;  %v8742_v61 = vld [vmem:[#allocation142_spill] sm:$0xff] }
 0x195   : > { %2011 = vmatprep.mubr.f32.mxu1 %v8734_v47  ;;  %4474 = vmatpush1.bf16.msra.mxu1 %v8735_v44  ;;  %v8740_v41 = vld [vmem:[#allocation135_spill] sm:$0xff] }
 0x196   : > { %3444 = vmatmul.mubr.f32.gmra.mrb[56].mxu0 %v8737_v10  ;;  %v7239_v63 = vadd.f32 %v3899_v7, %v6997_v52  ;;  %v3900_v1 = vpop.f32.mrb[50].mxu1  ;;  %v2126_v47 = vsub.f32 %v6521_v59, %v8741_v35  ;;  %v2121_v10 = vand.u32 4294901760, %v2120_v20  ;;  %v8743_v52 = vand.u32 4294901760, %v6533_v32 }
 0x197   : > { %3449 = vmatprep.mubr.f32.mxu0 %v8739_v16  ;;  %4681 = vmatpush1.bf16.msra.mxu0 %v8729_v39  ;;  %v3901_v12 = vpop.f32.mrb[51].mxu1  ;;  %v8744_v16 = vld [vmem:[#allocation168_spill] sm:$0xff]  ;;  %v8748_v20 = vand.u32 4294901760, %v6541_v23 }
 0x198   : > { %8738 = vst [vmem:[#allocation160_spill] sm:$0xff] %v7239_v63  ;;  %2013 = vmatmul.mubr.f32.gmra.mrb[156].mxu1 %v8740_v41  ;;  %4682 = vmatprep.subr.bf16.mxu0 %v8154_v25  ;;  %v3902_v11 = vadd.f32 %v3901_v12, %v3900_v1  ;;  %v2135_v7 = vsub.f32 %v6533_v32, %v8743_v52  ;;  %v8746_v63 = vld [vmem:[#allocation169_spill] sm:$0xff]  ;;  %v8747_v25 = vld [vmem:[#allocation143_spill] sm:$0xff]  ;;  %v2127_v1 = vand.u32 4294901760, %v2126_v47 }
 0x199   : > { %2018 = vmatprep.mubr.f32.mxu1 %v8742_v61  ;;  %v2141_v12 = vsub.f32 %v6541_v23, %v8748_v20  ;;  %v8749_v61 = vand.u32 4294901760, %v6554_v62 }
 0x19a   : > { %3451 = vmatmul.mubr.f32.gmra.mrb[58].mxu0 %v8744_v16  ;;  %v7254_v39 = vadd.f32 %v3902_v11, %v7030_v37  ;;  %v3903_v41 = vpop.f32.mrb[52].mxu1  ;;  %v2136_v32 = vand.u32 4294901760, %v2135_v7  ;;  %v8750_v11 = vld [vmem:[#allocation170_spill] sm:$0xff] }
 0x19b   : > { %3456 = vmatprep.mubr.f32.mxu0 %v8746_v63  ;;  %4684 = vmatpush1.bf16.msra.mxu0 %v8735_v44  ;;  %v3904_v59 = vpop.f32.mrb[53].mxu1  ;;  %v2150_v37 = vsub.f32 %v6554_v62, %v8749_v61  ;;  %v8751_v63 = vld [vmem:[#allocation171_spill] sm:$0xff]  ;;  %v8756_v61 = vld [vmem:[#allocation173_spill] sm:$0xff] }
 0x19c   : > { %8745 = vst [vmem:[#allocation161_spill] sm:$0xff] %v7254_v39  ;;  %2020 = vmatmul.mubr.f32.gmra.mrb[158].mxu1 %v8747_v25  ;;  %v3905_v35 = vadd.f32 %v3904_v59, %v3903_v41  ;;  %v2142_v25 = vand.u32 4294901760, %v2141_v12  ;;  %v8752_v39 = vld [vmem:[#allocation40_spill] sm:$0xff]  ;;  %v8754_v59 = vld [vmem:[#allocation43_spill] sm:$0xff] }
 0x19d   : > { %2122 = vmatprep.mubr.f32.mxu1 %v2121_v10  ;;  %v8753_v23 = vand.u32 4294901760, %v8752_v39  ;;  %v2151_v41 = vand.u32 4294901760, %v2150_v37  ;;  %v8755_v62 = vand.u32 4294901760, %v8754_v59 }
 0x19e   : > { %3458 = vmatmul.mubr.f32.gmra.mrb[60].mxu0 %v8750_v11  ;;  %v7267_v52 = vadd.f32 %v3905_v35, %v7047_v3  ;;  %v3906_v44 = vpop.f32.mrb[54].mxu1 }
 0x19f   : > { %3463 = vmatprep.mubr.f32.mxu0 %v8751_v63  ;;  %v3907_v47 = vpop.f32.mrb[55].mxu1  ;;  %v2156_v10 = vsub.f32 %v8752_v39, %v8753_v23  ;;  %v2165_v20 = vsub.f32 %v8754_v59, %v8755_v62  ;;  %v8757_v39 = vand.u32 4294901760, %v8564_v56 }
 0x1a0   : > { %2128 = vmatmul.mubr.f32.vlgmr.msra.gmra.mrb[160].mxu1 %v2127_v1  ;;  %v3908_v7 = vadd.f32 %v3907_v47, %v3906_v44  ;;  %v8758_v47 = vand.u32 4294901760, %v6592_v60 }
 0x1a1   : > { %2137 = vmatprep.mubr.f32.mxu1 %v2136_v32  ;;  %v2157_v12 = vand.u32 4294901760, %v2156_v10  ;;  %v2171_v32 = vsub.f32 %v8564_v56, %v8757_v39  ;;  %v2166_v44 = vand.u32 4294901760, %v2165_v20  ;;  %v8759_v56 = vand.u32 4294901760, %v6607_v42 }
 0x1a2   : > { %3465 = vmatmul.mubr.f32.gmra.mrb[62].mxu0 %v8756_v61  ;;  %v7278_v3 = vadd.f32 %v3908_v7, %v7079_v53  ;;  %v3909_v35 = vpop.f32.mrb[56].mxu1  ;;  %v2180_v23 = vsub.f32 %v6592_v60, %v8758_v47  ;;  %v8760_v60 = vand.u32 4294901760, %v6614_v34 }
 0x1a3   : > { %3563 = vmatprep.mubr.f32.mxu0 %v8668_v46  ;;  %v3910_v1 = vpop.f32.mrb[57].mxu1  ;;  %v2172_v10 = vand.u32 4294901760, %v2171_v32  ;;  %v2186_v7 = vsub.f32 %v6607_v42, %v8759_v56  ;;  %v8761_v42 = vand.u32 4294901760, %v6629_v29 }
 0x1a4   : > { %2143 = vmatmul.mubr.f32.gmra.mrb[162].mxu1 %v2142_v25  ;;  %v3911_v37 = vadd.f32 %v3910_v1, %v3909_v35  ;;  %v2181_v59 = vand.u32 4294901760, %v2180_v23 }
 0x1a5   : > { %2152 = vmatprep.mubr.f32.mxu1 %v2151_v41  ;;  %v2187_v20 = vand.u32 4294901760, %v2186_v7  ;;  %v2201_v35 = vsub.f32 %v6629_v29, %v8761_v42  ;;  %v8763_v29 = vand.u32 4294901760, %v6651_v13 }
 0x1a6   : > { %3565 = vmatmul.mubr.f32.vlgmr.msra.gmra.mrb[32].mxu0 %v8673_v27  ;;  %v7289_v53 = vadd.f32 %v3911_v37, %v7090_v14  ;;  %v3912_v46 = vpop.f32.mrb[58].mxu1  ;;  %v2195_v27 = vsub.f32 %v6614_v34, %v8760_v60  ;;  %v8762_v34 = vand.u32 4294901760, %v6636_v54 }
 0x1a7   : > { %3570 = vmatprep.mubr.f32.mxu0 %v8674_v55  ;;  %v3913_v25 = vpop.f32.mrb[59].mxu1  ;;  %v2202_v32 = vand.u32 4294901760, %v2201_v35  ;;  %v2216_v37 = vsub.f32 %v6651_v13, %v8763_v29  ;;  %v8765_v13 = vand.u32 4294901760, %v6673_v4  ;;  %v8775_v29 = vld [vmem:[#allocation127_spill] sm:$0xff] }
 0x1a8   : > { %2158 = vmatmul.mubr.f32.gmra.mrb[164].mxu1 %v2157_v12  ;;  %v3914_v41 = vadd.f32 %v3913_v25, %v3912_v46  ;;  %v2196_v12 = vand.u32 4294901760, %v2195_v27 }
 0x1a9   : > { %2167 = vmatprep.mubr.f32.mxu1 %v2166_v44  ;;  %v2217_v46 = vand.u32 4294901760, %v2216_v37  ;;  %v2231_v25 = vsub.f32 %v6673_v4, %v8765_v13  ;;  %v8767_v4 = vand.u32 4294901760, %v6694_v49 }
 0x1aa   : > { %3572 = vmatmul.mubr.f32.gmra.mrb[34].mxu0 %v8679_v15  ;;  %v7300_v14 = vadd.f32 %v3914_v41, %v7107_v38  ;;  %v3915_v55 = vpop.f32.mrb[60].mxu1  ;;  %v2210_v15 = vsub.f32 %v6636_v54, %v8762_v34  ;;  %v8764_v54 = vand.u32 4294901760, %v6658_v50 }
 0x1ab   : > { %3577 = vmatprep.mubr.f32.mxu0 %v8680_v31  ;;  %v3916_v62 = vpop.f32.mrb[61].mxu1  ;;  %v2232_v41 = vand.u32 4294901760, %v2231_v25  ;;  %v8780_v25 = vld [vmem:[#allocation129_spill] sm:$0xff] }
 0x1ac   : > { %2173 = vmatmul.mubr.f32.gmra.mrb[166].mxu1 %v2172_v10  ;;  %v3917_v1 = vadd.f32 %v3916_v62, %v3915_v55  ;;  %v2211_v47 = vand.u32 4294901760, %v2210_v15 }
 0x1ad   : > { %2182 = vmatprep.mubr.f32.mxu1 %v2181_v59  ;;  %v2246_v59 = vsub.f32 %v6694_v49, %v8767_v4  ;;  %v8769_v49 = vand.u32 4294901760, %v6708_v33 }
 0x1ae   : > { %3579 = vmatmul.mubr.f32.gmra.mrb[36].mxu0 %v8684_v57  ;;  %v7311_v38 = vadd.f32 %v3917_v1, %v7119_v40  ;;  %v3918_v31 = vpop.f32.mrb[62].mxu1  ;;  %v2225_v57 = vsub.f32 %v6658_v50, %v8764_v54  ;;  %v8766_v50 = vand.u32 4294901760, %v6680_v36 }
 0x1af   : > { %3584 = vmatprep.mubr.f32.mxu0 %v8685_v45  ;;  %v3919_v39 = vpop.f32.mrb[63].mxu1  ;;  %v2247_v62 = vand.u32 4294901760, %v2246_v59 }
 0x1b0   : > { %2188 = vmatmul.mubr.f32.gmra.mrb[168].mxu1 %v2187_v20  ;;  %v3920_v44 = vadd.f32 %v3919_v39, %v3918_v31  ;;  %v2226_v56 = vand.u32 4294901760, %v2225_v57  ;;  %v2261_v20 = vsub.f32 %v6708_v33, %v8769_v49  ;;  %v8771_v33 = vand.u32 4294901760, %v6722_v19  ;;  %v8772_v39 = vld [vmem:[#allocation153_spill] sm:$0xff] }
 0x1b1   : > { %2197 = vmatprep.mubr.f32.mxu1 %v2196_v12 }
 0x1b2   : > { %3586 = vmatmul.mubr.f32.gmra.mrb[38].mxu0 %v8689_v17  ;;  %v7322_v40 = vadd.f32 %v3920_v44, %v7134_v43  ;;  %v3953_v45 = vpop.f32.mrb[64].mxu1  ;;  %v2240_v17 = vsub.f32 %v6680_v36, %v8766_v50  ;;  %v8768_v36 = vand.u32 4294901760, %v6700_v58  ;;  %v2262_v12 = vand.u32 4294901760, %v2261_v20  ;;  %v8788_v20 = vld [vmem:[#allocation69_spill] sm:$0xff] }
 0x1b3   : > { %3591 = vmatprep.mubr.f32.mxu0 %v8690_v0  ;;  %v3954_v23 = vpop.f32.mrb[65].mxu1  ;;  %v2276_v34 = vsub.f32 %v6722_v19, %v8771_v33  ;;  %v8792_v33 = vld [vmem:[#allocation158_spill] sm:$0xff] }
 0x1b4   : > { %2203 = vmatmul.mubr.f32.gmra.mrb[170].mxu1 %v2202_v32  ;;  %v3955_v10 = vadd.f32 %v3954_v23, %v3953_v45  ;;  %v2241_v27 = vand.u32 4294901760, %v2240_v17  ;;  %v8774_v32 = vld [vmem:[#allocation126_spill] sm:$0xff]  ;;  %v8778_v23 = vld [vmem:[#allocation67_spill] sm:$0xff] }
 0x1b5   : > { %2212 = vmatprep.mubr.f32.mxu1 %v2211_v47  ;;  %v2277_v44 = vand.u32 4294901760, %v2276_v34  ;;  %v8776_v47 = vld [vmem:[#allocation66_spill] sm:$0xff] }
 0x1b6   : > { %3593 = vmatmul.mubr.f32.gmra.mrb[40].mxu0 %v8694_v8  ;;  %v7333_v43 = vadd.f32 %v3955_v10, %v7149_v26  ;;  %v3956_v0 = vpop.f32.mrb[66].mxu1  ;;  %v2255_v8 = vsub.f32 %v6700_v58, %v8768_v36  ;;  %v8770_v58 = vand.u32 4294901760, %v6714_v5  ;;  %v8777_v19 = vand.u32 4294901760, %v8776_v47 }
 0x1b7   : > { %3598 = vmatprep.mubr.f32.mxu0 %v8696_v6  ;;  %v3957_v7 = vpop.f32.mrb[67].mxu1 }
 0x1b8   : > { %2218 = vmatmul.mubr.f32.gmra.mrb[172].mxu1 %v2217_v46  ;;  %v3958_v60 = vadd.f32 %v3957_v7, %v3956_v0  ;;  %v2256_v35 = vand.u32 4294901760, %v2255_v8  ;;  %v2291_v54 = vsub.f32 %v8776_v47, %v8777_v19  ;;  %v8779_v46 = vand.u32 4294901760, %v8778_v23  ;;  %v8782_v0 = vld [vmem:[#allocation155_spill] sm:$0xff]  ;;  %v8786_v8 = vld [vmem:[#allocation2_spill] sm:$0xff] }
 0x1b9   : > { %2227 = vmatprep.mubr.f32.mxu1 %v2226_v56  ;;  %v8781_v56 = vld [vmem:[#allocation132_spill] sm:$0xff]  ;;  %v8783_v7 = vand.u32 4294901760, %v8782_v0  ;;  %v8798_v19 = vld [vmem:[#allocation162_spill] sm:$0xff] }
 0x1ba   : > { %3600 = vmatmul.mubr.f32.gmra.mrb[42].mxu0 %v8700_v24  ;;  %v7344_v26 = vadd.f32 %v3958_v60, %v7160_v48  ;;  %v3959_v6 = vpop.f32.mrb[68].mxu1  ;;  %v2270_v24 = vsub.f32 %v6714_v5, %v8770_v58  ;;  %v8773_v5 = vand.u32 4294901760, %v8772_v39  ;;  %v2300_v13 = vsub.f32 %v8778_v23, %v8779_v46  ;;  %v8784_v60 = vld [vmem:[#allocation156_spill] sm:$0xff] }
 0x1bb   : > { %3605 = vmatprep.mubr.f32.mxu0 %v8701_v21  ;;  %v3960_v55 = vpop.f32.mrb[69].mxu1  ;;  %v2292_v17 = vand.u32 4294901760, %v2291_v54 }
 0x1bc   : > { %2233 = vmatmul.mubr.f32.gmra.mrb[174].mxu1 %v2232_v41  ;;  %v3961_v42 = vadd.f32 %v3960_v55, %v3959_v6  ;;  %v2271_v31 = vand.u32 4294901760, %v2270_v24  ;;  %v2306_v41 = vsub.f32 %v8782_v0, %v8783_v7  ;;  %v2301_v59 = vand.u32 4294901760, %v2300_v13  ;;  %v8787_v55 = vld [vmem:[#allocation157_spill] sm:$0xff]  ;;  %v8801_v13 = vld [vmem:[#allocation83_spill] sm:$0xff]  ;;  %v8804_v0 = vld [vmem:[#allocation160_spill] sm:$0xff] }
 0x1bd   : > { %2242 = vmatprep.mubr.f32.mxu1 %v2241_v27  ;;  %v8785_v27 = vand.u32 4294901760, %v8784_v60 }
 0x1be   : > { %3607 = vmatmul.mubr.f32.gmra.mrb[44].mxu0 %v8705_v22  ;;  %v7355_v48 = vadd.f32 %v3961_v42, %v7171_v28  ;;  %v3962_v21 = vpop.f32.mrb[70].mxu1  ;;  %v2285_v22 = vsub.f32 %v8772_v39, %v8773_v5  ;;  %v2307_v49 = vand.u32 4294901760, %v2306_v41  ;;  %v8789_v42 = vand.u32 4294901760, %v8788_v20  ;;  %v8794_v5 = vld [vmem:[#allocation23_spill] sm:$0xff] }
 0x1bf   : > { %3612 = vmatprep.mubr.f32.mxu0 %v8706_v18  ;;  %v3963_v1 = vpop.f32.mrb[71].mxu1  ;;  %v2315_v36 = vsub.f32 %v8784_v60, %v8785_v27 }
 0x1c0   : > { %2248 = vmatmul.mubr.f32.gmra.mrb[176].mxu1 %v2247_v62  ;;  %v3964_v15 = vadd.f32 %v3963_v1, %v3962_v21  ;;  %v2286_v45 = vand.u32 4294901760, %v2285_v22  ;;  %v8790_v21 = vld [vmem:[#allocation73_spill] sm:$0xff]  ;;  %v8795_v22 = vand.u32 4294901760, %v8794_v5 }
 0x1c1   : > { %2257 = vmatprep.mubr.f32.mxu1 %v2256_v35  ;;  %v2321_v35 = vsub.f32 %v8788_v20, %v8789_v42  ;;  %v2316_v24 = vand.u32 4294901760, %v2315_v36  ;;  %v8791_v1 = vand.u32 4294901760, %v8790_v21  ;;  %v8806_v36 = vld [vmem:[#allocation161_spill] sm:$0xff] }
 0x1c2   : > { %3614 = vmatmul.mubr.f32.gmra.mrb[46].mxu0 %v8774_v32  ;;  %v7366_v28 = vadd.f32 %v3964_v15, %v7182_v30  ;;  %v3965_v18 = vpop.f32.mrb[72].mxu1  ;;  %v8793_v15 = vld [vmem:[#allocation159_spill] sm:$0xff]  ;;  %v2336_v32 = vsub.f32 %v8794_v5, %v8795_v22 }
 0x1c3   : > { %3619 = vmatprep.mubr.f32.mxu0 %v8775_v29  ;;  %v3966_v37 = vpop.f32.mrb[73].mxu1  ;;  %v2322_v39 = vand.u32 4294901760, %v2321_v35 }
 0x1c4   : > { %2263 = vmatmul.mubr.f32.gmra.mrb[178].mxu1 %v2262_v12  ;;  %v3967_v57 = vadd.f32 %v3966_v37, %v3965_v18  ;;  %v2330_v12 = vsub.f32 %v8790_v21, %v8791_v1  ;;  %v8796_v37 = vld [vmem:[#allocation22_spill] sm:$0xff]  ;;  %v2337_v46 = vand.u32 4294901760, %v2336_v32 }
 0x1c5   : > { %2272 = vmatprep.mubr.f32.mxu1 %v2271_v31 }
 0x1c6   : > { %3621 = vmatmul.mubr.f32.gmra.mrb[48].mxu0 %v8780_v25  ;;  %v7377_v30 = vadd.f32 %v3967_v57, %v7193_v51  ;;  %v3968_v10 = vpop.f32.mrb[74].mxu1  ;;  %v2331_v29 = vand.u32 4294901760, %v2330_v12  ;;  %v8802_v25 = vand.u32 4294901760, %v8801_v13 }
 0x1c7   : > { %3626 = vmatprep.mubr.f32.mxu0 %v8781_v56  ;;  %v3969_v50 = vpop.f32.mrb[75].mxu1 }
 0x1c8   : > { %2278 = vmatmul.mubr.f32.gmra.mrb[180].mxu1 %v2277_v44  ;;  %v3970_v4 = vadd.f32 %v3969_v50, %v3968_v10  ;;  %v8797_v44 = vand.u32 4294901760, %v8796_v37  ;;  %v2351_v10 = vsub.f32 %v8801_v13, %v8802_v25 }
 0x1c9   : > { %2287 = vmatprep.mubr.f32.mxu1 %v2286_v45  ;;  %v8800_v45 = vld [vmem:[#allocation163_spill] sm:$0xff] }
 0x1ca   : > { %3628 = vmatmul.mubr.f32.gmra.mrb[50].mxu0 %v8786_v8  ;;  %v7388_v51 = vadd.f32 %v3970_v4, %v7204_v2  ;;  %v3971_v6 = vpop.f32.mrb[76].mxu1  ;;  %v2345_v47 = vsub.f32 %v8796_v37, %v8797_v44  ;;  %v8805_v4 = vld [vmem:[#allocation167_spill] sm:$0xff]  ;;  %v2352_v60 = vand.u32 4294901760, %v2351_v10 }
 0x1cb   : > { %3633 = vmatprep.mubr.f32.mxu0 %v8787_v55  ;;  %v3972_v62 = vpop.f32.mrb[77].mxu1  ;;  %v8807_v55 = vld [vmem:[#allocation169_spill] sm:$0xff] }
 0x1cc   : > { %2293 = vmatmul.mubr.f32.gmra.mrb[182].mxu1 %v2292_v17  ;;  %v3973_v58 = vadd.f32 %v3972_v62, %v3971_v6  ;;  %v2346_v50 = vand.u32 4294901760, %v2345_v47  ;;  %v8803_v17 = vld [vmem:[#allocation166_spill] sm:$0xff] }
 0x1cd   : > { %2302 = vmatprep.mubr.f32.mxu1 %v2301_v59  ;;  %v8808_v47 = vld [vmem:[#allocation82_spill] sm:$0xff] }
 0x1ce   : > { %3635 = vmatmul.mubr.f32.gmra.mrb[52].mxu0 %v8792_v33  ;;  %v7399_v2 = vadd.f32 %v3973_v58, %v7215_v9  ;;  %v3974_v34 = vpop.f32.mrb[78].mxu1  ;;  %v8799_v9 = vld [vmem:[#allocation121_spill] sm:$0xff] }
 0x1cf   : > { %3640 = vmatprep.mubr.f32.mxu0 %v8793_v15  ;;  %v3975_v31 = vpop.f32.mrb[79].mxu1 }
 0x1d0   : > { %2308 = vmatmul.mubr.f32.gmra.mrb[184].mxu1 %v2307_v49  ;;  %v3976_v18 = vadd.f32 %v3975_v31, %v3974_v34 }
 0x1d1   : > { %2317 = vmatprep.mubr.f32.mxu1 %v2316_v24 }
 0x1d2   : > { %3642 = vmatmul.mubr.f32.gmra.mrb[54].mxu0 %v8798_v19  ;;  %v7410_v54 = vadd.f32 %v3976_v18, %v8799_v9  ;;  %v3977_v57 = vpop.f32.mrb[80].mxu1 }
 0x1d3   : > { %3647 = vmatprep.mubr.f32.mxu0 %v8800_v45  ;;  %v3978_v23 = vpop.f32.mrb[81].mxu1 }
 0x1d4   : > { %2323 = vmatmul.mubr.f32.gmra.mrb[186].mxu1 %v2322_v39  ;;  %v3979_v56 = vadd.f32 %v3978_v23, %v3977_v57  ;;  %v8809_v23 = vld [vmem:[#allocation79_spill] sm:$0xff] }
 0x1d5   : > { %2332 = vmatprep.mubr.f32.mxu1 %v2331_v29 }
 0x1d6   : > { %3649 = vmatmul.mubr.f32.gmra.mrb[56].mxu0 %v8803_v17  ;;  %v7418_v7 = vadd.f32 %v3979_v56, %v8804_v0  ;;  %v3980_v41 = vpop.f32.mrb[82].mxu1 }
 0x1d7   : > { %3654 = vmatprep.mubr.f32.mxu0 %v8805_v4  ;;  %v3981_v59 = vpop.f32.mrb[83].mxu1 }
 0x1d8   : > { %2338 = vmatmul.mubr.f32.gmra.mrb[188].mxu1 %v2337_v46  ;;  %v3982_v27 = vadd.f32 %v3981_v59, %v3980_v41 }
 0x1d9   : > { %2347 = vmatprep.mubr.f32.mxu1 %v2346_v50 }
 0x1da   : > { %3656 = vmatmul.mubr.f32.gmra.mrb[58].mxu0 %v8744_v16  ;;  %v7423_v8 = vadd.f32 %v3982_v27, %v8806_v36  ;;  %v3983_v6 = vpop.f32.mrb[84].mxu1 }
 0x1db   : > { %3661 = vmatprep.mubr.f32.mxu0 %v8807_v55  ;;  %v3984_v62 = vpop.f32.mrb[85].mxu1 }
 0x1dc   : > { %2353 = vmatmul.mubr.f32.gmra.mrb[190].mxu1 %v2352_v60  ;;  %v3985_v49 = vadd.f32 %v3984_v62, %v3983_v6 }
 0x1de   : > { %3663 = vmatmul.mubr.f32.gmra.mrb[60].mxu0 %v8750_v11  ;;  %v7428_v20 = vadd.f32 %v3985_v49, %v7267_v52  ;;  %v3986_v42 = vpop.f32.mrb[86].mxu1 }
 0x1df   : > { %3668 = vmatprep.mubr.f32.mxu0 %v8751_v63  ;;  %v3987_v35 = vpop.f32.mrb[87].mxu1 }
 0x1e0   : > { %v3988_v58 = vadd.f32 %v3987_v35, %v3986_v42 }
 0x1e2   : > { %3670 = vmatmul.mubr.f32.gmra.mrb[62].mxu0 %v8756_v61  ;;  %v7433_v16 = vadd.f32 %v3988_v58, %v7278_v3  ;;  %v3989_v24 = vpop.f32.mrb[88].mxu1 }
 0x1e3   : > { %v3990_v21 = vpop.f32.mrb[89].mxu1 }
 0x1e4   : > { %v3991_v1 = vadd.f32 %v3990_v21, %v3989_v24 }
 0x1e6   : > { %v7436_v12 = vadd.f32 %v3991_v1, %v7289_v53  ;;  %v3992_v11 = vpop.f32.mrb[90].mxu1 }
 0x1e7   : > { %v3993_v33 = vpop.f32.mrb[91].mxu1 }
 0x1e8   : > { %v3994_v52 = vadd.f32 %v3993_v33, %v3992_v11 }
 0x1ea   : > { %v7439_v34 = vadd.f32 %v3994_v52, %v7300_v14  ;;  %v3995_v63 = vpop.f32.mrb[92].mxu1 }
 0x1eb   : > { %v3996_v15 = vpop.f32.mrb[93].mxu1 }
 0x1ec   : > { %v3997_v31 = vadd.f32 %v3996_v15, %v3995_v63 }
 0x1ee   : > { %v7442_v61 = vadd.f32 %v3997_v31, %v7311_v38  ;;  %v3998_v3 = vpop.f32.mrb[94].mxu1 }
 0x1ef   : > { %v3999_v39 = vpop.f32.mrb[95].mxu1 }
 0x1f0   : > { %v4000_v5 = vadd.f32 %v3999_v39, %v3998_v3 }
 0x1f2   : > { %v7445_v22 = vadd.f32 %v4000_v5, %v7322_v40  ;;  %v4033_v53 = vpop.f32.mrb[96].mxu1 }
 0x1f3   : > { %v4034_v32 = vpop.f32.mrb[97].mxu1 }
 0x1f4   : > { %v4035_v18 = vadd.f32 %v4034_v32, %v4033_v53 }
 0x1f6   : > { %v1375_v29 = vadd.f32 %v4035_v18, %v7333_v43  ;;  %v4036_v37 = vpop.f32.mrb[98].mxu1  ;;  %v8810_v43 = vld [vmem:[#allocation28_spill] sm:$0xff] }
 0x1f7   : > { %v4037_v14 = vpop.f32.mrb[99].mxu1 }
 0x1f8   : > { %v4038_v44 = vadd.f32 %v4037_v14, %v4036_v37  ;;  %v7449_v19 = vadd.f32 %v8808_v47, %v1375_v29 }
 0x1fa   : > { %v1386_v38 = vadd.f32 %v4038_v44, %v7344_v26  ;;  %v4039_v9 = vpop.f32.mrb[100].mxu1  ;;  %v8811_v26 = vld [vmem:[#allocation89_spill] sm:$0xff] }
 0x1fb   : > { %v4040_v57 = vpop.f32.mrb[101].mxu1 }
 0x1fc   : > { %v4041_v45 = vadd.f32 %v4040_v57, %v4039_v9  ;;  %v7453_v46 = vadd.f32 %v8809_v23, %v1386_v38 }
 0x1fe   : > { %v1397_v40 = vadd.f32 %v4041_v45, %v7355_v48  ;;  %v4042_v13 = vpop.f32.mrb[102].mxu1  ;;  %v8812_v48 = vld [vmem:[#allocation90_spill] sm:$0xff] }
 0x1ff   : > { %v4043_v25 = vpop.f32.mrb[103].mxu1 }
 0x200   : > { %v4044_v10 = vadd.f32 %v4043_v25, %v4042_v13  ;;  %v7457_v56 = vadd.f32 %v8810_v43, %v1397_v40 }
 0x202   : > { %v1408_v50 = vadd.f32 %v4044_v10, %v7366_v28  ;;  %v8813_v28 = vld [vmem:[#allocation91_spill] sm:$0xff] }
 0x203   : > { %v4045_v17 = vpop.f32.mrb[104].mxu1 }
 0x204   : > { %v4046_v0 = vpop.f32.mrb[105].mxu1  ;;  %v7461_v4 = vadd.f32 %v8811_v26, %v1408_v50 }
 0x205   : > { %v4047_v41 = vadd.f32 %v4046_v0, %v4045_v17 }
 0x207   : > { %v1419_v59 = vadd.f32 %v4047_v41, %v7377_v30  ;;  %v4048_v60 = vpop.f32.mrb[106].mxu1  ;;  %v8814_v30 = vld [vmem:[#allocation94_spill] sm:$0xff] }
 0x208   : > { %v4049_v27 = vpop.f32.mrb[107].mxu1 }
 0x209   : > { %v4050_v36 = vadd.f32 %v4049_v27, %v4048_v60  ;;  %v7465_v6 = vadd.f32 %v8812_v48, %v1419_v59 }
 0x20b   : > { %v1430_v55 = vadd.f32 %v4050_v36, %v7388_v51  ;;  %v4051_v62 = vpop.f32.mrb[108].mxu1  ;;  %v8815_v51 = vld [vmem:[#allocation99_spill] sm:$0xff] }
 0x20c   : > { %v4052_v49 = vpop.f32.mrb[109].mxu1 }
 0x20d   : > { %v4053_v42 = vadd.f32 %v4052_v49, %v4051_v62  ;;  %v7469_v35 = vadd.f32 %v8813_v28, %v1430_v55 }
 0x20f   : > { %v1441_v58 = vadd.f32 %v4053_v42, %v7399_v2  ;;  %v4054_v24 = vpop.f32.mrb[110].mxu1  ;;  %v8816_v2 = vld [vmem:[#allocation100_spill] sm:$0xff] }
 0x210   : > { %v4055_v21 = vpop.f32.mrb[111].mxu1 }
 0x211   : > { %v4056_v1 = vadd.f32 %v4055_v21, %v4054_v24  ;;  %v7473_v11 = vadd.f32 %v8814_v30, %v1441_v58 }
 0x213   : > { %v1452_v33 = vadd.f32 %v4056_v1, %v7410_v54  ;;  %v4057_v52 = vpop.f32.mrb[112].mxu1  ;;  %v8817_v54 = vld [vmem:[#allocation95_spill] sm:$0xff] }
 0x214   : > { %v4058_v63 = vpop.f32.mrb[113].mxu1 }
 0x215   : > { %v4059_v15 = vadd.f32 %v4058_v63, %v4057_v52  ;;  %v7477_v31 = vadd.f32 %v8815_v51, %v1452_v33 }
 0x217   : > { %v1463_v3 = vadd.f32 %v4059_v15, %v7418_v7  ;;  %v4060_v39 = vpop.f32.mrb[114].mxu1  ;;  %v8818_v7 = vld [vmem:[#allocation102_spill] sm:$0xff] }
 0x218   : > { %v4061_v5 = vpop.f32.mrb[115].mxu1 }
 0x219   : > { %v4062_v53 = vadd.f32 %v4061_v5, %v4060_v39  ;;  %v7481_v32 = vadd.f32 %v8816_v2, %v1463_v3 }
 0x21b   : > { %v1474_v18 = vadd.f32 %v4062_v53, %v7423_v8  ;;  %v4063_v29 = vpop.f32.mrb[116].mxu1  ;;  %v8819_v8 = vld [vmem:[#allocation103_spill] sm:$0xff] }
 0x21c   : > { %v4064_v37 = vpop.f32.mrb[117].mxu1 }
 0x21d   : > { %v4065_v14 = vadd.f32 %v4064_v37, %v4063_v29  ;;  %v7485_v44 = vadd.f32 %v8817_v54, %v1474_v18 }
 0x21f   : > { %v1485_v47 = vadd.f32 %v4065_v14, %v7428_v20  ;;  %v4066_v38 = vpop.f32.mrb[118].mxu1  ;;  %v8820_v20 = vld [vmem:[#allocation108_spill] sm:$0xff] }
 0x220   : > { %v4067_v9 = vpop.f32.mrb[119].mxu1 }
 0x221   : > { %v4068_v57 = vadd.f32 %v4067_v9, %v4066_v38  ;;  %v7489_v45 = vadd.f32 %v8818_v7, %v1485_v47 }
 0x223   : > { %v1496_v23 = vadd.f32 %v4068_v57, %v7433_v16  ;;  %v4069_v40 = vpop.f32.mrb[120].mxu1  ;;  %v8821_v16 = vld [vmem:[#allocation109_spill] sm:$0xff] }
 0x224   : > { %v4070_v13 = vpop.f32.mrb[121].mxu1 }
 0x225   : > { %v4071_v25 = vadd.f32 %v4070_v13, %v4069_v40  ;;  %v7493_v10 = vadd.f32 %v8819_v8, %v1496_v23 }
 0x227   : > { %v1507_v43 = vadd.f32 %v4071_v25, %v7436_v12  ;;  %v4072_v50 = vpop.f32.mrb[122].mxu1  ;;  %v8822_v12 = vld [vmem:[#allocation117_spill] sm:$0xff] }
 0x228   : > { %v4073_v17 = vpop.f32.mrb[123].mxu1 }
 0x229   : > { %v4074_v0 = vadd.f32 %v4073_v17, %v4072_v50  ;;  %v7497_v41 = vadd.f32 %v8820_v20, %v1507_v43 }
 0x22b   : > { %v1518_v26 = vadd.f32 %v4074_v0, %v7439_v34  ;;  %v4075_v59 = vpop.f32.mrb[124].mxu1  ;;  %v8823_v34 = vld [vmem:[#allocation120_spill] sm:$0xff] }
 0x22c   : > { %v4076_v60 = vpop.f32.mrb[125].mxu1 }
 0x22d   : > { %v4077_v27 = vadd.f32 %v4076_v60, %v4075_v59  ;;  %v7501_v36 = vadd.f32 %v8821_v16, %v1518_v26 }
 0x22f   : > { %v1529_v48 = vadd.f32 %v4077_v27, %v7442_v61  ;;  %v4078_v55 = vpop.f32.mrb[126].mxu1 }
 0x230   : > { %v4079_v62 = vpop.f32.mrb[127].mxu1 }
 0x231   : > { %v4080_v49 = vadd.f32 %v4079_v62, %v4078_v55  ;;  %v7505_v42 = vadd.f32 %v8822_v12, %v1529_v48 }
 0x233   : > { %v1540_v28 = vadd.f32 %v4080_v49, %v7445_v22  ;;  %v4193_v58 = vpop.f32.mrb[128].mxu1 }
 0x234   : > { %v4194_v24 = vpop.f32.mrb[129].mxu1 }
 0x235   : > { %v4195_v21 = vadd.f32 %v4194_v24, %v4193_v58  ;;  %v1813_v1 = vadd.f32 %v8823_v34, %v1540_v28 }
 0x237   : > { %v4196_v30 = vpop.f32.mrb[130].mxu1  ;;  %v1917_v33 = vadd.f32 %v4195_v21, %v7449_v19 }
 0x238   : > { %v4197_v52 = vpop.f32.mrb[131].mxu1 }
 0x239   : > { %v4198_v63 = vadd.f32 %v4197_v52, %v4196_v30 }
 0x23b   : > { %v4199_v15 = vpop.f32.mrb[132].mxu1  ;;  %v1924_v61 = vadd.f32 %v4198_v63, %v7453_v46 }
 0x23c   : > { %v4200_v51 = vpop.f32.mrb[133].mxu1 }
 0x23d   : > { %v4201_v3 = vadd.f32 %v4200_v51, %v4199_v15 }
 0x23f   : > { %v4202_v39 = vpop.f32.mrb[134].mxu1  ;;  %v7512_v5 = vadd.f32 %v4201_v3, %v7457_v56 }
 0x240   : > { %v4203_v22 = vpop.f32.mrb[135].mxu1 }
 0x241   : > { %v4204_v53 = vadd.f32 %v4203_v22, %v4202_v39 }
 0x243   : > { %v4205_v2 = vpop.f32.mrb[136].mxu1  ;;  %v7515_v18 = vadd.f32 %v4204_v53, %v7461_v4 }
 0x244   : > { %v4206_v29 = vpop.f32.mrb[137].mxu1 }
 0x245   : > { %v4207_v37 = vadd.f32 %v4206_v29, %v4205_v2 }
 0x247   : > { %v4208_v19 = vpop.f32.mrb[138].mxu1  ;;  %v7518_v14 = vadd.f32 %v4207_v37, %v7465_v6 }
 0x248   : > { %v4209_v54 = vpop.f32.mrb[139].mxu1 }
 0x249   : > { %v4210_v46 = vadd.f32 %v4209_v54, %v4208_v19 }
 0x24b   : > { %v4211_v47 = vpop.f32.mrb[140].mxu1  ;;  %v7521_v38 = vadd.f32 %v4210_v46, %v7469_v35 }
 0x24c   : > { %v4212_v56 = vpop.f32.mrb[141].mxu1 }
 0x24d   : > { %v4213_v9 = vadd.f32 %v4212_v56, %v4211_v47 }
 0x24f   : > { %v4214_v57 = vpop.f32.mrb[142].mxu1  ;;  %v7524_v7 = vadd.f32 %v4213_v9, %v7473_v11 }
 0x250   : > { %v4215_v4 = vpop.f32.mrb[143].mxu1 }
 0x251   : > { %v4216_v23 = vadd.f32 %v4215_v4, %v4214_v57 }
 0x253   : > { %v4217_v40 = vpop.f32.mrb[144].mxu1  ;;  %v7527_v13 = vadd.f32 %v4216_v23, %v7477_v31 }
 0x254   : > { %v4218_v6 = vpop.f32.mrb[145].mxu1 }
 0x255   : > { %v4219_v25 = vadd.f32 %v4218_v6, %v4217_v40 }
 0x257   : > { %v4220_v8 = vpop.f32.mrb[146].mxu1  ;;  %v7530_v43 = vadd.f32 %v4219_v25, %v7481_v32 }
 0x258   : > { %v4221_v35 = vpop.f32.mrb[147].mxu1 }
 0x259   : > { %v4222_v50 = vadd.f32 %v4221_v35, %v4220_v8 }
 0x25b   : > { %v4223_v17 = vpop.f32.mrb[148].mxu1  ;;  %v7533_v0 = vadd.f32 %v4222_v50, %v7485_v44 }
 0x25c   : > { %v4224_v11 = vpop.f32.mrb[149].mxu1 }
 0x25d   : > { %v4225_v20 = vadd.f32 %v4224_v11, %v4223_v17 }
 0x25f   : > { %v4226_v26 = vpop.f32.mrb[150].mxu1  ;;  %v7536_v59 = vadd.f32 %v4225_v20, %v7489_v45 }
 0x260   : > { %v4227_v31 = vpop.f32.mrb[151].mxu1 }
 0x261   : > { %v4228_v60 = vadd.f32 %v4227_v31, %v4226_v26 }
 0x263   : > { %v4229_v27 = vpop.f32.mrb[152].mxu1  ;;  %v7539_v16 = vadd.f32 %v4228_v60, %v7493_v10 }
 0x264   : > { %v4230_v32 = vpop.f32.mrb[153].mxu1 }
 0x265   : > { %v4231_v48 = vadd.f32 %v4230_v32, %v4229_v27 }
 0x267   : > { %v4232_v55 = vpop.f32.mrb[154].mxu1  ;;  %v7542_v62 = vadd.f32 %v4231_v48, %v7497_v41 }
 0x268   : > { %v4233_v44 = vpop.f32.mrb[155].mxu1 }
 0x269   : > { %v4234_v49 = vadd.f32 %v4233_v44, %v4232_v55 }
 0x26b   : > { %v4235_v12 = vpop.f32.mrb[156].mxu1  ;;  %v7545_v28 = vadd.f32 %v4234_v49, %v7501_v36 }
 0x26c   : > { %v4236_v45 = vpop.f32.mrb[157].mxu1 }
 0x26d   : > { %v4237_v58 = vadd.f32 %v4236_v45, %v4235_v12 }
 0x26f   : > { %v4238_v24 = vpop.f32.mrb[158].mxu1  ;;  %v7548_v21 = vadd.f32 %v4237_v58, %v7505_v42 }
 0x270   : > { %v4239_v10 = vpop.f32.mrb[159].mxu1 }
 0x271   : > { %v4240_v34 = vadd.f32 %v4239_v10, %v4238_v24 }
 0x273   : > { %v2129_v30 = vpop.f32.mrb[160].mxu1  ;;  %v7550_v52 = vadd.f32 %v4240_v34, %v1813_v1 }
 0x274   : > { %v2130_v63 = vadd.f32 %v2129_v30, %v1917_v33  ;;  %v2131_v41 = vpop.f32.mrb[161].mxu1 }
 0x277   : > { %v2144_v15 = vpop.f32.mrb[162].mxu1 }
 0x278   : > { %v2145_v51 = vadd.f32 %v2144_v15, %v1924_v61  ;;  %v2146_v3 = vpop.f32.mrb[163].mxu1 }
 0x279   : > { %v3566_v36 = vpop.f32.mrb[32].mxu0 }
 0x27a   : > { %v4686_v42 = vadd.f32 %v3566_v36, %v2130_v63  ;;  %v3568_v39 = vpop.f32.mrb[33].mxu0 }
 0x27b   : > { %v2159_v1 = vpop.f32.mrb[164].mxu1 }
 0x27c   : > { %3676 = vst.msk [vmem:[%s7556_s7] sm:$0xff] %vm3675_vm1, %v4686_v42  ;;  %v2160_v33 = vadd.f32 %v2159_v1, %v7512_v5  ;;  %v2161_v22 = vpop.f32.mrb[165].mxu1 }
 0x27d   : > { %v3573_v61 = vpop.f32.mrb[34].mxu0 }
 0x27e   : > { %v4688_v53 = vadd.f32 %v3573_v61, %v2145_v51  ;;  %v3575_v2 = vpop.f32.mrb[35].mxu0 }
 0x27f   : > { %v2174_v29 = vpop.f32.mrb[166].mxu1 }
 0x280   : > { %3677 = vst.msk [vmem:[%s7556_s7 + $0x8] sm:$0xff] %vm3675_vm1, %v4688_v53  ;;  %v2175_v37 = vadd.f32 %v2174_v29, %v7515_v18  ;;  %v2176_v19 = vpop.f32.mrb[167].mxu1 }
 0x281   : > { %v3580_v54 = vpop.f32.mrb[36].mxu0 }
 0x282   : > { %v4690_v46 = vadd.f32 %v3580_v54, %v2160_v33  ;;  %v3582_v47 = vpop.f32.mrb[37].mxu0 }
 0x283   : > { %v2189_v56 = vpop.f32.mrb[168].mxu1 }
 0x284   : > { %3678 = vst.msk [vmem:[%s7556_s7 + $0x10] sm:$0xff] %vm3675_vm1, %v4690_v46  ;;  %v2190_v5 = vadd.f32 %v2189_v56, %v7518_v14  ;;  %v2191_v9 = vpop.f32.mrb[169].mxu1 }
 0x285   : > { %v3587_v57 = vpop.f32.mrb[38].mxu0 }
 0x286   : > { %v4692_v4 = vadd.f32 %v3587_v57, %v2175_v37  ;;  %v3589_v23 = vpop.f32.mrb[39].mxu0 }
 0x287   : > { %v2204_v40 = vpop.f32.mrb[170].mxu1 }
 0x288   : > { %3679 = vst.msk [vmem:[%s7556_s7 + $0x18] sm:$0xff] %vm3675_vm1, %v4692_v4  ;;  %v2205_v18 = vadd.f32 %v2204_v40, %v7521_v38  ;;  %v2206_v6 = vpop.f32.mrb[171].mxu1 }
 0x289   : > { %v3594_v25 = vpop.f32.mrb[40].mxu0 }
 0x28a   : > { %v4694_v8 = vadd.f32 %v3594_v25, %v2190_v5  ;;  %v3596_v35 = vpop.f32.mrb[41].mxu0 }
 0x28b   : > { %v2219_v50 = vpop.f32.mrb[172].mxu1 }
 0x28c   : > { %3680 = vst.msk [vmem:[%s7556_s7 + $0x20] sm:$0xff] %vm3675_vm1, %v4694_v8  ;;  %v2220_v14 = vadd.f32 %v2219_v50, %v7524_v7  ;;  %v2221_v17 = vpop.f32.mrb[173].mxu1 }
 0x28d   : > { %v3601_v11 = vpop.f32.mrb[42].mxu0 }
 0x28e   : > { %v4696_v20 = vadd.f32 %v3601_v11, %v2205_v18  ;;  %v3603_v26 = vpop.f32.mrb[43].mxu0 }
 0x28f   : > { %v2234_v31 = vpop.f32.mrb[174].mxu1 }
 0x290   : > { %3681 = vst.msk [vmem:[%s7556_s7 + $0x28] sm:$0xff] %vm3675_vm1, %v4696_v20  ;;  %v2235_v38 = vadd.f32 %v2234_v31, %v7527_v13  ;;  %v2236_v60 = vpop.f32.mrb[175].mxu1 }
 0x291   : > { %v3608_v27 = vpop.f32.mrb[44].mxu0 }
 0x292   : > { %v4698_v32 = vadd.f32 %v3608_v27, %v2220_v14  ;;  %v3610_v48 = vpop.f32.mrb[45].mxu0 }
 0x293   : > { %v2249_v55 = vpop.f32.mrb[176].mxu1 }
 0x294   : > { %3682 = vst.msk [vmem:[%s7556_s7 + $0x30] sm:$0xff] %vm3675_vm1, %v4698_v32  ;;  %v2250_v7 = vadd.f32 %v2249_v55, %v7530_v43  ;;  %v2251_v44 = vpop.f32.mrb[177].mxu1 }
 0x295   : > { %v3615_v49 = vpop.f32.mrb[46].mxu0 }
 0x296   : > { %v4700_v12 = vadd.f32 %v3615_v49, %v2235_v38  ;;  %v3617_v45 = vpop.f32.mrb[47].mxu0 }
 0x297   : > { %v2264_v58 = vpop.f32.mrb[178].mxu1 }
 0x298   : > { %3683 = vst.msk [vmem:[%s7556_s7 + $0x38] sm:$0xff] %vm3675_vm1, %v4700_v12  ;;  %v2265_v13 = vadd.f32 %v2264_v58, %v7533_v0  ;;  %v2266_v24 = vpop.f32.mrb[179].mxu1 }
 0x299   : > { %v3622_v10 = vpop.f32.mrb[48].mxu0 }
 0x29a   : > { %v4702_v34 = vadd.f32 %v3622_v10, %v2250_v7  ;;  %v3624_v30 = vpop.f32.mrb[49].mxu0 }
 0x29b   : > { %v2279_v63 = vpop.f32.mrb[180].mxu1 }
 0x29c   : > { %3684 = vst.msk [vmem:[%s7556_s7 + $0x40] sm:$0xff] %vm3675_vm1, %v4702_v34  ;;  %v2280_v43 = vadd.f32 %v2279_v63, %v7536_v59  ;;  %v2281_v41 = vpop.f32.mrb[181].mxu1 }
 0x29d   : > { %v3629_v15 = vpop.f32.mrb[50].mxu0 }
 0x29e   : > { %v4704_v51 = vadd.f32 %v3629_v15, %v2265_v13  ;;  %v3631_v3 = vpop.f32.mrb[51].mxu0 }
 0x29f   : > { %v2294_v36 = vpop.f32.mrb[182].mxu1 }
 0x2a0   : > { %3685 = vst.msk [vmem:[%s7556_s7 + $0x48] sm:$0xff] %vm3675_vm1, %v4704_v51  ;;  %v2295_v0 = vadd.f32 %v2294_v36, %v7539_v16  ;;  %v2296_v42 = vpop.f32.mrb[183].mxu1 }
 0x2a1   : > { %v3636_v39 = vpop.f32.mrb[52].mxu0 }
 0x2a2   : > { %v4706_v1 = vadd.f32 %v3636_v39, %v2280_v43  ;;  %v3638_v33 = vpop.f32.mrb[53].mxu0 }
 0x2a3   : > { %v2309_v22 = vpop.f32.mrb[184].mxu1 }
 0x2a4   : > { %3686 = vst.msk [vmem:[%s7556_s7 + $0x50] sm:$0xff] %vm3675_vm1, %v4706_v1  ;;  %v2310_v59 = vadd.f32 %v2309_v22, %v7542_v62  ;;  %v2311_v61 = vpop.f32.mrb[185].mxu1 }
 0x2a5   : > { %v3643_v53 = vpop.f32.mrb[54].mxu0 }
 0x2a6   : > { %v4708_v2 = vadd.f32 %v3643_v53, %v2295_v0  ;;  %v3645_v29 = vpop.f32.mrb[55].mxu0 }
 0x2a7   : > { %v2324_v37 = vpop.f32.mrb[186].mxu1 }
 0x2a8   : > { %3687 = vst.msk [vmem:[%s7556_s7 + $0x58] sm:$0xff] %vm3675_vm1, %v4708_v2  ;;  %v2325_v16 = vadd.f32 %v2324_v37, %v7545_v28  ;;  %v2326_v19 = vpop.f32.mrb[187].mxu1 }
 0x2a9   : > { %v3650_v54 = vpop.f32.mrb[56].mxu0 }
 0x2aa   : > { %v4710_v46 = vadd.f32 %v3650_v54, %v2310_v59  ;;  %v3652_v47 = vpop.f32.mrb[57].mxu0 }
 0x2ab   : > { %v2339_v56 = vpop.f32.mrb[188].mxu1 }
 0x2ac   : > { %3688 = vst.msk [vmem:[%s7556_s7 + $0x60] sm:$0xff] %vm3675_vm1, %v4710_v46  ;;  %v2340_v62 = vadd.f32 %v2339_v56, %v7548_v21  ;;  %v2341_v5 = vpop.f32.mrb[189].mxu1 }
 0x2ad   : > { %v3657_v9 = vpop.f32.mrb[58].mxu0 }
 0x2ae   : > { %v4712_v57 = vadd.f32 %v3657_v9, %v2325_v16  ;;  %v3659_v4 = vpop.f32.mrb[59].mxu0 }
 0x2af   : > { %v2354_v23 = vpop.f32.mrb[190].mxu1 }
 0x2b0   : > { %3689 = vst.msk [vmem:[%s7556_s7 + $0x68] sm:$0xff] %vm3675_vm1, %v4712_v57  ;;  %v2355_v28 = vadd.f32 %v2354_v23, %v7550_v52  ;;  %v2356_v40 = vpop.f32.mrb[191].mxu1 }
 0x2b1   : > { %v3664_v18 = vpop.f32.mrb[60].mxu0 }
 0x2b2   : > { %v4714_v6 = vadd.f32 %v3664_v18, %v2340_v62  ;;  %v3666_v25 = vpop.f32.mrb[61].mxu0 }
 0x2b4   : > { %3690 = vst.msk [vmem:[%s7556_s7 + $0x70] sm:$0xff] %vm3675_vm1, %v4714_v6 }
 0x2b5   : > { %v3671_v8 = vpop.f32.mrb[62].mxu0 }
 0x2b6   : > { %v4716_v35 = vadd.f32 %v3671_v8, %v2355_v28  ;;  %v3673_v50 = vpop.f32.mrb[63].mxu0 }
 0x2b8   : > { %3691 = vst.msk [vmem:[%s7556_s7 + $0x78] sm:$0xff] %vm3675_vm1, %v4716_v35 }
 0x2b9 PF: > { %s12_s9 = sadd.s32 1, %s4860_s9  }
 0x2ba   : > { %p9_p4 = scmp.ge.s32.totalorder %s12_s9, 6  }
 0x2bc   :  { %11 = sbr.rel (!%p9_p4) target bundleno = 1 (0x1), region = 58 }

</bundles_post_ra>
